<compile_context>
chip_gen: v7x
topology: tpu7x:2x2x1
jax: 0.10.0
libtpu: 0.0.40
codegen_flags: <defaults>
</compile_context>

<pallas_src>
import numpy as np
import jax
import jax.numpy as jnp
from jax import lax
from jax.experimental import pallas as pl
from jax.experimental.pallas import tpu as pltpu

# ----------------------- module hyper-parameters -----------------------------
MASK_LAYER = 5            # number of object masks (C)
NUM_FLOW_FEAT = 32        # num_flow_feat_channels (F)
RESIDUAL_ADJ_SCALE = 10.0
PRED_DIV_COEFF = 10.0
NEG_SLOPE = 0.1           # LeakyReLU(0.1)

_TAPS = tuple((dy, dx) for dy in range(3) for dx in range(3))


def _leaky(x):
    return jnp.where(x > 0, x, NEG_SLOPE * x)


def _border_masks(H, W):
    """(9, H*W) validity of each 3x3 tap at every output pixel (zero padding).

    Invariant relied on by the in-kernel pltpu.roll shifts: whenever a tap is
    valid, its source pixel lies inside the SAME image's [b*HW, (b+1)*HW) lane
    range, so every lane that would receive wrapped / cross-image data from the
    roll is zeroed by this mask.
    """
    q = np.arange(H * W)
    hh, ww = q // W, q % W
    rows = []
    for dy, dx in _TAPS:
        valid = ((hh + dy - 1 >= 0) & (hh + dy - 1 < H) &
                 (ww + dx - 1 >= 0) & (ww + dx - 1 < W))
        rows.append(valid.astype(np.float32))
    return np.stack(rows, axis=0)


def _choose_nb(N, HW, F=NUM_FLOW_FEAT):
    """How many images to fold into one grid step (lane axis = nb*HW)."""
    if HW >= 512:
        return 1                      # lanes already dense; skip the fold relayout
    dual_tc = False
    try:
        kind = jax.devices()[0].device_kind.lower()
        dual_tc = any(t in kind for t in ("v7", "7x", "v4"))   # 2 TCs / megacore
    except Exception:
        pass
    target_steps = 2 if (dual_tc and N >= 2) else 1
    nb = max(1, N // target_steps)
    # VMEM guard: per-image live set is dominated by im2col(h1) = (9F, HW) bf16
    per_img = HW * (9 * F * 2 + 9 * 2 * 2 + 8 * F * 4 + 64 * 4)
    budget = 12 << 20                 # fits the default scoped-VMEM limit everywhere
    while nb > 1 and (N % nb != 0 or nb * per_img > budget):
        nb -= 1
    return nb


# ----------------------------- Pallas kernel ---------------------------------
def _make_agg_kernel(H, W, C, F, nb):
    """aggregate_flow_with_residual for `nb` images folded into the lane axis."""
    HW = H * W
    L = nb * HW
    nbC = nb * C
    inv_coeff = 1.0 / PRED_DIV_COEFF

    def kernel(mblk_ref, mask_ref, flow_ref, res_ref, vm_ref,
               w1_ref, b1_ref, w2_ref, b2_ref, w3_ref, b3_ref, w4_ref, b4_ref,
               agg_ref, adj_ref):
        mblk = mblk_ref[0]        # (nb*C, L) f32 block-diagonal object masks
        mask = mask_ref[0]        # (C, L)    f32 raw object masks
        flow = flow_ref[0]        # (2, L)
        resid = res_ref[0]        # (2, C, L)
        vm = vm_ref[...]          # (9, L)    bf16 border / cross-image validity

        def im2col(x):
            # x: (Cin, L) f32 -> (9*Cin, L) bf16.  Lane roll (XLU) + bf16 mask;
            # vm zeroes every lane that would receive wrapped / cross-image data.
            cols = []
            for t, (dy, dx) in enumerate(_TAPS):
                s = (dy - 1) * W + (dx - 1)
                if s == 0:
                    cols.append(x.astype(jnp.bfloat16))     # centre tap: mask all-ones
                else:
                    xt = pltpu.roll(x, shift=(L - s) % L, axis=1)
                    cols.append(xt.astype(jnp.bfloat16) * vm[t:t + 1])
            return jnp.concatenate(cols, axis=0)

        # flow_feat_before_agg: two 3x3 convs, each one K=9*Cin bf16 MXU matmul.
        h1 = _leaky(jnp.dot(w1_ref[...], im2col(flow),
                            preferred_element_type=jnp.float32) + b1_ref[...])  # (F, L)
        h2 = _leaky(jnp.dot(w2_ref[...], im2col(h1),
                            preferred_element_type=jnp.float32) + b2_ref[...])  # (F, L)

        # free-residual adjustment: (tanh(res/coeff) * mask).sum(objects) * scale
        t0 = jnp.tanh(resid[0] * inv_coeff)                  # (C, L)
        t1 = jnp.tanh(resid[1] * inv_coeff)
        a0 = jnp.sum(t0 * mask, axis=0, keepdims=True)
        a1 = jnp.sum(t1 * mask, axis=0, keepdims=True)
        adj_ref[0] = jnp.concatenate([a0, a1], axis=0) * RESIDUAL_ADJ_SCALE

        # Aggregation over objects for ALL folded images in one MXU contraction:
        # the appended ones-row yields the per-object mask sums for free.
        h2e = jnp.concatenate([h2.astype(jnp.bfloat16),
                               jnp.ones((1, L), jnp.bfloat16)], axis=0)          # (F+1, L)
        num_ext = lax.dot_general(h2e, mblk.astype(jnp.bfloat16),
                                  (((1,), (1,)), ((), ())),
                                  preferred_element_type=jnp.float32)            # (F+1, nbC)
        inv = pl.reciprocal(num_ext[F:F + 1, :], approx=True)                    # (1, nbC)
        agg = num_ext[:F, :] * inv                                               # (F, nbC)

        # flow_feat_after_agg: 1x1-conv chain once for all folded images.
        h3 = _leaky(jnp.dot(w3_ref[...], agg.astype(jnp.bfloat16),
                            preferred_element_type=jnp.float32) + b3_ref[...])   # (F, nbC)
        out2 = jnp.dot(w4_ref[...], h3.astype(jnp.bfloat16),
                       preferred_element_type=jnp.float32) + b4_ref[...]         # (2, nbC)

        # Paste per-object flow back onto the masks on the VPU (a K=nbC matmul
        # would leave the MXU idle); block-diagonal rows keep images separated,
        # so a single lane-dense full-L store suffices (no concat).
        paste = out2[:, 0:1] * mblk[0:1, :]
        for bc in range(1, nbC):
            paste = paste + out2[:, bc:bc + 1] * mblk[bc:bc + 1, :]
        agg_ref[0] = paste                                                       # (2, L)

    return kernel


def _full_spec(shape):
    n = len(shape)
    return pl.BlockSpec(shape, lambda g: (0,) * n)


def aggregate_flow_with_residual(mask, flow, residual, params, nb=None):
    """mask: (N,C,H,W), flow: (N,2,H,W), residual: (N,2*C,H,W) -> (overall, agg, adj)."""
    N, C, H, W = mask.shape
    HW = H * W
    F = params["w3"].shape[0]
    if nb is None:
        nb = _choose_nb(N, HW, F)
    if N % nb != 0:
        nb = 1
    G = N // nb
    L = nb * HW

    # fold nb images into the lane axis per grid step (channel-major)
    mask_f = mask.reshape(G, nb, C, HW).transpose(0, 2, 1, 3).reshape(G, C, L)
    flow_f = flow.reshape(G, nb, 2, HW).transpose(0, 2, 1, 3).reshape(G, 2, L)
    res_f = residual.reshape(G, nb, 2, C, HW).transpose(0, 2, 3, 1, 4).reshape(G, 2, C, L)

    # block-diagonal mask: row b*C+c is image b's mask c on its own lane range,
    # zero elsewhere -> one K=L contraction aggregates every folded image at once.
    m4 = mask.reshape(G, nb, C, HW)
    eye = jnp.eye(nb, dtype=mask.dtype)
    mask_blk = (m4[:, :, :, None, :] * eye[None, :, None, :, None]).reshape(G, nb * C, L)

    # constant per-tap border masks (bf16, values 0/1), tiled per folded image
    vm = jnp.asarray(np.tile(_border_masks(H, W), (1, nb)), dtype=jnp.bfloat16)  # (9, L)

    # lane-dense im2col / 1x1 weights, bf16 MXU operands
    w1f = jnp.transpose(params["w1"], (2, 0, 1, 3)).reshape(F, 9 * 2).astype(jnp.bfloat16)
    w2f = jnp.transpose(params["w2"], (2, 0, 1, 3)).reshape(F, 9 * F).astype(jnp.bfloat16)
    w3f = params["w3"].astype(jnp.bfloat16)
    w4f = params["w4"].astype(jnp.bfloat16)

    kernel = _make_agg_kernel(H, W, C, F, nb)
    in_specs = [
        pl.BlockSpec((1, nb * C, L), lambda g: (g, 0, 0)),
        pl.BlockSpec((1, C, L), lambda g: (g, 0, 0)),
        pl.BlockSpec((1, 2, L), lambda g: (g, 0, 0)),
        pl.BlockSpec((1, 2, C, L), lambda g: (g, 0, 0, 0)),
        _full_spec(vm.shape),
        _full_spec(w1f.shape), _full_spec(params["b1"].shape),
        _full_spec(w2f.shape), _full_spec(params["b2"].shape),
        _full_spec(w3f.shape), _full_spec(params["b3"].shape),
        _full_spec(w4f.shape), _full_spec(params["b4"].shape),
    ]
    out_specs = tuple(pl.BlockSpec((1, 2, L), lambda g: (g, 0, 0)) for _ in range(2))
    out_shape = tuple(jax.ShapeDtypeStruct((G, 2, L), jnp.float32) for _ in range(2))

    agg_f, adj_f = pl.pallas_call(
        kernel,
        grid=(G,),
        in_specs=in_specs,
        out_specs=out_specs,
        out_shape=out_shape,
        compiler_params=pltpu.CompilerParams(dimension_semantics=("parallel",)),
    )(mask_blk, mask_f, flow_f, res_f, vm,
      w1f, params["b1"], w2f, params["b2"],
      w3f, params["b3"], w4f, params["b4"])

    def unfold(x):
        return x.reshape(G, 2, nb, HW).transpose(0, 2, 1, 3).reshape(N, 2, H, W)

    agg = unfold(agg_f)
    adj = unfold(adj_f)
    return agg + adj, agg, adj     # `overall` is a free XLA add (not a kernel output)


# ------------------------------ forward (glue) --------------------------------
def get_norm_flow(f1, f2):
    _, _, h1, w1 = f1.shape
    f1n = jnp.concatenate([f1[:, 0:1] / (h1 / 2.0), f1[:, 1:2] / (w1 / 2.0)], axis=1)
    _, _, h2, w2 = f2.shape
    f2n = jnp.concatenate([f2[:, 0:1] / (h2 / 2.0), f2[:, 1:2] / (w2 / 2.0)], axis=1)
    return h1, w1, f1n, f2n


def forward(params, imgs, masks, gt_fw_flows, gt_bw_flows, res_fw, res_bw):
    B, im_num = imgs.shape[0], imgs.shape[1]
    assert im_num == 2, "Other im_num not implemented"
    flows = {"gt_flow": [], "pred_flow": [], "agg_flow": [],
             "residual_adj": [], "affine_flow": []}
    flow_loss = {"seg_fw": 0.0, "seg_bw": 0.0}

    mask1 = masks[:, 0]
    mask2 = masks[:, 1]
    gt_fw = gt_fw_flows[:, 0]     # norm_and_clamp_flow is identity for this config
    gt_bw = gt_bw_flows[:, 0]

    # fw and bw aggregation share weights -> one pallas_call over a stacked batch
    m_all = jnp.concatenate([mask1, mask2], axis=0)
    f_all = jnp.concatenate([gt_fw, gt_bw], axis=0)
    r_all = jnp.concatenate([res_fw, res_bw], axis=0)
    over, agg, adj = aggregate_flow_with_residual(m_all, f_all, r_all, params)
    fw_over, bw_over = over[:B], over[B:]
    fw_agg, bw_agg = agg[:B], agg[B:]
    fw_adj, bw_adj = adj[:B], adj[B:]

    flow_loss["seg_fw"] = flow_loss["seg_fw"] + jnp.mean(jnp.abs(gt_fw - fw_over))
    flow_loss["seg_bw"] = flow_loss["seg_bw"] + jnp.mean(jnp.abs(gt_bw - bw_over))

    def _norm_cat(a, b):
        _, _, fa, fb = get_norm_flow(a, b)
        return jnp.concatenate([fa, fb], axis=1)

    flows["gt_flow"].append(_norm_cat(gt_fw, gt_bw))
    flows["pred_flow"].append(_norm_cat(fw_over, bw_over))
    flows["agg_flow"].append(_norm_cat(fw_agg, bw_agg))
    flows["residual_adj"].append(_norm_cat(fw_adj, bw_adj))
    # affine_flow stays empty (free_residual config -> flow_affine is None)

    flow_loss["seg"] = flow_loss["seg_fw"] + flow_loss["seg_bw"]
    return flows, flow_loss


# ------------------------- deterministic parameters ---------------------------
def init_params(key, F=NUM_FLOW_FEAT):
    ks = jax.random.split(key, 8)

    def winit(k, shape, fan_in):
        return (jax.random.normal(k, shape, jnp.float32) / np.sqrt(fan_in)).astype(jnp.float32)

    return {
        # conv weights stored as (kh, kw, Cout, Cin); biases as (Cout, 1)
        "w1": winit(ks[0], (3, 3, F, 2), 2 * 9),
        "b1": 0.01 * jax.random.normal(ks[1], (F, 1), jnp.float32),
        "w2": winit(ks[2], (3, 3, F, F), F * 9),
        "b2": 0.01 * jax.random.normal(ks[3], (F, 1), jnp.float32),
        "w3": winit(ks[4], (F, F), F),
        "b3": 0.01 * jax.random.normal(ks[5], (F, 1), jnp.float32),
        "w4": winit(ks[6], (2, F), F),
        "b4": 0.01 * jax.random.normal(ks[7], (2, 1), jnp.float32),
    }


# ----------------------- pure-JAX reference (validation) ----------------------
def _aggregate_reference(mask, flow, residual, params):
    N, C, H, W = mask.shape
    w1 = jnp.transpose(params["w1"], (2, 3, 0, 1))   # -> OIHW
    w2 = jnp.transpose(params["w2"], (2, 3, 0, 1))

    def conv(x, w, b):
        y = jax.lax.conv_general_dilated(x, w, (1, 1), [(1, 1), (1, 1)],
                                         dimension_numbers=("NCHW", "OIHW", "NCHW"))
        return y + b.reshape(1, -1, 1, 1)

    h = _leaky(conv(flow, w1, params["b1"]))
    h = _leaky(conv(h, w2, params["b2"]))
    mask_n = mask / jnp.sum(mask, axis=(2, 3), keepdims=True)
    agg = jnp.einsum("nfhw,nchw->nfc", h, mask_n)
    h3 = _leaky(jnp.einsum("of,nfc->noc", params["w3"], agg) + params["b3"].reshape(1, -1, 1))
    out2 = jnp.einsum("of,nfc->noc", params["w4"], h3) + params["b4"].reshape(1, -1, 1)
    flow_agg = jnp.einsum("nkc,nchw->nkhw", out2, mask)
    res = residual.reshape(N, 2, C, H, W)
    adj = jnp.einsum("nkchw,nchw->nkhw",
                     jnp.tanh(res / PRED_DIV_COEFF), mask) * RESIDUAL_ADJ_SCALE
    return flow_agg + adj, flow_agg, adj


# ------------------------------------ main -------------------------------------
if __name__ == "__main__":
    B, C_MASK, H, W = 2, MASK_LAYER, 16, 16
    key = jax.random.PRNGKey(0)
    k_in, k_par = jax.random.split(key)
    ki = jax.random.split(k_in, 6)

    imgs = jax.random.normal(ki[0], (B, 2, 3, H, W), jnp.float32)
    masks = jax.nn.softmax(jax.random.normal(ki[1], (B, 2, C_MASK, H, W), jnp.float32), axis=2)
    gt_fw_flows = 2.0 * jax.random.normal(ki[2], (B, 1, 2, H, W), jnp.float32)
    gt_bw_flows = 2.0 * jax.random.normal(ki[3], (B, 1, 2, H, W), jnp.float32)
    res_fw = 3.0 * jax.random.normal(ki[4], (B, 2 * C_MASK, H, W), jnp.float32)
    res_bw = 3.0 * jax.random.normal(ki[5], (B, 2 * C_MASK, H, W), jnp.float32)

    params = init_params(k_par)

    fwd = jax.jit(forward)
    flows, flow_loss = fwd(params, imgs, masks, gt_fw_flows, gt_bw_flows, res_fw, res_bw)
    jax.block_until_ready((flows, flow_loss))

    # cross-check the Pallas hot path against a pure-JAX/XLA reference
    m_all = jnp.concatenate([masks[:, 0], masks[:, 1]], axis=0)
    f_all = jnp.concatenate([gt_fw_flows[:, 0], gt_bw_flows[:, 0]], axis=0)
    r_all = jnp.concatenate([res_fw, res_bw], axis=0)
    got = aggregate_flow_with_residual(m_all, f_all, r_all, params)
    ref = _aggregate_reference(m_all, f_all, r_all, params)
    for g, r in zip(got, ref):
        np.testing.assert_allclose(np.asarray(g), np.asarray(r), rtol=2e-2, atol=2e-2)

    print("KERNEL_OK")
</pallas_src>

<mosaic_0001>
module attributes {stable_mosaic.version = 11 : i64} {
  func.func @kernel(%arg0: i32, %arg1: memref<1x20x1024xf32, #tpu.memory_space<vmem>>, %arg2: memref<1x5x1024xf32, #tpu.memory_space<vmem>>, %arg3: memref<1x2x1024xf32, #tpu.memory_space<vmem>>, %arg4: memref<1x2x5x1024xf32, #tpu.memory_space<vmem>>, %arg5: memref<9x1024xbf16, #tpu.memory_space<vmem>>, %arg6: memref<32x18xbf16, #tpu.memory_space<vmem>>, %arg7: memref<32x1xf32, #tpu.memory_space<vmem>>, %arg8: memref<32x288xbf16, #tpu.memory_space<vmem>>, %arg9: memref<32x1xf32, #tpu.memory_space<vmem>>, %arg10: memref<32x32xbf16, #tpu.memory_space<vmem>>, %arg11: memref<32x1xf32, #tpu.memory_space<vmem>>, %arg12: memref<2x32xbf16, #tpu.memory_space<vmem>>, %arg13: memref<2x1xf32, #tpu.memory_space<vmem>>, %arg14: memref<1x2x1024xf32, #tpu.memory_space<vmem>>, %arg15: memref<1x2x1024xf32, #tpu.memory_space<vmem>>) attributes {dimension_semantics = [#tpu.dimension_semantics<parallel>], iteration_bounds = array<i64: 1>, scalar_prefetch = 0 : i64, scratch_operands = 0 : i64, tpu.core_type = #tpu.core_type<tc>, window_params = [{transform_indices = @transform_0, window_bounds = array<i64: 1, 20, 1024>}, {transform_indices = @transform_1, window_bounds = array<i64: 1, 5, 1024>}, {transform_indices = @transform_2, window_bounds = array<i64: 1, 2, 1024>}, {transform_indices = @transform_3, window_bounds = array<i64: 1, 2, 5, 1024>}, {pipeline_mode = #tpu.pipeline_mode<synchronous>, transform_indices = @transform_4, window_bounds = array<i64: 9, 1024>}, {pipeline_mode = #tpu.pipeline_mode<synchronous>, transform_indices = @transform_5, window_bounds = array<i64: 32, 18>}, {pipeline_mode = #tpu.pipeline_mode<synchronous>, transform_indices = @transform_6, window_bounds = array<i64: 32, 1>}, {pipeline_mode = #tpu.pipeline_mode<synchronous>, transform_indices = @transform_7, window_bounds = array<i64: 32, 288>}, {pipeline_mode = #tpu.pipeline_mode<synchronous>, transform_indices = @transform_8, window_bounds = array<i64: 32, 1>}, {pipeline_mode = #tpu.pipeline_mode<synchronous>, transform_indices = @transform_9, window_bounds = array<i64: 32, 32>}, {pipeline_mode = #tpu.pipeline_mode<synchronous>, transform_indices = @transform_10, window_bounds = array<i64: 32, 1>}, {pipeline_mode = #tpu.pipeline_mode<synchronous>, transform_indices = @transform_11, window_bounds = array<i64: 2, 32>}, {pipeline_mode = #tpu.pipeline_mode<synchronous>, transform_indices = @transform_12, window_bounds = array<i64: 2, 1>}, {transform_indices = @transform_13, window_bounds = array<i64: 1, 2, 1024>}, {transform_indices = @transform_14, window_bounds = array<i64: 1, 2, 1024>}]} {
    %c0 = arith.constant 0 : index
    %c0_0 = arith.constant 0 : index
    %c0_1 = arith.constant 0 : index
    %0 = vector.load %arg1[%c0, %c0_0, %c0_1] : memref<1x20x1024xf32, #tpu.memory_space<vmem>>, vector<1x20x1024xf32>
    %1 = vector.shape_cast %0 : vector<1x20x1024xf32> to vector<20x1024xf32>
    %c0_2 = arith.constant 0 : index
    %c0_3 = arith.constant 0 : index
    %c0_4 = arith.constant 0 : index
    %2 = vector.load %arg2[%c0_2, %c0_3, %c0_4] : memref<1x5x1024xf32, #tpu.memory_space<vmem>>, vector<1x5x1024xf32>
    %3 = vector.shape_cast %2 : vector<1x5x1024xf32> to vector<5x1024xf32>
    %c0_5 = arith.constant 0 : index
    %c0_6 = arith.constant 0 : index
    %c0_7 = arith.constant 0 : index
    %4 = vector.load %arg3[%c0_5, %c0_6, %c0_7] : memref<1x2x1024xf32, #tpu.memory_space<vmem>>, vector<1x2x1024xf32>
    %5 = vector.shape_cast %4 : vector<1x2x1024xf32> to vector<2x1024xf32>
    %c0_8 = arith.constant 0 : index
    %c0_9 = arith.constant 0 : index
    %c0_10 = arith.constant 0 : index
    %c0_11 = arith.constant 0 : index
    %6 = vector.load %arg4[%c0_8, %c0_9, %c0_10, %c0_11] : memref<1x2x5x1024xf32, #tpu.memory_space<vmem>>, vector<1x2x5x1024xf32>
    %7 = vector.shape_cast %6 : vector<1x2x5x1024xf32> to vector<2x5x1024xf32>
    %c0_12 = arith.constant 0 : index
    %c0_13 = arith.constant 0 : index
    %8 = vector.load %arg5[%c0_12, %c0_13] : memref<9x1024xbf16, #tpu.memory_space<vmem>>, vector<9x1024xbf16>
    %c0_14 = arith.constant 0 : index
    %c0_15 = arith.constant 0 : index
    %9 = vector.load %arg6[%c0_14, %c0_15] : memref<32x18xbf16, #tpu.memory_space<vmem>>, vector<32x18xbf16>
    %c17_i32 = arith.constant 17 : i32
    %10 = tpu.dynamic_rotate %5 by %c17_i32 dim 1 : vector<2x1024xf32>, i32 -> vector<2x1024xf32>
    %11 = arith.truncf %10 : vector<2x1024xf32> to vector<2x1024xbf16>
    %12 = vector.extract_strided_slice %8 {offsets = [0, 0], sizes = [1, 1024], strides = [1, 1]} : vector<9x1024xbf16> to vector<1x1024xbf16>
    %13 = vector.broadcast %12 : vector<1x1024xbf16> to vector<2x1024xbf16>
    %14 = arith.mulf %11, %13 : vector<2x1024xbf16>
    %c16_i32 = arith.constant 16 : i32
    %15 = tpu.dynamic_rotate %5 by %c16_i32 dim 1 : vector<2x1024xf32>, i32 -> vector<2x1024xf32>
    %16 = arith.truncf %15 : vector<2x1024xf32> to vector<2x1024xbf16>
    %17 = vector.extract_strided_slice %8 {offsets = [1, 0], sizes = [1, 1024], strides = [1, 1]} : vector<9x1024xbf16> to vector<1x1024xbf16>
    %18 = vector.broadcast %17 : vector<1x1024xbf16> to vector<2x1024xbf16>
    %19 = arith.mulf %16, %18 : vector<2x1024xbf16>
    %c15_i32 = arith.constant 15 : i32
    %20 = tpu.dynamic_rotate %5 by %c15_i32 dim 1 : vector<2x1024xf32>, i32 -> vector<2x1024xf32>
    %21 = arith.truncf %20 : vector<2x1024xf32> to vector<2x1024xbf16>
    %22 = vector.extract_strided_slice %8 {offsets = [2, 0], sizes = [1, 1024], strides = [1, 1]} : vector<9x1024xbf16> to vector<1x1024xbf16>
    %23 = vector.broadcast %22 : vector<1x1024xbf16> to vector<2x1024xbf16>
    %24 = arith.mulf %21, %23 : vector<2x1024xbf16>
    %c1_i32 = arith.constant 1 : i32
    %25 = tpu.dynamic_rotate %5 by %c1_i32 dim 1 : vector<2x1024xf32>, i32 -> vector<2x1024xf32>
    %26 = arith.truncf %25 : vector<2x1024xf32> to vector<2x1024xbf16>
    %27 = vector.extract_strided_slice %8 {offsets = [3, 0], sizes = [1, 1024], strides = [1, 1]} : vector<9x1024xbf16> to vector<1x1024xbf16>
    %28 = vector.broadcast %27 : vector<1x1024xbf16> to vector<2x1024xbf16>
    %29 = arith.mulf %26, %28 : vector<2x1024xbf16>
    %30 = arith.truncf %5 : vector<2x1024xf32> to vector<2x1024xbf16>
    %c1023_i32 = arith.constant 1023 : i32
    %31 = tpu.dynamic_rotate %5 by %c1023_i32 dim 1 : vector<2x1024xf32>, i32 -> vector<2x1024xf32>
    %32 = arith.truncf %31 : vector<2x1024xf32> to vector<2x1024xbf16>
    %33 = vector.extract_strided_slice %8 {offsets = [5, 0], sizes = [1, 1024], strides = [1, 1]} : vector<9x1024xbf16> to vector<1x1024xbf16>
    %34 = vector.broadcast %33 : vector<1x1024xbf16> to vector<2x1024xbf16>
    %35 = arith.mulf %32, %34 : vector<2x1024xbf16>
    %c1009_i32 = arith.constant 1009 : i32
    %36 = tpu.dynamic_rotate %5 by %c1009_i32 dim 1 : vector<2x1024xf32>, i32 -> vector<2x1024xf32>
    %37 = arith.truncf %36 : vector<2x1024xf32> to vector<2x1024xbf16>
    %38 = vector.extract_strided_slice %8 {offsets = [6, 0], sizes = [1, 1024], strides = [1, 1]} : vector<9x1024xbf16> to vector<1x1024xbf16>
    %39 = vector.broadcast %38 : vector<1x1024xbf16> to vector<2x1024xbf16>
    %40 = arith.mulf %37, %39 : vector<2x1024xbf16>
    %c1008_i32 = arith.constant 1008 : i32
    %41 = tpu.dynamic_rotate %5 by %c1008_i32 dim 1 : vector<2x1024xf32>, i32 -> vector<2x1024xf32>
    %42 = arith.truncf %41 : vector<2x1024xf32> to vector<2x1024xbf16>
    %43 = vector.extract_strided_slice %8 {offsets = [7, 0], sizes = [1, 1024], strides = [1, 1]} : vector<9x1024xbf16> to vector<1x1024xbf16>
    %44 = vector.broadcast %43 : vector<1x1024xbf16> to vector<2x1024xbf16>
    %45 = arith.mulf %42, %44 : vector<2x1024xbf16>
    %c1007_i32 = arith.constant 1007 : i32
    %46 = tpu.dynamic_rotate %5 by %c1007_i32 dim 1 : vector<2x1024xf32>, i32 -> vector<2x1024xf32>
    %47 = arith.truncf %46 : vector<2x1024xf32> to vector<2x1024xbf16>
    %48 = vector.extract_strided_slice %8 {offsets = [8, 0], sizes = [1, 1024], strides = [1, 1]} : vector<9x1024xbf16> to vector<1x1024xbf16>
    %49 = vector.broadcast %48 : vector<1x1024xbf16> to vector<2x1024xbf16>
    %50 = arith.mulf %47, %49 : vector<2x1024xbf16>
    %51 = tpu.concatenate %14, %19, %24, %29, %30, %35, %40, %45, %50 in 0 : vector<2x1024xbf16>, vector<2x1024xbf16>, vector<2x1024xbf16>, vector<2x1024xbf16>, vector<2x1024xbf16>, vector<2x1024xbf16>, vector<2x1024xbf16>, vector<2x1024xbf16>, vector<2x1024xbf16> -> vector<18x1024xbf16>
    %cst = arith.constant dense<0.000000e+00> : vector<32x1024xf32>
    %52 = tpu.matmul %9, %51, %cst {dimension_numbers = #tpu.dot_dimension_numbers<[1], [0], [0], [1], [0, 0, 1, 1], [], []>} : vector<32x18xbf16>, vector<18x1024xbf16>, vector<32x1024xf32> -> vector<32x1024xf32>
    %c0_16 = arith.constant 0 : index
    %c0_17 = arith.constant 0 : index
    %53 = vector.load %arg7[%c0_16, %c0_17] : memref<32x1xf32, #tpu.memory_space<vmem>>, vector<32x1xf32>
    %54 = vector.broadcast %53 : vector<32x1xf32> to vector<32x1024xf32>
    %55 = arith.addf %52, %54 : vector<32x1024xf32>
    %cst_18 = arith.constant 0.000000e+00 : f32
    %56 = vector.broadcast %cst_18 : f32 to vector<32x1024xf32>
    %57 = arith.cmpf ogt, %55, %56 : vector<32x1024xf32>
    %cst_19 = arith.constant 1.000000e-01 : f32
    %58 = vector.broadcast %cst_19 : f32 to vector<32x1024xf32>
    %59 = arith.mulf %58, %55 : vector<32x1024xf32>
    %60 = arith.select %57, %55, %59 : vector<32x1024xi1>, vector<32x1024xf32>
    %c0_20 = arith.constant 0 : index
    %c0_21 = arith.constant 0 : index
    %61 = vector.load %arg8[%c0_20, %c0_21] : memref<32x288xbf16, #tpu.memory_space<vmem>>, vector<32x288xbf16>
    %c17_i32_22 = arith.constant 17 : i32
    %62 = tpu.dynamic_rotate %60 by %c17_i32_22 dim 1 : vector<32x1024xf32>, i32 -> vector<32x1024xf32>
    %63 = arith.truncf %62 : vector<32x1024xf32> to vector<32x1024xbf16>
    %64 = vector.extract_strided_slice %8 {offsets = [0, 0], sizes = [1, 1024], strides = [1, 1]} : vector<9x1024xbf16> to vector<1x1024xbf16>
    %65 = vector.broadcast %64 : vector<1x1024xbf16> to vector<32x1024xbf16>
    %66 = arith.mulf %63, %65 : vector<32x1024xbf16>
    %c16_i32_23 = arith.constant 16 : i32
    %67 = tpu.dynamic_rotate %60 by %c16_i32_23 dim 1 : vector<32x1024xf32>, i32 -> vector<32x1024xf32>
    %68 = arith.truncf %67 : vector<32x1024xf32> to vector<32x1024xbf16>
    %69 = vector.extract_strided_slice %8 {offsets = [1, 0], sizes = [1, 1024], strides = [1, 1]} : vector<9x1024xbf16> to vector<1x1024xbf16>
    %70 = vector.broadcast %69 : vector<1x1024xbf16> to vector<32x1024xbf16>
    %71 = arith.mulf %68, %70 : vector<32x1024xbf16>
    %c15_i32_24 = arith.constant 15 : i32
    %72 = tpu.dynamic_rotate %60 by %c15_i32_24 dim 1 : vector<32x1024xf32>, i32 -> vector<32x1024xf32>
    %73 = arith.truncf %72 : vector<32x1024xf32> to vector<32x1024xbf16>
    %74 = vector.extract_strided_slice %8 {offsets = [2, 0], sizes = [1, 1024], strides = [1, 1]} : vector<9x1024xbf16> to vector<1x1024xbf16>
    %75 = vector.broadcast %74 : vector<1x1024xbf16> to vector<32x1024xbf16>
    %76 = arith.mulf %73, %75 : vector<32x1024xbf16>
    %c1_i32_25 = arith.constant 1 : i32
    %77 = tpu.dynamic_rotate %60 by %c1_i32_25 dim 1 : vector<32x1024xf32>, i32 -> vector<32x1024xf32>
    %78 = arith.truncf %77 : vector<32x1024xf32> to vector<32x1024xbf16>
    %79 = vector.extract_strided_slice %8 {offsets = [3, 0], sizes = [1, 1024], strides = [1, 1]} : vector<9x1024xbf16> to vector<1x1024xbf16>
    %80 = vector.broadcast %79 : vector<1x1024xbf16> to vector<32x1024xbf16>
    %81 = arith.mulf %78, %80 : vector<32x1024xbf16>
    %82 = arith.truncf %60 : vector<32x1024xf32> to vector<32x1024xbf16>
    %c1023_i32_26 = arith.constant 1023 : i32
    %83 = tpu.dynamic_rotate %60 by %c1023_i32_26 dim 1 : vector<32x1024xf32>, i32 -> vector<32x1024xf32>
    %84 = arith.truncf %83 : vector<32x1024xf32> to vector<32x1024xbf16>
    %85 = vector.extract_strided_slice %8 {offsets = [5, 0], sizes = [1, 1024], strides = [1, 1]} : vector<9x1024xbf16> to vector<1x1024xbf16>
    %86 = vector.broadcast %85 : vector<1x1024xbf16> to vector<32x1024xbf16>
    %87 = arith.mulf %84, %86 : vector<32x1024xbf16>
    %c1009_i32_27 = arith.constant 1009 : i32
    %88 = tpu.dynamic_rotate %60 by %c1009_i32_27 dim 1 : vector<32x1024xf32>, i32 -> vector<32x1024xf32>
    %89 = arith.truncf %88 : vector<32x1024xf32> to vector<32x1024xbf16>
    %90 = vector.extract_strided_slice %8 {offsets = [6, 0], sizes = [1, 1024], strides = [1, 1]} : vector<9x1024xbf16> to vector<1x1024xbf16>
    %91 = vector.broadcast %90 : vector<1x1024xbf16> to vector<32x1024xbf16>
    %92 = arith.mulf %89, %91 : vector<32x1024xbf16>
    %c1008_i32_28 = arith.constant 1008 : i32
    %93 = tpu.dynamic_rotate %60 by %c1008_i32_28 dim 1 : vector<32x1024xf32>, i32 -> vector<32x1024xf32>
    %94 = arith.truncf %93 : vector<32x1024xf32> to vector<32x1024xbf16>
    %95 = vector.extract_strided_slice %8 {offsets = [7, 0], sizes = [1, 1024], strides = [1, 1]} : vector<9x1024xbf16> to vector<1x1024xbf16>
    %96 = vector.broadcast %95 : vector<1x1024xbf16> to vector<32x1024xbf16>
    %97 = arith.mulf %94, %96 : vector<32x1024xbf16>
    %c1007_i32_29 = arith.constant 1007 : i32
    %98 = tpu.dynamic_rotate %60 by %c1007_i32_29 dim 1 : vector<32x1024xf32>, i32 -> vector<32x1024xf32>
    %99 = arith.truncf %98 : vector<32x1024xf32> to vector<32x1024xbf16>
    %100 = vector.extract_strided_slice %8 {offsets = [8, 0], sizes = [1, 1024], strides = [1, 1]} : vector<9x1024xbf16> to vector<1x1024xbf16>
    %101 = vector.broadcast %100 : vector<1x1024xbf16> to vector<32x1024xbf16>
    %102 = arith.mulf %99, %101 : vector<32x1024xbf16>
    %103 = tpu.concatenate %66, %71, %76, %81, %82, %87, %92, %97, %102 in 0 : vector<32x1024xbf16>, vector<32x1024xbf16>, vector<32x1024xbf16>, vector<32x1024xbf16>, vector<32x1024xbf16>, vector<32x1024xbf16>, vector<32x1024xbf16>, vector<32x1024xbf16>, vector<32x1024xbf16> -> vector<288x1024xbf16>
    %cst_30 = arith.constant dense<0.000000e+00> : vector<32x1024xf32>
    %104 = tpu.matmul %61, %103, %cst_30 {dimension_numbers = #tpu.dot_dimension_numbers<[1], [0], [0], [1], [0, 0, 1, 1], [], []>} : vector<32x288xbf16>, vector<288x1024xbf16>, vector<32x1024xf32> -> vector<32x1024xf32>
    %c0_31 = arith.constant 0 : index
    %c0_32 = arith.constant 0 : index
    %105 = vector.load %arg9[%c0_31, %c0_32] : memref<32x1xf32, #tpu.memory_space<vmem>>, vector<32x1xf32>
    %106 = vector.broadcast %105 : vector<32x1xf32> to vector<32x1024xf32>
    %107 = arith.addf %104, %106 : vector<32x1024xf32>
    %cst_33 = arith.constant 0.000000e+00 : f32
    %108 = vector.broadcast %cst_33 : f32 to vector<32x1024xf32>
    %109 = arith.cmpf ogt, %107, %108 : vector<32x1024xf32>
    %cst_34 = arith.constant 1.000000e-01 : f32
    %110 = vector.broadcast %cst_34 : f32 to vector<32x1024xf32>
    %111 = arith.mulf %110, %107 : vector<32x1024xf32>
    %112 = arith.select %109, %107, %111 : vector<32x1024xi1>, vector<32x1024xf32>
    %113 = vector.extract_strided_slice %7 {offsets = [0, 0, 0], sizes = [1, 5, 1024], strides = [1, 1, 1]} : vector<2x5x1024xf32> to vector<1x5x1024xf32>
    %114 = vector.shape_cast %113 : vector<1x5x1024xf32> to vector<5x1024xf32>
    %cst_35 = arith.constant 1.000000e-01 : f32
    %115 = vector.broadcast %cst_35 : f32 to vector<5x1024xf32>
    %116 = arith.mulf %114, %115 : vector<5x1024xf32>
    %117 = math.tanh %116 : vector<5x1024xf32>
    %118 = vector.extract_strided_slice %7 {offsets = [1, 0, 0], sizes = [1, 5, 1024], strides = [1, 1, 1]} : vector<2x5x1024xf32> to vector<1x5x1024xf32>
    %119 = vector.shape_cast %118 : vector<1x5x1024xf32> to vector<5x1024xf32>
    %cst_36 = arith.constant 1.000000e-01 : f32
    %120 = vector.broadcast %cst_36 : f32 to vector<5x1024xf32>
    %121 = arith.mulf %119, %120 : vector<5x1024xf32>
    %122 = math.tanh %121 : vector<5x1024xf32>
    %123 = arith.mulf %117, %3 : vector<5x1024xf32>
    %cst_37 = arith.constant dense<0.000000e+00> : vector<1024xf32>
    %124 = vector.multi_reduction <add>, %123, %cst_37 [0] : vector<5x1024xf32> to vector<1024xf32>
    %125 = vector.shape_cast %124 : vector<1024xf32> to vector<1x1024xf32>
    %126 = arith.mulf %122, %3 : vector<5x1024xf32>
    %cst_38 = arith.constant dense<0.000000e+00> : vector<1024xf32>
    %127 = vector.multi_reduction <add>, %126, %cst_38 [0] : vector<5x1024xf32> to vector<1024xf32>
    %128 = vector.shape_cast %127 : vector<1024xf32> to vector<1x1024xf32>
    %129 = tpu.concatenate %125, %128 in 0 : vector<1x1024xf32>, vector<1x1024xf32> -> vector<2x1024xf32>
    %cst_39 = arith.constant 1.000000e+01 : f32
    %130 = vector.broadcast %cst_39 : f32 to vector<2x1024xf32>
    %131 = arith.mulf %129, %130 : vector<2x1024xf32>
    %c0_40 = arith.constant 0 : index
    %c0_41 = arith.constant 0 : index
    %c0_42 = arith.constant 0 : index
    %132 = vector.load %arg15[%c0_40, %c0_41, %c0_42] : memref<1x2x1024xf32, #tpu.memory_space<vmem>>, vector<1x2x1024xf32>
    %133 = vector.shape_cast %132 : vector<1x2x1024xf32> to vector<2x1024xf32>
    %134 = vector.shape_cast %131 : vector<2x1024xf32> to vector<1x2x1024xf32>
    tpu.vector_store %arg15[%c0_40, %c0_41, %c0_42], %134 {strides = array<i32>} : memref<1x2x1024xf32, #tpu.memory_space<vmem>>, vector<1x2x1024xf32>,
    %135 = arith.truncf %112 : vector<32x1024xf32> to vector<32x1024xbf16>
    %cst_43 = arith.constant 1.000000e+00 : bf16
    %136 = vector.broadcast %cst_43 : bf16 to vector<1x1024xbf16>
    %137 = tpu.concatenate %135, %136 in 0 : vector<32x1024xbf16>, vector<1x1024xbf16> -> vector<33x1024xbf16>
    %138 = arith.truncf %1 : vector<20x1024xf32> to vector<20x1024xbf16>
    %cst_44 = arith.constant dense<0.000000e+00> : vector<33x20xf32>
    %139 = tpu.matmul %137, %138, %cst_44 {dimension_numbers = #tpu.dot_dimension_numbers<[1], [1], [0], [0], [0, 0, 1, 0], [], []>} : vector<33x1024xbf16>, vector<20x1024xbf16>, vector<33x20xf32> -> vector<33x20xf32>
    %140 = vector.extract_strided_slice %139 {offsets = [32, 0], sizes = [1, 20], strides = [1, 1]} : vector<33x20xf32> to vector<1x20xf32>
    %141 = tpu.reciprocal %140 {approx = true} : vector<1x20xf32> -> vector<1x20xf32>
    %142 = vector.extract_strided_slice %139 {offsets = [0, 0], sizes = [32, 20], strides = [1, 1]} : vector<33x20xf32> to vector<32x20xf32>
    %143 = vector.broadcast %141 : vector<1x20xf32> to vector<32x20xf32>
    %144 = arith.mulf %142, %143 : vector<32x20xf32>
    %c0_45 = arith.constant 0 : index
    %c0_46 = arith.constant 0 : index
    %145 = vector.load %arg10[%c0_45, %c0_46] : memref<32x32xbf16, #tpu.memory_space<vmem>>, vector<32x32xbf16>
    %146 = arith.truncf %144 : vector<32x20xf32> to vector<32x20xbf16>
    %cst_47 = arith.constant dense<0.000000e+00> : vector<32x20xf32>
    %147 = tpu.matmul %145, %146, %cst_47 {dimension_numbers = #tpu.dot_dimension_numbers<[1], [0], [0], [1], [0, 0, 1, 1], [], []>} : vector<32x32xbf16>, vector<32x20xbf16>, vector<32x20xf32> -> vector<32x20xf32>
    %c0_48 = arith.constant 0 : index
    %c0_49 = arith.constant 0 : index
    %148 = vector.load %arg11[%c0_48, %c0_49] : memref<32x1xf32, #tpu.memory_space<vmem>>, vector<32x1xf32>
    %149 = vector.broadcast %148 : vector<32x1xf32> to vector<32x20xf32>
    %150 = arith.addf %147, %149 : vector<32x20xf32>
    %cst_50 = arith.constant 0.000000e+00 : f32
    %151 = vector.broadcast %cst_50 : f32 to vector<32x20xf32>
    %152 = arith.cmpf ogt, %150, %151 : vector<32x20xf32>
    %cst_51 = arith.constant 1.000000e-01 : f32
    %153 = vector.broadcast %cst_51 : f32 to vector<32x20xf32>
    %154 = arith.mulf %153, %150 : vector<32x20xf32>
    %155 = arith.select %152, %150, %154 : vector<32x20xi1>, vector<32x20xf32>
    %c0_52 = arith.constant 0 : index
    %c0_53 = arith.constant 0 : index
    %156 = vector.load %arg12[%c0_52, %c0_53] : memref<2x32xbf16, #tpu.memory_space<vmem>>, vector<2x32xbf16>
    %157 = arith.truncf %155 : vector<32x20xf32> to vector<32x20xbf16>
    %cst_54 = arith.constant dense<0.000000e+00> : vector<2x20xf32>
    %158 = tpu.matmul %156, %157, %cst_54 {dimension_numbers = #tpu.dot_dimension_numbers<[1], [0], [0], [1], [0, 0, 1, 1], [], []>} : vector<2x32xbf16>, vector<32x20xbf16>, vector<2x20xf32> -> vector<2x20xf32>
    %c0_55 = arith.constant 0 : index
    %c0_56 = arith.constant 0 : index
    %159 = vector.load %arg13[%c0_55, %c0_56] : memref<2x1xf32, #tpu.memory_space<vmem>>, vector<2x1xf32>
    %160 = vector.broadcast %159 : vector<2x1xf32> to vector<2x20xf32>
    %161 = arith.addf %158, %160 : vector<2x20xf32>
    %162 = vector.extract_strided_slice %161 {offsets = [0, 0], sizes = [2, 1], strides = [1, 1]} : vector<2x20xf32> to vector<2x1xf32>
    %163 = vector.extract_strided_slice %1 {offsets = [0, 0], sizes = [1, 1024], strides = [1, 1]} : vector<20x1024xf32> to vector<1x1024xf32>
    %164 = vector.broadcast %162 : vector<2x1xf32> to vector<2x1024xf32>
    %165 = vector.broadcast %163 : vector<1x1024xf32> to vector<2x1024xf32>
    %166 = arith.mulf %164, %165 : vector<2x1024xf32>
    %167 = vector.extract_strided_slice %161 {offsets = [0, 1], sizes = [2, 1], strides = [1, 1]} : vector<2x20xf32> to vector<2x1xf32>
    %168 = vector.extract_strided_slice %1 {offsets = [1, 0], sizes = [1, 1024], strides = [1, 1]} : vector<20x1024xf32> to vector<1x1024xf32>
    %169 = vector.broadcast %167 : vector<2x1xf32> to vector<2x1024xf32>
    %170 = vector.broadcast %168 : vector<1x1024xf32> to vector<2x1024xf32>
    %171 = arith.mulf %169, %170 : vector<2x1024xf32>
    %172 = arith.addf %166, %171 : vector<2x1024xf32>
    %173 = vector.extract_strided_slice %161 {offsets = [0, 2], sizes = [2, 1], strides = [1, 1]} : vector<2x20xf32> to vector<2x1xf32>
    %174 = vector.extract_strided_slice %1 {offsets = [2, 0], sizes = [1, 1024], strides = [1, 1]} : vector<20x1024xf32> to vector<1x1024xf32>
    %175 = vector.broadcast %173 : vector<2x1xf32> to vector<2x1024xf32>
    %176 = vector.broadcast %174 : vector<1x1024xf32> to vector<2x1024xf32>
    %177 = arith.mulf %175, %176 : vector<2x1024xf32>
    %178 = arith.addf %172, %177 : vector<2x1024xf32>
    %179 = vector.extract_strided_slice %161 {offsets = [0, 3], sizes = [2, 1], strides = [1, 1]} : vector<2x20xf32> to vector<2x1xf32>
    %180 = vector.extract_strided_slice %1 {offsets = [3, 0], sizes = [1, 1024], strides = [1, 1]} : vector<20x1024xf32> to vector<1x1024xf32>
    %181 = vector.broadcast %179 : vector<2x1xf32> to vector<2x1024xf32>
    %182 = vector.broadcast %180 : vector<1x1024xf32> to vector<2x1024xf32>
    %183 = arith.mulf %181, %182 : vector<2x1024xf32>
    %184 = arith.addf %178, %183 : vector<2x1024xf32>
    %185 = vector.extract_strided_slice %161 {offsets = [0, 4], sizes = [2, 1], strides = [1, 1]} : vector<2x20xf32> to vector<2x1xf32>
    %186 = vector.extract_strided_slice %1 {offsets = [4, 0], sizes = [1, 1024], strides = [1, 1]} : vector<20x1024xf32> to vector<1x1024xf32>
    %187 = vector.broadcast %185 : vector<2x1xf32> to vector<2x1024xf32>
    %188 = vector.broadcast %186 : vector<1x1024xf32> to vector<2x1024xf32>
    %189 = arith.mulf %187, %188 : vector<2x1024xf32>
    %190 = arith.addf %184, %189 : vector<2x1024xf32>
    %191 = vector.extract_strided_slice %161 {offsets = [0, 5], sizes = [2, 1], strides = [1, 1]} : vector<2x20xf32> to vector<2x1xf32>
    %192 = vector.extract_strided_slice %1 {offsets = [5, 0], sizes = [1, 1024], strides = [1, 1]} : vector<20x1024xf32> to vector<1x1024xf32>
    %193 = vector.broadcast %191 : vector<2x1xf32> to vector<2x1024xf32>
    %194 = vector.broadcast %192 : vector<1x1024xf32> to vector<2x1024xf32>
    %195 = arith.mulf %193, %194 : vector<2x1024xf32>
    %196 = arith.addf %190, %195 : vector<2x1024xf32>
    %197 = vector.extract_strided_slice %161 {offsets = [0, 6], sizes = [2, 1], strides = [1, 1]} : vector<2x20xf32> to vector<2x1xf32>
    %198 = vector.extract_strided_slice %1 {offsets = [6, 0], sizes = [1, 1024], strides = [1, 1]} : vector<20x1024xf32> to vector<1x1024xf32>
    %199 = vector.broadcast %197 : vector<2x1xf32> to vector<2x1024xf32>
    %200 = vector.broadcast %198 : vector<1x1024xf32> to vector<2x1024xf32>
    %201 = arith.mulf %199, %200 : vector<2x1024xf32>
    %202 = arith.addf %196, %201 : vector<2x1024xf32>
    %203 = vector.extract_strided_slice %161 {offsets = [0, 7], sizes = [2, 1], strides = [1, 1]} : vector<2x20xf32> to vector<2x1xf32>
    %204 = vector.extract_strided_slice %1 {offsets = [7, 0], sizes = [1, 1024], strides = [1, 1]} : vector<20x1024xf32> to vector<1x1024xf32>
    %205 = vector.broadcast %203 : vector<2x1xf32> to vector<2x1024xf32>
    %206 = vector.broadcast %204 : vector<1x1024xf32> to vector<2x1024xf32>
    %207 = arith.mulf %205, %206 : vector<2x1024xf32>
    %208 = arith.addf %202, %207 : vector<2x1024xf32>
    %209 = vector.extract_strided_slice %161 {offsets = [0, 8], sizes = [2, 1], strides = [1, 1]} : vector<2x20xf32> to vector<2x1xf32>
    %210 = vector.extract_strided_slice %1 {offsets = [8, 0], sizes = [1, 1024], strides = [1, 1]} : vector<20x1024xf32> to vector<1x1024xf32>
    %211 = vector.broadcast %209 : vector<2x1xf32> to vector<2x1024xf32>
    %212 = vector.broadcast %210 : vector<1x1024xf32> to vector<2x1024xf32>
    %213 = arith.mulf %211, %212 : vector<2x1024xf32>
    %214 = arith.addf %208, %213 : vector<2x1024xf32>
    %215 = vector.extract_strided_slice %161 {offsets = [0, 9], sizes = [2, 1], strides = [1, 1]} : vector<2x20xf32> to vector<2x1xf32>
    %216 = vector.extract_strided_slice %1 {offsets = [9, 0], sizes = [1, 1024], strides = [1, 1]} : vector<20x1024xf32> to vector<1x1024xf32>
    %217 = vector.broadcast %215 : vector<2x1xf32> to vector<2x1024xf32>
    %218 = vector.broadcast %216 : vector<1x1024xf32> to vector<2x1024xf32>
    %219 = arith.mulf %217, %218 : vector<2x1024xf32>
    %220 = arith.addf %214, %219 : vector<2x1024xf32>
    %221 = vector.extract_strided_slice %161 {offsets = [0, 10], sizes = [2, 1], strides = [1, 1]} : vector<2x20xf32> to vector<2x1xf32>
    %222 = vector.extract_strided_slice %1 {offsets = [10, 0], sizes = [1, 1024], strides = [1, 1]} : vector<20x1024xf32> to vector<1x1024xf32>
    %223 = vector.broadcast %221 : vector<2x1xf32> to vector<2x1024xf32>
    %224 = vector.broadcast %222 : vector<1x1024xf32> to vector<2x1024xf32>
    %225 = arith.mulf %223, %224 : vector<2x1024xf32>
    %226 = arith.addf %220, %225 : vector<2x1024xf32>
    %227 = vector.extract_strided_slice %161 {offsets = [0, 11], sizes = [2, 1], strides = [1, 1]} : vector<2x20xf32> to vector<2x1xf32>
    %228 = vector.extract_strided_slice %1 {offsets = [11, 0], sizes = [1, 1024], strides = [1, 1]} : vector<20x1024xf32> to vector<1x1024xf32>
    %229 = vector.broadcast %227 : vector<2x1xf32> to vector<2x1024xf32>
    %230 = vector.broadcast %228 : vector<1x1024xf32> to vector<2x1024xf32>
    %231 = arith.mulf %229, %230 : vector<2x1024xf32>
    %232 = arith.addf %226, %231 : vector<2x1024xf32>
    %233 = vector.extract_strided_slice %161 {offsets = [0, 12], sizes = [2, 1], strides = [1, 1]} : vector<2x20xf32> to vector<2x1xf32>
    %234 = vector.extract_strided_slice %1 {offsets = [12, 0], sizes = [1, 1024], strides = [1, 1]} : vector<20x1024xf32> to vector<1x1024xf32>
    %235 = vector.broadcast %233 : vector<2x1xf32> to vector<2x1024xf32>
    %236 = vector.broadcast %234 : vector<1x1024xf32> to vector<2x1024xf32>
    %237 = arith.mulf %235, %236 : vector<2x1024xf32>
    %238 = arith.addf %232, %237 : vector<2x1024xf32>
    %239 = vector.extract_strided_slice %161 {offsets = [0, 13], sizes = [2, 1], strides = [1, 1]} : vector<2x20xf32> to vector<2x1xf32>
    %240 = vector.extract_strided_slice %1 {offsets = [13, 0], sizes = [1, 1024], strides = [1, 1]} : vector<20x1024xf32> to vector<1x1024xf32>
    %241 = vector.broadcast %239 : vector<2x1xf32> to vector<2x1024xf32>
    %242 = vector.broadcast %240 : vector<1x1024xf32> to vector<2x1024xf32>
    %243 = arith.mulf %241, %242 : vector<2x1024xf32>
    %244 = arith.addf %238, %243 : vector<2x1024xf32>
    %245 = vector.extract_strided_slice %161 {offsets = [0, 14], sizes = [2, 1], strides = [1, 1]} : vector<2x20xf32> to vector<2x1xf32>
    %246 = vector.extract_strided_slice %1 {offsets = [14, 0], sizes = [1, 1024], strides = [1, 1]} : vector<20x1024xf32> to vector<1x1024xf32>
    %247 = vector.broadcast %245 : vector<2x1xf32> to vector<2x1024xf32>
    %248 = vector.broadcast %246 : vector<1x1024xf32> to vector<2x1024xf32>
    %249 = arith.mulf %247, %248 : vector<2x1024xf32>
    %250 = arith.addf %244, %249 : vector<2x1024xf32>
    %251 = vector.extract_strided_slice %161 {offsets = [0, 15], sizes = [2, 1], strides = [1, 1]} : vector<2x20xf32> to vector<2x1xf32>
    %252 = vector.extract_strided_slice %1 {offsets = [15, 0], sizes = [1, 1024], strides = [1, 1]} : vector<20x1024xf32> to vector<1x1024xf32>
    %253 = vector.broadcast %251 : vector<2x1xf32> to vector<2x1024xf32>
    %254 = vector.broadcast %252 : vector<1x1024xf32> to vector<2x1024xf32>
    %255 = arith.mulf %253, %254 : vector<2x1024xf32>
    %256 = arith.addf %250, %255 : vector<2x1024xf32>
    %257 = vector.extract_strided_slice %161 {offsets = [0, 16], sizes = [2, 1], strides = [1, 1]} : vector<2x20xf32> to vector<2x1xf32>
    %258 = vector.extract_strided_slice %1 {offsets = [16, 0], sizes = [1, 1024], strides = [1, 1]} : vector<20x1024xf32> to vector<1x1024xf32>
    %259 = vector.broadcast %257 : vector<2x1xf32> to vector<2x1024xf32>
    %260 = vector.broadcast %258 : vector<1x1024xf32> to vector<2x1024xf32>
    %261 = arith.mulf %259, %260 : vector<2x1024xf32>
    %262 = arith.addf %256, %261 : vector<2x1024xf32>
    %263 = vector.extract_strided_slice %161 {offsets = [0, 17], sizes = [2, 1], strides = [1, 1]} : vector<2x20xf32> to vector<2x1xf32>
    %264 = vector.extract_strided_slice %1 {offsets = [17, 0], sizes = [1, 1024], strides = [1, 1]} : vector<20x1024xf32> to vector<1x1024xf32>
    %265 = vector.broadcast %263 : vector<2x1xf32> to vector<2x1024xf32>
    %266 = vector.broadcast %264 : vector<1x1024xf32> to vector<2x1024xf32>
    %267 = arith.mulf %265, %266 : vector<2x1024xf32>
    %268 = arith.addf %262, %267 : vector<2x1024xf32>
    %269 = vector.extract_strided_slice %161 {offsets = [0, 18], sizes = [2, 1], strides = [1, 1]} : vector<2x20xf32> to vector<2x1xf32>
    %270 = vector.extract_strided_slice %1 {offsets = [18, 0], sizes = [1, 1024], strides = [1, 1]} : vector<20x1024xf32> to vector<1x1024xf32>
    %271 = vector.broadcast %269 : vector<2x1xf32> to vector<2x1024xf32>
    %272 = vector.broadcast %270 : vector<1x1024xf32> to vector<2x1024xf32>
    %273 = arith.mulf %271, %272 : vector<2x1024xf32>
    %274 = arith.addf %268, %273 : vector<2x1024xf32>
    %275 = vector.extract_strided_slice %161 {offsets = [0, 19], sizes = [2, 1], strides = [1, 1]} : vector<2x20xf32> to vector<2x1xf32>
    %276 = vector.extract_strided_slice %1 {offsets = [19, 0], sizes = [1, 1024], strides = [1, 1]} : vector<20x1024xf32> to vector<1x1024xf32>
    %277 = vector.broadcast %275 : vector<2x1xf32> to vector<2x1024xf32>
    %278 = vector.broadcast %276 : vector<1x1024xf32> to vector<2x1024xf32>
    %279 = arith.mulf %277, %278 : vector<2x1024xf32>
    %280 = arith.addf %274, %279 : vector<2x1024xf32>
    %c0_57 = arith.constant 0 : index
    %c0_58 = arith.constant 0 : index
    %c0_59 = arith.constant 0 : index
    %281 = vector.load %arg14[%c0_57, %c0_58, %c0_59] : memref<1x2x1024xf32, #tpu.memory_space<vmem>>, vector<1x2x1024xf32>
    %282 = vector.shape_cast %281 : vector<1x2x1024xf32> to vector<2x1024xf32>
    %283 = vector.shape_cast %280 : vector<2x1024xf32> to vector<1x2x1024xf32>
    tpu.vector_store %arg14[%c0_57, %c0_58, %c0_59], %283 {strides = array<i32>} : memref<1x2x1024xf32, #tpu.memory_space<vmem>>, vector<1x2x1024xf32>,
    return
  }
  func.func @transform_0(%arg0: i32) -> (i32, i32, i32) {
    %c0_i32 = arith.constant 0 : i32
    %c0_i32_0 = arith.constant 0 : i32
    %c0_i32_1 = arith.constant 0 : i32
    return %arg0, %c0_i32, %c0_i32_0 : i32, i32, i32
  }
  func.func @transform_1(%arg0: i32) -> (i32, i32, i32) {
    %c0_i32 = arith.constant 0 : i32
    %c0_i32_0 = arith.constant 0 : i32
    %c0_i32_1 = arith.constant 0 : i32
    return %arg0, %c0_i32, %c0_i32_0 : i32, i32, i32
  }
  func.func @transform_2(%arg0: i32) -> (i32, i32, i32) {
    %c0_i32 = arith.constant 0 : i32
    %c0_i32_0 = arith.constant 0 : i32
    %c0_i32_1 = arith.constant 0 : i32
    return %arg0, %c0_i32, %c0_i32_0 : i32, i32, i32
  }
  func.func @transform_3(%arg0: i32) -> (i32, i32, i32, i32) {
    %c0_i32 = arith.constant 0 : i32
    %c0_i32_0 = arith.constant 0 : i32
    %c0_i32_1 = arith.constant 0 : i32
    %c0_i32_2 = arith.constant 0 : i32
    return %arg0, %c0_i32, %c0_i32_0, %c0_i32_1 : i32, i32, i32, i32
  }
  func.func @transform_4(%arg0: i32) -> (i32, i32) {
    %c0_i32 = arith.constant 0 : i32
    %c0_i32_0 = arith.constant 0 : i32
    %c0_i32_1 = arith.constant 0 : i32
    return %c0_i32, %c0_i32_0 : i32, i32
  }
  func.func @transform_5(%arg0: i32) -> (i32, i32) {
    %c0_i32 = arith.constant 0 : i32
    %c0_i32_0 = arith.constant 0 : i32
    %c0_i32_1 = arith.constant 0 : i32
    return %c0_i32, %c0_i32_0 : i32, i32
  }
  func.func @transform_6(%arg0: i32) -> (i32, i32) {
    %c0_i32 = arith.constant 0 : i32
    %c0_i32_0 = arith.constant 0 : i32
    %c0_i32_1 = arith.constant 0 : i32
    return %c0_i32, %c0_i32_0 : i32, i32
  }
  func.func @transform_7(%arg0: i32) -> (i32, i32) {
    %c0_i32 = arith.constant 0 : i32
    %c0_i32_0 = arith.constant 0 : i32
    %c0_i32_1 = arith.constant 0 : i32
    return %c0_i32, %c0_i32_0 : i32, i32
  }
  func.func @transform_8(%arg0: i32) -> (i32, i32) {
    %c0_i32 = arith.constant 0 : i32
    %c0_i32_0 = arith.constant 0 : i32
    %c0_i32_1 = arith.constant 0 : i32
    return %c0_i32, %c0_i32_0 : i32, i32
  }
  func.func @transform_9(%arg0: i32) -> (i32, i32) {
    %c0_i32 = arith.constant 0 : i32
    %c0_i32_0 = arith.constant 0 : i32
    %c0_i32_1 = arith.constant 0 : i32
    return %c0_i32, %c0_i32_0 : i32, i32
  }
  func.func @transform_10(%arg0: i32) -> (i32, i32) {
    %c0_i32 = arith.constant 0 : i32
    %c0_i32_0 = arith.constant 0 : i32
    %c0_i32_1 = arith.constant 0 : i32
    return %c0_i32, %c0_i32_0 : i32, i32
  }
  func.func @transform_11(%arg0: i32) -> (i32, i32) {
    %c0_i32 = arith.constant 0 : i32
    %c0_i32_0 = arith.constant 0 : i32
    %c0_i32_1 = arith.constant 0 : i32
    return %c0_i32, %c0_i32_0 : i32, i32
  }
  func.func @transform_12(%arg0: i32) -> (i32, i32) {
    %c0_i32 = arith.constant 0 : i32
    %c0_i32_0 = arith.constant 0 : i32
    %c0_i32_1 = arith.constant 0 : i32
    return %c0_i32, %c0_i32_0 : i32, i32
  }
  func.func @transform_13(%arg0: i32) -> (i32, i32, i32) {
    %c0_i32 = arith.constant 0 : i32
    %c0_i32_0 = arith.constant 0 : i32
    %c0_i32_1 = arith.constant 0 : i32
    return %arg0, %c0_i32, %c0_i32_0 : i32, i32, i32
  }
  func.func @transform_14(%arg0: i32) -> (i32, i32, i32) {
    %c0_i32 = arith.constant 0 : i32
    %c0_i32_0 = arith.constant 0 : i32
    %c0_i32_1 = arith.constant 0 : i32
    return %arg0, %c0_i32, %c0_i32_0 : i32, i32, i32
  }
}

</mosaic_0001>

<bundles_post_ra>
// kernel: forward.1
= control target key start
LH: loop header
LB: loop body
LE: loop exit
PB: predicated region body
PF: predicated region fallthrough
CT: control target
= control target key end

     0   :  { %v116_v0 = vlaneseq  ;;  %v5937_v2 = vmov 1983009808   ;;  %s5939_s17 = smov 16   ;;  %s5940_s18 = smov 17   ;;  %vm1048_vm0 = vcmask 1044480   ;;  %vm972_vm1 = vcmask 1040384   ;;  %s10828_s2 = inlined_call_operand.vmem [shape: f32[1,2,1024], index: 2, kind: input, shape index: {}]   ;;  %s10829_s4 = inlined_call_operand.vmem [shape: bf16[9,1024], index: 4, kind: input, shape index: {}]   ;;  %s10830_s3 = inlined_call_operand.vmem [shape: f32[1,2,5,1024], index: 3, kind: input, shape index: {}]   ;;  %s10831_s1 = inlined_call_operand.vmem [shape: f32[1,5,1024], index: 1, kind: input, shape index: {}]   ;;  %s10832_s5 = inlined_call_operand.vmem [shape: bf16[32,18], index: 5, kind: input, shape index: {}]   ;;  %s10833_s14 = inlined_call_operand.vmem [shape: f32[1,2,1024], index: 14, kind: output, shape index: {1}]   ;;  %s10834_s6 = inlined_call_operand.vmem [shape: f32[32,1], index: 6, kind: input, shape index: {}]   ;;  %s10835_s7 = inlined_call_operand.vmem [shape: bf16[32,288], index: 7, kind: input, shape index: {}]   ;;  %s10836_s8 = inlined_call_operand.vmem [shape: f32[32,1], index: 8, kind: input, shape index: {}]   ;;  %s10837_s10 = inlined_call_operand.vmem [shape: f32[32,1], index: 10, kind: input, shape index: {}]   ;;  %s10838_s12 = inlined_call_operand.vmem [shape: f32[2,1], index: 12, kind: input, shape index: {}]   ;;  %s10839_s0 = inlined_call_operand.vmem [shape: f32[1,20,1024], index: 0, kind: input, shape index: {}]   ;;  %s10840_s9 = inlined_call_operand.vmem [shape: bf16[32,32], index: 9, kind: input, shape index: {}]   ;;  %s10841_s11 = inlined_call_operand.vmem [shape: bf16[2,32], index: 11, kind: input, shape index: {}]   ;;  %s10842_s13 = inlined_call_operand.vmem [shape: f32[1,2,1024], index: 13, kind: output, shape index: {0}]  }
   0x1   :  { %v81_v1 = vld [vmem:[%s10828_s2 + $0x8] sm:$0xff]  ;;  %v114_v3 = vunpack.c.l.s4 %v5937_v2  ;;  %v80_v7 = vld [vmem:[%s10828_s2] sm:$0xff]  ;;  %s10843_s2 = smov 15   ;;  %s5941_s19 = smov 1   ;;  %v84_v31 = vld [vmem:[%s10830_s3 + $0x10] sm:$0x1f] }
   0x2   :  { %v6047_v4 = vshrl.u32 %v116_v0, 7  ;;  %v129_v6 = vcombine.high %v81_v1, %v81_v1  ;;  %v112_v9 = vcombine.high %v80_v7, %v80_v7  ;;  %s5942_s20 = smov 127   ;;  %s5943_s21 = smov 113   ;;  %v98_v22 = vld [vmem:[%s10829_s4] sm:$0xff]  ;;  %v6115_v26 = vand.u32 127, %v116_v0  ;;  %v6120_v27 = vld [vmem:[%s10829_s4 + $0x8] sm:$0xff] }
   0x3   :  { %v115_v5 = vunpack.c.0.s8 %v114_v3  ;;  %s5944_s22 = smov 112   ;;  %s5945_s23 = smov 111   ;;  %v82_v23 = vld [vmem:[%s10830_s3] sm:$0x1f]  ;;  %v83_v28 = vld [vmem:[%s10830_s3 + $0x8] sm:$0x1f]  ;;  %v4843_v29 = vcombine.high %v98_v22, %v98_v22  ;;  %v6125_v30 = vcombine.low %v98_v22, %v98_v22  ;;  %v6163_v43 = vcombine.low %v6120_v27, %v6120_v27 }
   0x4   :  { %11151 = vst [vmem:[#allocation2_spill] sm:$0xff] %v6047_v4  ;;  %v3109_v25 = vmul.f32 0.1, %v82_v23  ;;  %v85_v32 = vld [vmem:[%s10830_s3 + $0x18] sm:$0x1f]  ;;  %v6137_v34 = vsub.s32 0, %v6047_v4 }
   0x5   :  { %v6053_v8 = vsub.s32 %v115_v5, %v6047_v4  ;;  %v86_v33 = vld [vmem:[%s10830_s3 + $0x20] sm:$0x1f]  ;;  %v6140_v35 = vsub.s32 1, %v6047_v4  ;;  %v6143_v36 = vsub.s32 2, %v6047_v4  ;;  %v6146_v37 = vsub.s32 3, %v6047_v4  ;;  %s11158_s26 = smov 15  }
   0x6   :  { %5891 = vtanh.f32 %v3109_v25  ;;  %11153 = vst [vmem:[#allocation4_spill] sm:$0xff] %v6137_v34  ;;  %v87_v38 = vld [vmem:[%s10830_s3 + $0x28] sm:$0x1f]  ;;  %v88_v40 = vld [vmem:[%s10830_s3 + $0x30] sm:$0x1f]  ;;  %v6165_v47 = vpack.i.b16 %v4843_v29, %v4843_v29  ;;  %v313_v48 = vshrl.u32 %v4843_v29, 16 }
   0x7   :  { %11152 = vst [vmem:[#allocation3_spill] sm:$0xff] %v6053_v8  ;;  %v6056_v10 = vrot.slane %v80_v7, %v6053_v8  ;;  %v6059_v11 = vrot.slane %v129_v6, %v6053_v8  ;;  %v6066_v13 = vrot.slane %v112_v9, %v6053_v8  ;;  %v6113_v24 = vrot.slane %v81_v1, %v6053_v8  ;;  %v89_v41 = vld [vmem:[%s10830_s3 + $0x38] sm:$0x1f]  ;;  %v90_v49 = vld [vmem:[%s10830_s3 + $0x40] sm:$0x1f] }
   0x8   :  { %11154 = vst [vmem:[#allocation5_spill] sm:$0xff] %v6140_v35  ;;  %11155 = vst [vmem:[#allocation6_spill] sm:$0xff] %v6143_v36  ;;  %v3110_v42 = vmul.f32 0.1, %v83_v28  ;;  %v3111_v44 = vmul.f32 0.1, %v84_v31  ;;  %v6199_v63 = vrot.slane %v6165_v47, %v6140_v35  ;;  %v6210_v7 = vpack.i.b16 %v313_v48, %v313_v48 }
   0x9   :  { %v6063_v12 = vcombine.high %v6056_v10, %v6056_v10  ;;  %v6070_v14 = vcombine.high %v6059_v11, %v6059_v11  ;;  %v6084_v17 = vcombine.high %v6066_v13, %v6066_v13  ;;  %11156 = vst [vmem:[#allocation7_spill] sm:$0xff] %v6146_v37  ;;  %v3112_v45 = vmul.f32 0.1, %v85_v32  ;;  %v6182_v55 = vld [vmem:[%s10831_s1] sm:$0x1f] }
   0xa   :  { %v3113_v46 = vmul.f32 0.1, %v86_v33  ;;  %v3114_v50 = vmul.f32 0.1, %v87_v38  ;;  %5893 = vtanh.f32 %v3110_v42  ;;  %v5154_v51 = vpack.i.bf16 %v6059_v11, %v6113_v24  ;;  %v91_v56 = vld [vmem:[%s10830_s3 + $0x48] sm:$0x1f] }
   0xb   :  { %v5049_v15 = vpack.i.bf16 %v6063_v12, %v6056_v10  ;;  %v5044_v16 = vpack.i.bf16 %v6066_v13, %v6070_v14  ;;  %v5079_v18 = vpack.i.bf16 %v6066_v13, %v6063_v12  ;;  %v5084_v19 = vpack.i.bf16 %v6084_v17, %v6056_v10  ;;  %v92_v57 = vld [vmem:[%s10830_s3 + $0x50] sm:$0x1f]  ;;  %v93_v59 = vld [vmem:[%s10830_s3 + $0x58] sm:$0x1f]  ;;  %v94_v60 = vld [vmem:[%s10830_s3 + $0x60] sm:$0x1f] }
   0xc   :  { %v5114_v20 = vpack.i.bf16 %v6084_v17, %v6066_v13  ;;  %v5119_v21 = vpack.i.bf16 %v6059_v11, %v6084_v17  ;;  %v5139_v39 = vpack.i.bf16 %v6070_v14, %v6113_v24  ;;  %v306_v52 = vshrl.u32 %v6125_v30, 16  ;;  %11157 = vst [vmem:[#allocation8_spill] sm:$0xff] %v6199_v63  ;;  %v95_v5 = vld [vmem:[%s10830_s3 + $0x68] sm:$0x1f]  ;;  %v96_v9 = vld [vmem:[%s10830_s3 + $0x70] sm:$0x1f] }
   0xd   :  { %5050 = vrot.lane.b32.xlu1 %v5049_v15, %s10843_s2  ;;  %5040 = vrot.lane.b32.xlu0 %v5049_v15, %s5939_s17  ;;  %v3115_v53 = vmul.f32 0.1, %v88_v40  ;;  %5895 = vtanh.f32 %v3111_v44  ;;  %v6177_v54 = vcombine.high %v6113_v24, %v6113_v24  ;;  %v3116_v58 = vmul.f32 0.1, %v89_v41  ;;  %v6233_v22 = vld [vmem:[%s10831_s1 + $0x10] sm:$0x1f] }
   0xe   :  { %5897 = vtanh.f32 %v3112_v45  ;;  %v3125_v61 = vmul.f32 0.1, %v90_v49  ;;  %v3126_v0 = vmul.f32 0.1, %v91_v56  ;;  %v10845_v1 = vmov 0  }
   0xf   :  { %5899 = vtanh.f32 %v3113_v46  ;;  %1204 = vmatprep.mubr.bf16.mxu1 %v10845_v1  ;;  %1310 = vmatprep.mubr.bf16.mxu0 %v10845_v1  ;;  %v5159_v3 = vpack.i.bf16 %v6113_v24, %v6177_v54  ;;  %v3127_v6 = vmul.f32 0.1, %v92_v57  ;;  %v3130_v23 = vmul.f32 0.1, %v95_v5  ;;  %v6241_v29 = vld [vmem:[%s10831_s1 + $0x18] sm:$0x1f] }
  0x10   :  { %5901 = vtanh.f32 %v3114_v50  ;;  %v5892_v2 = vpop.eup %5891  ;;  %5200 = vset.pattern.permute.xlu1 %v10845_v1  ;;  %5199 = vset.pattern.permute.xlu0 %v10845_v1  ;;  %v3131_v31 = vmul.f32 0.1, %v96_v9  ;;  %v6246_v38 = vld [vmem:[%s10831_s1 + $0x20] sm:$0x1f]  ;;  %v5194_v42 = vpack.i.bf16 %v6177_v54, %v6070_v14  ;;  %v6254_v44 = vld [vmem:[%s10831_s1 + $0x28] sm:$0x1f]  ;;  %v6260_v49 = vpack.i.b16 %v306_v52, %v306_v52 }
  0x11   :  { %5055 = vrot.lane.b32.xlu1 %v5049_v15, %s5940_s18  ;;  %5045 = vrot.lane.b32.xlu0 %v5044_v16, %s5939_s17  ;;  %5903 = vtanh.f32 %v3115_v53  ;;  %v6265_v50 = vld [vmem:[%s10831_s1 + $0x30] sm:$0x1f]  ;;  %v6274_v52 = vld [vmem:[%s10831_s1 + $0x38] sm:$0x1f]  ;;  %vm289_vm2 = vcmp.lt.s32.totalorder %v6115_v26, 16  ;;  %vm386_vm3 = vcmp.lt.s32.totalorder %v6115_v26, 15 }
  0x12   :  { %5905 = vtanh.f32 %v3116_v58  ;;  %vm172_vm4 = vcmp.lt.s32.totalorder %v6115_v26, 17  ;;  %vm459_vm5 = vcmp.lt.s32.totalorder %v6115_v26, 1  ;;  %vm997_vm6 = vcmask 1041408  }
  0x13   :  { %5907 = vtanh.f32 %v3125_v61  ;;  %vm540_vm7 = vcmp.lt.s32.totalorder %v6115_v26, 127  ;;  %vm1014_vm8 = vcmask 1042432   ;;  %vm613_vm9 = vcmp.lt.s32.totalorder %v6115_v26, 113 }
  0x14   :  { %5909 = vtanh.f32 %v3126_v0  ;;  %v5894_v28 = vpop.eup %5893  ;;  %vm1031_vm10 = vcmask 1043456   ;;  %vm686_vm11 = vcmp.lt.s32.totalorder %v6115_v26, 112  ;;  %vm759_vm12 = vcmp.lt.s32.totalorder %v6115_v26, 111  ;;  %v9672_v26 = vld [vmem:[%s10839_s0 + $0x48] sm:$0xff] }
  0x15   :  { %5065 = vrot.lane.b32.xlu1 %v5049_v15, %s5941_s19  ;;  %5060 = vrot.lane.b32.xlu0 %v5044_v16, %s10843_s2  ;;  %5911 = vtanh.f32 %v3127_v6  ;;  %vm1065_vm13 = vcmask 1045504   ;;  %vm1082_vm14 = vcmask 1046528   ;;  %vm1141_vm15 = vcmask 146432  }
  0x17   :  { %v5896_v33 = vpop.eup %5895 }
  0x18   :  { %v5898_v41 = vpop.eup %5897  ;;  %v3143_v45 = vmul.f32 %v5896_v33, %v6233_v22 }
  0x19   :  { %5075 = vrot.lane.b32.xlu1 %v5044_v16, %s5941_s19  ;;  %5070 = vrot.lane.b32.xlu0 %v5044_v16, %s5940_s18  ;;  %v3141_v16 = vmul.f32 %v5892_v2, %v6182_v55  ;;  %v5900_v48 = vpop.eup %5899 }
  0x1a   :  { %v5902_v56 = vpop.eup %5901  ;;  %v3145_v57 = vmul.f32 %v5900_v48, %v6246_v38  ;;  %v3163_v0 = vsel %vm1048_vm0, %v3143_v45, 0.0 }
  0x1b   :  { %v3149_v25 = vsel %vm1048_vm0, %v3141_v16, 0.0  ;;  %v3146_v61 = vmul.f32 %v5902_v56, %v6254_v44 }
  0x1c   :  { %v3150_v32 = vrot.slane %v3149_v25, 4 }
  0x1d   :  { %5080 = vrot.lane.b32.xlu0 %v5079_v18, %s5942_s20  ;;  %5085 = vrot.lane.b32.xlu1 %v5084_v19, %s5942_s20 }
  0x1e   :  { %v3151_v46 = vadd.f32 %v3150_v32, %v3149_v25 }
  0x20   :  { %v3152_v58 = vrot.slane %v3151_v46, 2 }
  0x21   :  { %5090 = vrot.lane.b32.xlu0 %v5079_v18, %s5943_s21  ;;  %5095 = vrot.lane.b32.xlu1 %v5084_v19, %s5943_s21 }
  0x22   :  { %v3153_v6 = vadd.f32 %v3152_v58, %v3151_v46 }
  0x25   :  { %5100 = vrot.lane.b32.xlu0 %v5079_v18, %s5944_s22  ;;  %5105 = vrot.lane.b32.xlu1 %v5084_v19, %s5944_s22  ;;  %v6221_v18 = vld [vmem:[%s10831_s1 + $0x8] sm:$0x1f]  ;;  %v97_v19 = vld [vmem:[%s10830_s3 + $0x78] sm:$0x1f] }
  0x26   :  { %v3142_v40 = vmul.f32 %v5894_v28, %v6221_v18  ;;  %v3154_v28 = vrot.slane %v3153_v6, 1 }
  0x28   :  { %v3156_v53 = vsel %vm1048_vm0, %v3142_v40, 0.0 }
  0x29   :  { %5110 = vrot.lane.b32.xlu0 %v5049_v15, %s5945_s23  ;;  %5115 = vrot.lane.b32.xlu1 %v5114_v20, %s5945_s23  ;;  %v3128_v15 = vmul.f32 0.1, %v93_v59  ;;  %v3129_v20 = vmul.f32 0.1, %v94_v60  ;;  %v3157_v59 = vrot.slane %v3156_v53, 4  ;;  %v5904_v60 = vpop.eup %5903 }
  0x2a   :  { %v5906_v5 = vpop.eup %5905 }
  0x2b   :  { %5913 = vtanh.f32 %v3128_v15  ;;  %v3158_v9 = vadd.f32 %v3157_v59, %v3156_v53  ;;  %v3164_v15 = vrot.slane %v3163_v0, 4  ;;  %v3148_v16 = vmul.f32 %v5906_v5, %v6274_v52  ;;  %v5908_v25 = vpop.eup %5907 }
  0x2c   :  { %5915 = vtanh.f32 %v3129_v20  ;;  %v3177_v20 = vsel %vm1048_vm0, %v3145_v57, 0.0 }
  0x2d   :  { %5120 = vrot.lane.b32.xlu0 %v5119_v21, %s5939_s17  ;;  %5125 = vrot.lane.b32.xlu1 %v5119_v21, %s10843_s2  ;;  %5917 = vtanh.f32 %v3130_v23  ;;  %v3184_v23 = vsel %vm1048_vm0, %v3146_v61, 0.0  ;;  %v3165_v32 = vadd.f32 %v3164_v15, %v3163_v0  ;;  %v3178_v33 = vrot.slane %v3177_v20, 4 }
  0x2e   :  { %5919 = vtanh.f32 %v3131_v31  ;;  %v3159_v31 = vrot.slane %v3158_v9, 2  ;;  %v3198_v46 = vsel %vm1048_vm0, %v3148_v16, 0.0 }
  0x2f   :  { %v3166_v56 = vrot.slane %v3165_v32, 2  ;;  %v3179_v57 = vadd.f32 %v3178_v33, %v3177_v20  ;;  %v3199_v5 = vrot.slane %v3198_v46, 4 }
  0x30   :  { %v3160_v53 = vadd.f32 %v3159_v31, %v3158_v9 }
  0x31   :  { %5130 = vrot.lane.b32.xlu0 %v5119_v21, %s5940_s18  ;;  %5135 = vrot.lane.b32.xlu1 %v5119_v21, %s5941_s19  ;;  %v6228_v21 = vpack.i.bf16 %v6177_v54, %v6059_v11  ;;  %v3180_v15 = vrot.slane %v3179_v57, 2 }
  0x35   :  { %5140 = vrot.lane.b32.xlu0 %v5139_v39, %s5942_s20  ;;  %5145 = vrot.lane.b32.xlu1 %v5139_v39, %s5943_s21 }
  0x39   :  { %5150 = vrot.lane.b32.xlu0 %v5139_v39, %s5944_s22  ;;  %5155 = vrot.lane.b32.xlu1 %v5154_v51, %s5945_s23  ;;  %v3132_v39 = vmul.f32 0.1, %v97_v19  ;;  %v3144_v51 = vmul.f32 %v5898_v41, %v6241_v29  ;;  %v3185_v41 = vrot.slane %v3184_v23, 4 }
  0x3b   :  { %5921 = vtanh.f32 %v3132_v39  ;;  %v3170_v2 = vsel %vm1048_vm0, %v3144_v51, 0.0  ;;  %v5910_v39 = vpop.eup %5909  ;;  %v6290_v51 = vadd.f32 %v3154_v28, %v3153_v6  ;;  %v3205_v6 = vmul.f32 %v5908_v25, %v6182_v55 }
  0x3c   :  { %v3171_v19 = vrot.slane %v3170_v2, 4  ;;  %v5912_v48 = vpop.eup %5911  ;;  %v3200_v28 = vadd.f32 %v3199_v5, %v3198_v46  ;;  %v3206_v1 = vmul.f32 %v5910_v39, %v6221_v18 }
  0x3d   :  { %5160 = vrot.lane.b32.xlu0 %v5159_v3, %s5939_s17  ;;  %5165 = vrot.lane.b32.xlu1 %v5159_v3, %s11158_s26  ;;  %v5914_v58 = vpop.eup %5913  ;;  %v3207_v25 = vmul.f32 %v5912_v48, %v6233_v22 }
  0x3e   :  { %v3172_v40 = vadd.f32 %v3171_v19, %v3170_v2  ;;  %v5916_v0 = vpop.eup %5915  ;;  %v3161_v2 = vrot.slane %v3160_v53, 1 }
  0x3f   :  { %v5918_v16 = vpop.eup %5917  ;;  %v3209_v18 = vmul.f32 %v5916_v0, %v6246_v38 }
  0x40   :  { %v3173_v59 = vrot.slane %v3172_v40, 2  ;;  %v5920_v31 = vpop.eup %5919  ;;  %v3210_v39 = vmul.f32 %v5918_v16, %v6254_v44 }
  0x41   :  { %5170 = vrot.lane.b32.xlu0 %v5159_v3, %s5940_s18  ;;  %5175 = vrot.lane.b32.xlu1 %v5159_v3, %s5941_s19  ;;  %v3147_v3 = vmul.f32 %v5904_v60, %v6265_v50  ;;  %v3186_v60 = vadd.f32 %v3185_v41, %v3184_v23  ;;  %v6296_v23 = vadd.f32 %v3161_v2, %v3160_v53 }
  0x42   :  { %v3174_v9 = vadd.f32 %v3173_v59, %v3172_v40  ;;  %v3181_v41 = vadd.f32 %v3180_v15, %v3179_v57  ;;  %v3208_v40 = vmul.f32 %v5914_v58, %v6241_v29  ;;  %v3220_v29 = vsel %vm1048_vm0, %v3206_v1, 0.0 }
  0x43   :  { %v3191_v45 = vsel %vm1048_vm0, %v3147_v3, 0.0  ;;  %v3167_v3 = vadd.f32 %v3166_v56, %v3165_v32  ;;  %v3187_v19 = vrot.slane %v3186_v60, 2  ;;  %v3201_v32 = vrot.slane %v3200_v28, 2 }
  0x44   :  { %v3192_v61 = vrot.slane %v3191_v45, 4  ;;  %v3175_v62 = vrot.slane %v3174_v9, 1  ;;  %v3182_v55 = vrot.slane %v3181_v41, 1  ;;  %v3234_v48 = vsel %vm1048_vm0, %v3208_v40, 0.0 }
  0x45   :  { %5180 = vrot.lane.b32.xlu0 %v6228_v21, %s5942_s20  ;;  %5185 = vrot.lane.b32.xlu1 %v6228_v21, %s5943_s21  ;;  %v3168_v33 = vrot.slane %v3167_v3, 1  ;;  %v3202_v59 = vadd.f32 %v3201_v32, %v3200_v28  ;;  %v3241_v15 = vsel %vm1048_vm0, %v3209_v18, 0.0 }
  0x46   :  { %v3193_v20 = vadd.f32 %v3192_v61, %v3191_v45  ;;  %v6303_v45 = vadd.f32 %v3175_v62, %v3174_v9  ;;  %v6305_v57 = vadd.f32 %v3182_v55, %v3181_v41  ;;  %v3213_v62 = vsel %vm1048_vm0, %v3205_v6, 0.0 }
  0x47   :  { %v6299_v56 = vadd.f32 %v3168_v33, %v3167_v3  ;;  %v3203_v2 = vrot.slane %v3202_v59, 1  ;;  %v3214_v44 = vrot.slane %v3213_v62, 4  ;;  %v3235_v3 = vrot.slane %v3234_v48, 4 }
  0x48   :  { %v3194_v4 = vrot.slane %v3193_v20, 2  ;;  %v3242_v9 = vrot.slane %v3241_v15, 4 }
  0x49   :  { %5190 = vrot.lane.b32.xlu0 %v6228_v21, %s5944_s22  ;;  %5195 = vrot.lane.b32.xlu1 %v5194_v42, %s5945_s23  ;;  %v5922_v21 = vpop.eup %5921  ;;  %v3188_v42 = vadd.f32 %v3187_v19, %v3186_v60  ;;  %v3211_v60 = vmul.f32 %v5920_v31, %v6265_v50  ;;  %v6319_v38 = vadd.f32 %v3203_v2, %v3202_v59  ;;  %v3221_v50 = vrot.slane %v3220_v29, 4 }
  0x4a   :  { %v3195_v53 = vadd.f32 %v3194_v4, %v3193_v20  ;;  %v3212_v22 = vmul.f32 %v5922_v21, %v6274_v52  ;;  %v3227_v4 = vsel %vm1048_vm0, %v3207_v25, 0.0  ;;  %v3248_v52 = vsel %vm1048_vm0, %v3210_v39, 0.0 }
  0x4b   :  { %v3189_v46 = vrot.slane %v3188_v42, 1  ;;  %v3228_v0 = vrot.slane %v3227_v4, 4  ;;  %v3215_v16 = vadd.f32 %v3214_v44, %v3213_v62  ;;  %v3222_v6 = vadd.f32 %v3221_v50, %v3220_v29 }
  0x4c   :  { %v3196_v5 = vrot.slane %v3195_v53, 1  ;;  %v3249_v1 = vrot.slane %v3248_v52, 4  ;;  %v3236_v20 = vadd.f32 %v3235_v3, %v3234_v48  ;;  %v3255_v28 = vsel %vm1048_vm0, %v3211_v60, 0.0 }
  0x4d   :  { %v6310_v61 = vadd.f32 %v3189_v46, %v3188_v42  ;;  %v3229_v19 = vadd.f32 %v3228_v0, %v3227_v4  ;;  %v3262_v31 = vsel %vm1048_vm0, %v3212_v22, 0.0  ;;  %v3216_v33 = vrot.slane %v3215_v16, 2 }
  0x4e   :  { %v6317_v58 = vadd.f32 %v3196_v5, %v3195_v53  ;;  %v3223_v41 = vrot.slane %v3222_v6, 2  ;;  %v3243_v21 = vadd.f32 %v3242_v9, %v3241_v15  ;;  %v3250_v42 = vadd.f32 %v3249_v1, %v3248_v52 }
  0x4f   :  { %v3230_v32 = vrot.slane %v3229_v19, 2  ;;  %v3237_v55 = vrot.slane %v3236_v20, 2  ;;  %v3256_v25 = vrot.slane %v3255_v28, 4  ;;  %v3263_v40 = vrot.slane %v3262_v31, 4 }
  0x50   :  { %v3217_v46 = vadd.f32 %v3216_v33, %v3215_v16  ;;  %v3224_v53 = vadd.f32 %v3223_v41, %v3222_v6  ;;  %v3244_v59 = vrot.slane %v3243_v21, 2  ;;  %v3251_v18 = vrot.slane %v3250_v42, 2 }
  0x51   :  { %v3231_v39 = vadd.f32 %v3230_v32, %v3229_v19  ;;  %v3238_v5 = vadd.f32 %v3237_v55, %v3236_v20  ;;  %v3257_v2 = vadd.f32 %v3256_v25, %v3255_v28  ;;  %v3264_v62 = vadd.f32 %v3263_v40, %v3262_v31  ;;  %v101_v55 = vld [vmem:[%s10829_s4 + $0x18] sm:$0xff] }
  0x52   :  { %v3218_v29 = vrot.slane %v3217_v46, 1  ;;  %v3225_v60 = vrot.slane %v3224_v53, 1  ;;  %v3245_v4 = vadd.f32 %v3244_v59, %v3243_v21  ;;  %v3252_v22 = vadd.f32 %v3251_v18, %v3250_v42 }
  0x53   :  { %v3232_v48 = vrot.slane %v3231_v39, 1  ;;  %v3239_v44 = vrot.slane %v3238_v5, 1  ;;  %v3258_v50 = vrot.slane %v3257_v2, 2  ;;  %v3265_v0 = vrot.slane %v3264_v62, 2 }
  0x54   :  { %v3219_v3 = vadd.f32 %v3218_v29, %v3217_v46  ;;  %v3226_v15 = vadd.f32 %v3225_v60, %v3224_v53  ;;  %v3246_v52 = vrot.slane %v3245_v4, 1  ;;  %v3253_v9 = vrot.slane %v3252_v22, 1 }
  0x55   :  { %v3233_v16 = vadd.f32 %v3232_v48, %v3231_v39  ;;  %v3240_v6 = vadd.f32 %v3239_v44, %v3238_v5  ;;  %v3259_v1 = vadd.f32 %v3258_v50, %v3257_v2  ;;  %v3266_v33 = vadd.f32 %v3265_v0, %v3264_v62 }
  0x56   :  { %v3247_v19 = vadd.f32 %v3246_v52, %v3245_v4  ;;  %v3254_v20 = vadd.f32 %v3253_v9, %v3252_v22  ;;  %v3269_v28 = vsel %vm972_vm1, %v6290_v51, %v3219_v3  ;;  %v3270_v31 = vsel %vm972_vm1, %v6296_v23, %v3226_v15 }
  0x57   :  { %v3260_v41 = vrot.slane %v3259_v1, 1  ;;  %v3267_v21 = vrot.slane %v3266_v33, 1  ;;  %v3271_v42 = vsel %vm972_vm1, %v6299_v56, %v3233_v16  ;;  %v3272_v32 = vsel %vm972_vm1, %v6303_v45, %v3240_v6  ;;  %v100_v16 = vld [vmem:[%s10829_s4 + $0x10] sm:$0xff] }
  0x58   :  { %v3273_v25 = vsel %vm972_vm1, %v6305_v57, %v3247_v19  ;;  %v3274_v51 = vsel %vm972_vm1, %v6310_v61, %v3254_v20  ;;  %v3277_v40 = vmul.f32 10.0, %v3269_v28  ;;  %v3278_v23 = vmul.f32 10.0, %v3270_v31 }
  0x59   :  { %v3261_v46 = vadd.f32 %v3260_v41, %v3259_v1  ;;  %v3268_v53 = vadd.f32 %v3267_v21, %v3266_v33  ;;  %v3279_v59 = vmul.f32 10.0, %v3271_v42  ;;  %v3280_v18 = vmul.f32 10.0, %v3272_v32  ;;  %v102_v42 = vld [vmem:[%s10829_s4 + $0x20] sm:$0x11] }
  0x5a   :  { %v4845_v56 = vcombine.high %v6120_v27, %v6120_v27  ;;  %v3281_v45 = vmul.f32 10.0, %v3273_v25  ;;  %v3282_v39 = vmul.f32 10.0, %v3274_v51  ;;  %v3293_v5 = vcombine.low %v3277_v40, %v3278_v23 }
  0x5b   :  { %v4849_v2 = vcombine.high %v101_v55, %v101_v55  ;;  %v3275_v62 = vsel %vm972_vm1, %v6317_v58, %v3261_v46  ;;  %v3276_v57 = vsel %vm972_vm1, %v6319_v38, %v3268_v53  ;;  %v3294_v61 = vcombine.low %v3279_v59, %v3280_v18 }
  0x5c   :  { %v3283_v29 = vmul.f32 10.0, %v3275_v62  ;;  %v3284_v60 = vmul.f32 10.0, %v3276_v57  ;;  %v3301_v4 = vrot.slane %v3293_v5, %v6053_v8  ;;  %v3310_v22 = vcombine.low %v3281_v45, %v3282_v39 }
  0x5d   :  { %v11159_v48 = vshrl.u32 %v6163_v43, 16  ;;  %v210_v44 = vpack.i.b16 %v6125_v30, %v6125_v30  ;;  %v224_v58 = vpack.i.b16 %v6163_v43, %v6163_v43  ;;  %v3308_v50 = vrot.slane %v3294_v61, %v6053_v8 }
  0x5e   :  { %v6359_v38 = vrot.slane %v6210_v7, %v6137_v34  ;;  %v6363_v0 = vrot.slane %v6165_v47, %v6137_v34  ;;  %v3311_v3 = vcombine.low %v3283_v29, %v3284_v60  ;;  %v3318_v15 = vrot.slane %v3310_v22, %v6053_v8 }
  0x5f   :  { %v6350_v27 = vpack.i.b16 %v11159_v48, %v11159_v48  ;;  %v6368_v52 = vrot.slane %v6260_v49, %v6137_v34  ;;  %v6372_v30 = vrot.slane %v6210_v7, %v6140_v35  ;;  %v6376_v43 = vrot.slane %v6260_v49, %v6140_v35 }
  0x60   :  { %11160 = vst [vmem:[#allocation9_spill] sm:$0xff] %v6359_v38  ;;  %11161 = vst [vmem:[#allocation10_spill] sm:$0xff] %v6363_v0  ;;  %v3309_v9 = vcombine.low %v3301_v4, %v3308_v50  ;;  %v327_v6 = vshrl.u32 %v4845_v56, 16  ;;  %v355_v1 = vshrl.u32 %v4849_v2, 16  ;;  %v517_v33 = vpack.c.bf16 %v6063_v12, %v6063_v12 }
  0x61   :  { %11162 = vst [vmem:[#allocation11_spill] sm:$0xff] %v6368_v52  ;;  %11163 = vst [vmem:[#allocation12_spill] sm:$0xff] %v6372_v30  ;;  %v3325_v19 = vrot.slane %v3311_v3, %v6053_v8  ;;  %v6386_v20 = vrot.slane %v6350_v27, %v6137_v34  ;;  %v6389_v28 = vrot.slane %v210_v44, %v6140_v35 }
  0x62   :  { %11164 = vst [vmem:[#allocation13_spill] sm:$0xff] %v6376_v43  ;;  %v6392_v31 = vrot.slane %v224_v58, %v6140_v35  ;;  %v6396_v41 = vrot.slane %v6350_v27, %v6140_v35  ;;  %3329 = vst [vmem:[%s10833_s14] sm:$0xff] %v3309_v9  ;;  %v6402_v12 = vrot.slane %v210_v44, %v6137_v34 }
  0x63   :  { %11165 = vst [vmem:[#allocation14_spill] sm:$0xff] %v6386_v20  ;;  %11166 = vst [vmem:[#allocation15_spill] sm:$0xff] %v6389_v28  ;;  %v3326_v21 = vcombine.low %v3318_v15, %v3325_v19  ;;  %v4846_v32 = vcombine.low %v100_v16, %v100_v16  ;;  %v4848_v25 = vcombine.low %v101_v55, %v101_v55 }
  0x64   :  { %11167 = vst [vmem:[#allocation16_spill] sm:$0xff] %v6392_v31  ;;  %11168 = vst [vmem:[#allocation17_spill] sm:$0xff] %v6396_v41  ;;  %v6408_v51 = vrot.slane %v224_v58, %v6137_v34  ;;  %v6412_v40 = vrot.slane %v6350_v27, %v6143_v36  ;;  %v6416_v23 = vrot.slane %v6210_v7, %v6143_v36 }
  0x65   :  { %11169 = vst [vmem:[#allocation18_spill] sm:$0xff] %v6402_v12  ;;  %v4847_v46 = vcombine.high %v100_v16, %v100_v16  ;;  %v6418_v53 = vpack.i.b16 %v327_v6, %v327_v6  ;;  %v6420_v59 = vpack.i.b16 %v355_v1, %v355_v1  ;;  %v6422_v18 = vpack.i.b16 %v4845_v56, %v4845_v56 }
  0x66   :  { %11170 = vst [vmem:[#allocation19_spill] sm:$0xff] %v6408_v51  ;;  %11171 = vst [vmem:[#allocation20_spill] sm:$0xff] %v6412_v40  ;;  %v6424_v45 = vpack.i.b16 %v4849_v2, %v4849_v2  ;;  %v6430_v55 = vrot.slane %v224_v58, %v6146_v37  ;;  %v516_v39 = vpack.c.bf16 %v6056_v10, %v6056_v10  ;;  %v334_v2 = vshrl.u32 %v4846_v32, 16 }
  0x67   :  { %11172 = vst [vmem:[#allocation21_spill] sm:$0xff] %v6416_v23  ;;  %3330 = vst [vmem:[%s10833_s14 + $0x8] sm:$0xff] %v3326_v21  ;;  %v4851_v5 = vcombine.high %v102_v42, %v102_v42  ;;  %v4850_v62 = vcombine.low %v102_v42, %v102_v42  ;;  %v6436_v57 = vrot.slane %v6165_v47, %v6146_v37  ;;  %v348_v61 = vshrl.u32 %v4848_v25, 16 }
  0x68   :  { %11173 = vst [vmem:[#allocation22_spill] sm:$0xff] %v6430_v55  ;;  %v6440_v56 = vrot.slane %v6260_v49, %v6143_v36  ;;  %v6444_v29 = vrot.slane %v6210_v7, %v6146_v37  ;;  %v6447_v60 = vrot.slane %v210_v44, %v6146_v37  ;;  %v6451_v10 = vrot.slane %v6260_v49, %v6146_v37  ;;  %v1107_v49 = vld [vmem:[%s10834_s6] sm:$0xff]  ;;  %v1108_v44 = vld [vmem:[%s10834_s6 + $0x8] sm:$0xff] }
  0x69   :  { %11174 = vst [vmem:[#allocation23_spill] sm:$0xff] %v6436_v57  ;;  %v341_v4 = vshrl.u32 %v4847_v46, 16  ;;  %v6455_v47 = vrot.slane %v6418_v53, %v6137_v34  ;;  %v6459_v22 = vrot.slane %v6420_v59, %v6137_v34  ;;  %v6463_v7 = vrot.slane %v6422_v18, %v6140_v35  ;;  %1113 = vperm.xlu0 %5199, %v1107_v49  }
  0x6a   :  { %11175 = vst [vmem:[#allocation24_spill] sm:$0xff] %v6440_v56  ;;  %11176 = vst [vmem:[#allocation25_spill] sm:$0xff] %v6444_v29  ;;  %v6467_v48 = vrot.slane %v6424_v45, %v6140_v35  ;;  %v6475_v58 = vrot.slane %v517_v33, 4  ;;  %v804_v50 = vpack.i.b16 %v4851_v5, %v4851_v5  ;;  %v797_v3 = vpack.i.b16 %v4850_v62, %v4850_v62  ;;  %v1110_v33 = vld [vmem:[%s10834_s6 + $0x18] sm:$0xff]  ;;  %v103_v62 = vld [vmem:[%s10829_s4 + $0x28] sm:$0x11] }
  0x6b   :  { %11177 = vst [vmem:[#allocation26_spill] sm:$0xff] %v6447_v60  ;;  %11178 = vst [vmem:[#allocation27_spill] sm:$0xff] %v6451_v10  ;;  %v518_v15 = vpack.c.bf16 %v6066_v13, %v6066_v13  ;;  %1118 = vperm.xlu1 %5200, %v1108_v44   ;;  %v6481_v9 = vrot.slane %v6422_v18, %v6137_v34  ;;  %v6485_v16 = vrot.slane %v6424_v45, %v6137_v34  ;;  %v1109_v13 = vld [vmem:[%s10834_s6 + $0x10] sm:$0xff] }
  0x6c   :  { %11179 = vst [vmem:[#allocation28_spill] sm:$0xff] %v6459_v22  ;;  %11180 = vst [vmem:[#allocation29_spill] sm:$0xff] %v6467_v48  ;;  %v6487_v6 = vpack.i.b16 %v334_v2, %v334_v2  ;;  %v349_v1 = vpack.i.b16 %v348_v61, %v348_v61  ;;  %v342_v19 = vpack.i.b16 %v341_v4, %v341_v4 }
  0x6d   :  { %11181 = vst [vmem:[#allocation30_spill] sm:$0xff] %v6485_v16  ;;  %v6495_v21 = vpack.i.b16 %v4846_v32, %v4846_v32  ;;  %v245_v42 = vpack.i.b16 %v4847_v46, %v4847_v46  ;;  %v252_v5 = vpack.i.b16 %v4848_v25, %v4848_v25  ;;  %v6502_v2 = vrot.slane %v6418_v53, %v6140_v35 }
  0x6e   :  { %v6506_v61 = vrot.slane %v6420_v59, %v6140_v35  ;;  %v6510_v49 = vrot.slane %v6418_v53, %v6143_v36  ;;  %v6514_v32 = vrot.slane %v6420_v59, %v6143_v36  ;;  %v6516_v25 = vrot.slane %v516_v39, 4  ;;  %1128 = vperm.xlu0 %5199, %v1110_v33  }
  0x6f   :  { %11182 = vst [vmem:[#allocation31_spill] sm:$0xff] %v6502_v2  ;;  %v6519_v46 = vrot.slane %v804_v50, %v6137_v34  ;;  %v6522_v4 = vrot.slane %v797_v3, %v6137_v34  ;;  %v6526_v44 = vrot.slane %v6350_v27, %v6146_v37  ;;  %1123 = vperm.xlu1 %5200, %v1109_v13  }
  0x70   :  { %11183 = vst [vmem:[#allocation32_spill] sm:$0xff] %v6506_v61  ;;  %11184 = vst [vmem:[#allocation33_spill] sm:$0xff] %v6510_v49  ;;  %v6530_v8 = vrot.slane %v6487_v6, %v6137_v34  ;;  %v4853_v39 = vcombine.high %v103_v62, %v103_v62  ;;  %v4852_v49 = vcombine.low %v103_v62, %v103_v62 }
  0x71   :  { %11185 = vst [vmem:[#allocation34_spill] sm:$0xff] %v6514_v32  ;;  %11186 = vst [vmem:[#allocation35_spill] sm:$0xff] %v6519_v46  ;;  %v6533_v32 = vrot.slane %v349_v1, %v6137_v34  ;;  %v6538_v50 = vrot.slane %v342_v19, %v6137_v34  ;;  %v6542_v27 = vrot.slane %v6495_v21, %v6140_v35 }
  0x72   :  { %11187 = vst [vmem:[#allocation36_spill] sm:$0xff] %v6522_v4  ;;  %11188 = vst [vmem:[#allocation37_spill] sm:$0xff] %v6526_v44  ;;  %v6545_v3 = vrot.slane %v245_v42, %v6140_v35  ;;  %v6548_v33 = vrot.slane %v252_v5, %v6140_v35  ;;  %v6552_v13 = vrot.slane %v6495_v21, %v6137_v34 }
  0x73   :  { %11189 = vst [vmem:[#allocation38_spill] sm:$0xff] %v6530_v8  ;;  %11190 = vst [vmem:[#allocation39_spill] sm:$0xff] %v6533_v32  ;;  %v6555_v62 = vrot.slane %v245_v42, %v6137_v34  ;;  %v519_v44 = vpack.c.bf16 %v6084_v17, %v6084_v17  ;;  %v523_v32 = vpack.c.bf16 %v6070_v14, %v6070_v14 }
  0x74   :  { %11191 = vst [vmem:[#allocation40_spill] sm:$0xff] %v6538_v50  ;;  %11192 = vst [vmem:[#allocation41_spill] sm:$0xff] %v6542_v27  ;;  %v6562_v27 = vrot.slane %v252_v5, %v6137_v34  ;;  %v818_v17 = vpack.i.b16 %v4853_v39, %v4853_v39  ;;  %v811_v50 = vpack.i.b16 %v4852_v49, %v4852_v49  ;;  %v6594_v49 = vrot.slane %v518_v15, 4 }
  0x75   :  { %11193 = vst [vmem:[#allocation42_spill] sm:$0xff] %v6545_v3  ;;  %11194 = vst [vmem:[#allocation43_spill] sm:$0xff] %v6548_v33  ;;  %v6566_v3 = vrot.slane %v6487_v6, %v6140_v35  ;;  %v6569_v33 = vrot.slane %v342_v19, %v6140_v35  ;;  %v521_v14 = vpack.c.bf16 %v6177_v54, %v6177_v54  ;;  %v6596_v39 = vrot.slane %v519_v44, 4 }
  0x76   :  { %11195 = vst [vmem:[#allocation44_spill] sm:$0xff] %v6552_v13  ;;  %11196 = vst [vmem:[#allocation45_spill] sm:$0xff] %v6555_v62  ;;  %v6572_v13 = vrot.slane %v349_v1, %v6140_v35  ;;  %v6576_v62 = vrot.slane %v6422_v18, %v6146_v37  ;;  %v6589_v35 = vrot.slane %v349_v1, %v6143_v36 }
  0x77   :  { %11197 = vst [vmem:[#allocation46_spill] sm:$0xff] %v6562_v27  ;;  %11198 = vst [vmem:[#allocation47_spill] sm:$0xff] %v6566_v3  ;;  %v105_v27 = vld [vmem:[%s10829_s4 + $0x38] sm:$0x11]  ;;  %v6592_v18 = vrot.slane %v252_v5, %v6146_v37  ;;  %v6600_v54 = vrot.slane %v6424_v45, %v6146_v37  ;;  %v6612_v5 = vrot.slane %v342_v19, %v6143_v36 }
  0x78   :  { %11199 = vst [vmem:[#allocation48_spill] sm:$0xff] %v6569_v33  ;;  %11200 = vst [vmem:[#allocation49_spill] sm:$0xff] %v6572_v13  ;;  %v6586_v33 = vrot.slane %v6418_v53, %v6146_v37  ;;  %v6604_v13 = vrot.slane %v6420_v59, %v6146_v37  ;;  %v6606_v53 = vrot.slane %v523_v32, 4  ;;  %v6615_v15 = vrot.slane %v245_v42, %v6146_v37 }
  0x79   :  { %11201 = vst [vmem:[#allocation50_spill] sm:$0xff] %v6576_v62  ;;  %11203 = vst [vmem:[#allocation52_spill] sm:$0xff] %v6589_v35  ;;  %v104_v35 = vld [vmem:[%s10829_s4 + $0x30] sm:$0x11]  ;;  %v522_v45 = vpack.c.bf16 %v6059_v11, %v6059_v11  ;;  %v4857_v44 = vcombine.high %v105_v27, %v105_v27  ;;  %v6623_v59 = vrot.slane %v811_v50, %v6137_v34 }
  0x7a   :  { %11202 = vst [vmem:[#allocation51_spill] sm:$0xff] %v6586_v33  ;;  %11204 = vst [vmem:[#allocation53_spill] sm:$0xff] %v6592_v18  ;;  %v6620_v18 = vrot.slane %v818_v17, %v6137_v34  ;;  %v6626_v32 = vrot.slane %v342_v19, %v6146_v37  ;;  %v520_v11 = vpack.c.bf16 %v6113_v24, %v6113_v24 }
  0x7b   :  { %11205 = vst [vmem:[#allocation54_spill] sm:$0xff] %v6594_v49  ;;  %11206 = vst [vmem:[#allocation55_spill] sm:$0xff] %v6600_v54  ;;  %v4855_v17 = vcombine.high %v104_v35, %v104_v35  ;;  %v6636_v19 = vrot.slane %v522_v45, 4 }
  0x7c   :  { %11207 = vst [vmem:[#allocation56_spill] sm:$0xff] %v6604_v13  ;;  %11208 = vst [vmem:[#allocation57_spill] sm:$0xff] %v6606_v53  ;;  %v6628_v53 = vrot.slane %v521_v14, 4  ;;  %v4854_v13 = vcombine.low %v104_v35, %v104_v35  ;;  %v6640_v14 = vrot.slane %v6487_v6, %v6143_v36  ;;  %v6648_v35 = vrot.slane %v6495_v21, %v6146_v37 }
  0x7d   :  { %11209 = vst [vmem:[#allocation58_spill] sm:$0xff] %v6612_v5  ;;  %11210 = vst [vmem:[#allocation59_spill] sm:$0xff] %v6615_v15  ;;  %v6632_v15 = vrot.slane %v349_v1, %v6146_v37 }
  0x7e   :  { %11211 = vst [vmem:[#allocation60_spill] sm:$0xff] %v6620_v18  ;;  %11212 = vst [vmem:[#allocation61_spill] sm:$0xff] %v6623_v59 }
  0x7f   :  { %11213 = vst [vmem:[#allocation62_spill] sm:$0xff] %v6626_v32  ;;  %11214 = vst [vmem:[#allocation63_spill] sm:$0xff] %v6628_v53  ;;  %v5051_v5 = vpop.permute.xlu1 %5050  ;;  %v5041_v42 = vpop.permute.xlu0 %5040  ;;  %v846_v53 = vpack.i.b16 %v4857_v44, %v4857_v44  ;;  %v4856_v32 = vcombine.low %v105_v27, %v105_v27  ;;  %v832_v27 = vpack.i.b16 %v4855_v17, %v4855_v17 }
  0x80   :  { %11215 = vst [vmem:[#allocation64_spill] sm:$0xff] %v6632_v15  ;;  %v5053_v54 = vunpack.i.h.bf16 %v5051_v5  ;;  %v5052_v50 = vunpack.i.l.bf16 %v5051_v5  ;;  %v5043_v59 = vunpack.i.h.bf16 %v5041_v42  ;;  %v5042_v18 = vunpack.i.l.bf16 %v5041_v42  ;;  %11216 = vst [vmem:[#allocation65_spill] sm:$0xff] %v6636_v19 }
  0x81   :  { %11217 = vst [vmem:[#allocation66_spill] sm:$0xff] %v6640_v14  ;;  %11218 = vst [vmem:[#allocation67_spill] sm:$0xff] %v6648_v35  ;;  %v6652_v5 = vrot.slane %v6487_v6, %v6146_v37  ;;  %v825_v14 = vpack.i.b16 %v4854_v13, %v4854_v13  ;;  %v6665_v6 = vrot.slane %v520_v11, 4 }
  0x82   :  { %v393_v1 = vsel %vm386_vm3, %v5052_v50, %v5053_v54  ;;  %v296_v24 = vsel %vm289_vm2, %v5042_v18, %v5043_v59 }
  0x83   :  { %11219 = vst [vmem:[#allocation68_spill] sm:$0xff] %v6652_v5  ;;  %v396_v45 = vpack.c.bf16 %v393_v1, %v393_v1  ;;  %v299_v42 = vpack.c.bf16 %v296_v24, %v296_v24  ;;  %v6654_v36 = vpop.permute.xlu1 %5055  ;;  %v6656_v44 = vpop.permute.xlu0 %5045  ;;  %11220 = vst [vmem:[#allocation69_spill] sm:$0xff] %v6665_v6  ;;  %v6668_v1 = vrot.slane %v846_v53, %v6137_v34 }
  0x84   :  { %v5058_v19 = vunpack.i.h.bf16 %v6654_v36  ;;  %v5057_v15 = vunpack.i.l.bf16 %v6654_v36  ;;  %v10887_v49 = vunpack.i.h.bf16 %v6656_v44  ;;  %v10888_v21 = vunpack.i.l.bf16 %v6656_v44 }
  0x85   :  { %v6663_v35 = vmul.bf16 %v6199_v63, %v396_v45  ;;  %11221 = vst [vmem:[#allocation70_spill] sm:$0xff] %v6668_v1  ;;  %v839_v24 = vpack.i.b16 %v4856_v32, %v4856_v32  ;;  %v363_v17 = vmul.bf16 %v6359_v38, %v299_v42  ;;  %v6684_v32 = vrot.slane %v832_v27, %v6137_v34 }
  0x86   :  { %v179_v13 = vsel %vm172_vm4, %v5057_v15, %v5058_v19  ;;  %v295_v36 = vsel %vm289_vm2, %v5043_v59, %v10887_v49  ;;  %v297_v11 = vsel %vm289_vm2, %v10888_v21, %v5042_v18  ;;  %v6687_v42 = vrot.slane %v825_v14, %v6137_v34 }
  0x87   :  { %v182_v45 = vpack.c.bf16 %v179_v13, %v179_v13  ;;  %v300_v37 = vpack.c.bf16 %v295_v36, %v295_v36  ;;  %v5066_v53 = vpop.permute.xlu1 %5065  ;;  %v6681_v63 = vpop.permute.xlu0 %5060  ;;  %11222 = vst [vmem:[#allocation71_spill] sm:$0xff] %v6684_v32  ;;  %v298_v38 = vpack.c.bf16 %v297_v11, %v297_v11  ;;  %v885_v18 = vrot.slane %v6663_v35, 6 }
  0x88   :  { %11223 = vst [vmem:[#allocation72_spill] sm:$0xff] %v6687_v42  ;;  %v5068_v6 = vunpack.i.h.bf16 %v5066_v53  ;;  %v5067_v5 = vunpack.i.l.bf16 %v5066_v53  ;;  %v10895_v59 = vunpack.i.h.bf16 %v6681_v63  ;;  %v10896_v36 = vunpack.i.l.bf16 %v6681_v63 }
  0x89   :  { %v6693_v13 = vmul.bf16 %v6386_v20, %v300_v37  ;;  %v6697_v27 = vrot.slane %v839_v24, %v6137_v34  ;;  %v869_v14 = vrot.slane %v363_v17, 7  ;;  %v6700_v11 = vmul.bf16 %v6368_v52, %v298_v38 }
  0x8a   :  { %v466_v53 = vsel %vm459_vm5, %v5067_v5, %v5068_v6  ;;  %v392_v35 = vsel %vm386_vm3, %v5053_v54, %v10895_v59  ;;  %v266_v37 = vmul.bf16 %v6363_v0, %v182_v45  ;;  %v394_v24 = vsel %vm386_vm3, %v10896_v36, %v5052_v50 }
  0x8b   :  { %11224 = vst [vmem:[#allocation73_spill] sm:$0xff] %v6697_v27  ;;  %v469_v49 = vpack.c.bf16 %v466_v53, %v466_v53  ;;  %v397_v21 = vpack.c.bf16 %v392_v35, %v392_v35  ;;  %v6713_v17 = vpop.permute.xlu1 %5075  ;;  %v6715_v38 = vpop.permute.xlu0 %5070  ;;  %v870_v34 = vrot.slane %v6693_v13, 7  ;;  %v395_v52 = vpack.c.bf16 %v394_v24, %v394_v24 }
  0x8c   :  { %v10901_v20 = vunpack.i.h.bf16 %v6713_v17  ;;  %v10902_v54 = vunpack.i.l.bf16 %v6713_v17 }
  0x8d   :  { %v509_v45 = vmul.bf16 %v6372_v30, %v469_v49  ;;  %v6723_v53 = vmul.bf16 %v6392_v31, %v397_v21  ;;  %v6729_v13 = vmul.bf16 %v6389_v28, %v395_v52  ;;  %v978_v52 = vsel %vm972_vm1, %v266_v37, %v869_v14 }
  0x8e   :  { %v465_v24 = vsel %vm459_vm5, %v5068_v6, %v10901_v20  ;;  %v467_v49 = vsel %vm459_vm5, %v10902_v54, %v5067_v5  ;;  %v11225_v28 = vunpack.i.h.bf16 %v6715_v38  ;;  %v11226_v20 = vunpack.i.l.bf16 %v6715_v38 }
  0x8f   :  { %v901_v21 = vrot.slane %v509_v45, 5  ;;  %v470_v36 = vpack.c.bf16 %v465_v24, %v465_v24  ;;  %v468_v50 = vpack.c.bf16 %v467_v49, %v467_v49  ;;  %v5081_v35 = vpop.permute.xlu0 %5080  ;;  %v6739_v31 = vpop.permute.xlu1 %5085 }
  0x90   :  { %v178_v6 = vsel %vm172_vm4, %v5058_v19, %v11225_v28  ;;  %v180_v5 = vsel %vm172_vm4, %v11226_v20, %v5057_v15  ;;  %v5083_v45 = vunpack.i.h.bf16 %v5081_v35  ;;  %v5082_v54 = vunpack.i.l.bf16 %v5081_v35 }
  0x91   :  { %v6753_v24 = vmul.bf16 %v6396_v41, %v470_v36  ;;  %v6756_v14 = vmul.bf16 %v6376_v43, %v468_v50  ;;  %v183_v37 = vpack.c.bf16 %v178_v6, %v178_v6  ;;  %v181_v49 = vpack.c.bf16 %v180_v5, %v180_v5 }
  0x92   :  { %v10913_v28 = vunpack.i.h.bf16 %v6739_v31  ;;  %v10914_v19 = vunpack.i.l.bf16 %v6739_v31  ;;  %v1001_v50 = vsel %vm997_vm6, %v978_v52, %v885_v18  ;;  %v546_v35 = vsel %vm540_vm7, %v5082_v54, %v5083_v45 }
  0x93   :  { %v267_v30 = vmul.bf16 %v6408_v51, %v183_v37  ;;  %v5091_v36 = vpop.permute.xlu0 %5090  ;;  %v6764_v41 = vpop.permute.xlu1 %5095  ;;  %v265_v20 = vmul.bf16 %v6402_v12, %v181_v49  ;;  %v550_v15 = vpack.c.bf16 %v546_v35, %v546_v35  ;;  %v1018_v0 = vsel %vm1014_vm8, %v1001_v50, %v901_v21 }
  0x94   :  { %v545_v6 = vsel %vm540_vm7, %v5083_v45, %v10913_v28  ;;  %v547_v5 = vsel %vm540_vm7, %v10914_v19, %v5082_v54  ;;  %v5093_v37 = vunpack.i.h.bf16 %v5091_v36  ;;  %v5092_v59 = vunpack.i.l.bf16 %v5091_v36 }
  0x95   :  { %v551_v18 = vpack.c.bf16 %v545_v6, %v545_v6  ;;  %v549_v52 = vpack.c.bf16 %v547_v5, %v547_v5  ;;  %v10919_v43 = vunpack.i.h.bf16 %v6764_v41  ;;  %v10922_v51 = vunpack.i.l.bf16 %v6764_v41 }
  0x96   :  { %v6783_v45 = vsel %vm972_vm1, %v267_v30, %v870_v34  ;;  %v590_v49 = vmul.bf16 %v6416_v23, %v550_v15  ;;  %v619_v36 = vsel %vm613_vm9, %v5092_v59, %v5093_v37  ;;  %v1035_v5 = vsel %vm1031_vm10, %v1018_v0, %v6475_v58 }
  0x97   :  { %v6786_v28 = vmul.bf16 %v6412_v40, %v551_v18  ;;  %v5101_v54 = vpop.permute.xlu0 %5100  ;;  %v6788_v19 = vpop.permute.xlu1 %5105  ;;  %v6792_v35 = vmul.bf16 %v6440_v56, %v549_v52  ;;  %v618_v34 = vsel %vm613_vm9, %v5093_v37, %v10919_v43  ;;  %v620_v30 = vsel %vm613_vm9, %v10922_v51, %v5092_v59 }
  0x98   :  { %v5103_v21 = vunpack.i.h.bf16 %v5101_v54  ;;  %v623_v50 = vpack.c.bf16 %v619_v36, %v619_v36  ;;  %v624_v6 = vpack.c.bf16 %v618_v34, %v618_v34  ;;  %v622_v15 = vpack.c.bf16 %v620_v30, %v620_v30 }
  0x99   :  { %v5102_v18 = vunpack.i.l.bf16 %v5101_v54  ;;  %v10923_v52 = vunpack.i.h.bf16 %v6788_v19  ;;  %v10924_v23 = vunpack.i.l.bf16 %v6788_v19  ;;  %v933_v56 = vrot.slane %v590_v49, 3 }
  0x9a   :  { %v6810_v43 = vmul.bf16 %v6430_v55, %v624_v6  ;;  %v663_v36 = vmul.bf16 %v6436_v57, %v623_v50  ;;  %v6818_v0 = vmul.bf16 %v6447_v60, %v622_v15 }
  0x9b   :  { %v6812_v40 = vpop.permute.xlu0 %5110  ;;  %v6814_v59 = vpop.permute.xlu1 %5115  ;;  %v6824_v58 = vsel %vm686_vm11, %v5103_v21, %v10923_v52  ;;  %v692_v6 = vsel %vm686_vm11, %v5102_v18, %v5103_v21  ;;  %v1052_v52 = vsel %vm1048_vm0, %v1035_v5, %v933_v56  ;;  %v693_v49 = vsel %vm686_vm11, %v10924_v23, %v5102_v18 }
  0x9c   :  { %v10928_v54 = vunpack.i.h.bf16 %v6812_v40  ;;  %v10927_v50 = vunpack.i.l.bf16 %v6814_v59  ;;  %v949_v15 = vrot.slane %v663_v36, 2  ;;  %v696_v51 = vpack.c.bf16 %v692_v6, %v692_v6 }
  0x9d   :  { %v695_v37 = vpack.c.bf16 %v693_v49, %v693_v49  ;;  %v948_v6 = vrot.slane %v6818_v0, 2  ;;  %v11227_v56 = vrot.slane %v6700_v11, 7  ;;  %v11228_v0 = vunpack.i.l.bf16 %v6656_v44 }
  0x9e   :  { %v765_v30 = vsel %vm759_vm12, %v10928_v54, %v10927_v50  ;;  %v1069_v55 = vsel %vm1065_vm13, %v1052_v52, %v949_v15  ;;  %v736_v57 = vmul.bf16 %v6444_v29, %v696_v51 }
  0x9f   :  { %v6846_v21 = vpop.permute.xlu0 %5120  ;;  %v6848_v36 = vpop.permute.xlu1 %5125  ;;  %v975_v5 = vsel %vm972_vm1, %v265_v20, %v11227_v56  ;;  %v769_v50 = vpack.c.bf16 %v765_v30, %v765_v30  ;;  %v735_v49 = vmul.bf16 %v6451_v10, %v695_v37  ;;  %v11229_v20 = vunpack.i.h.bf16 %v6656_v44 }
  0xa0   :  { %v10931_v18 = vunpack.i.h.bf16 %v6846_v21  ;;  %v10932_v23 = vunpack.i.l.bf16 %v6846_v21  ;;  %v10938_v34 = vunpack.i.h.bf16 %v6848_v36  ;;  %v10937_v54 = vunpack.i.l.bf16 %v6848_v36 }
  0xa1   :  { %v11230_v30 = vunpack.i.l.bf16 %v6681_v63  ;;  %v11231_v37 = vrot.slane %v6729_v13, 6  ;;  %v11232_v44 = vunpack.i.h.bf16 %v6681_v63 }
  0xa2   :  { %v290_v11 = vsel %vm289_vm2, %v10931_v18, %v11228_v0  ;;  %v294_v52 = vsel %vm289_vm2, %v11229_v20, %v10932_v23 }
  0xa3   :  { %v387_v51 = vsel %vm386_vm3, %v10938_v34, %v11230_v30  ;;  %v999_v15 = vsel %vm997_vm6, %v975_v5, %v11231_v37  ;;  %v305_v56 = vpack.c.bf16 %v290_v11, %v290_v11  ;;  %v301_v0 = vpack.c.bf16 %v294_v52, %v294_v52  ;;  %v6888_v23 = vpop.permute.xlu0 %5130  ;;  %v6890_v10 = vpop.permute.xlu1 %5135 }
  0xa4   :  { %v402_v18 = vpack.c.bf16 %v387_v51, %v387_v51  ;;  %v391_v20 = vsel %vm386_vm3, %v11232_v44, %v10937_v54  ;;  %v965_v30 = vrot.slane %v736_v57, 1  ;;  %v10939_v13 = vunpack.i.h.bf16 %v6888_v23 }
  0xa5   :  { %v398_v29 = vpack.c.bf16 %v391_v20, %v391_v20  ;;  %v10946_v5 = vunpack.i.l.bf16 %v6888_v23  ;;  %v369_v11 = vmul.bf16 %v6459_v22, %v305_v56  ;;  %v365_v52 = vmul.bf16 %v6455_v47, %v301_v0 }
  0xa6   :  { %v6897_v51 = vmul.bf16 %v6467_v48, %v402_v18  ;;  %v1087_v37 = vsel %vm1082_vm14, %v1069_v55, %v965_v30  ;;  %v11233_v44 = vunpack.i.l.bf16 %v6715_v38  ;;  %v11234_v56 = vunpack.i.h.bf16 %v6715_v38 }
  0xa7   :  { %v11235_v18 = vrot.slane %v6756_v14, 5  ;;  %v875_v54 = vrot.slane %v369_v11, 7  ;;  %v871_v55 = vrot.slane %v365_v52, 7  ;;  %v6917_v30 = vmul.bf16 %v6463_v7, %v398_v29  ;;  %1172 = vmatprep.subr.bf16.mxu1 %v1087_v37  ;;  %v6919_v63 = vpop.permute.xlu0 %5140 }
  0xa8   :  { %v173_v57 = vsel %vm172_vm4, %v10939_v13, %v11233_v44  ;;  %v177_v0 = vsel %vm172_vm4, %v11234_v56, %v10946_v5  ;;  %v6921_v44 = vpop.permute.xlu1 %5145  ;;  %v11236_v56 = vunpack.i.l.bf16 %v6713_v17  ;;  %v11237_v14 = vunpack.i.h.bf16 %v6890_v10 }
  0xa9   :  { %v1016_v20 = vsel %vm1014_vm8, %v999_v15, %v11235_v18  ;;  %v188_v34 = vpack.c.bf16 %v173_v57, %v173_v57  ;;  %v184_v13 = vpack.c.bf16 %v177_v0, %v177_v0  ;;  %v10942_v11 = vunpack.i.l.bf16 %v6890_v10 }
  0xaa   :  { %v460_v15 = vsel %vm459_vm5, %v11237_v14, %v11236_v56  ;;  %v964_v37 = vrot.slane %v735_v49, 1  ;;  %v1033_v57 = vsel %vm1031_vm10, %v1016_v20, %v6516_v25  ;;  %v11238_v0 = vunpack.i.h.bf16 %v6713_v17 }
  0xab   :  { %v272_v29 = vmul.bf16 %v6485_v16, %v188_v34  ;;  %v475_v52 = vpack.c.bf16 %v460_v15, %v460_v15  ;;  %v268_v18 = vmul.bf16 %v6481_v9, %v184_v13  ;;  %v11239_v56 = vrot.slane %v6792_v35, 3  ;;  %v6950_v20 = vpop.permute.xlu0 %5150 }
  0xac   :  { %v464_v38 = vsel %vm459_vm5, %v11238_v0, %v10942_v11  ;;  %v853_v34 = vmul.bf16 %v6519_v46, %v769_v50  ;;  %v10940_v35 = vunpack.i.h.bf16 %v6919_v63  ;;  %v11245_v49 = vunpack.i.l.bf16 %v6764_v41  ;;  %v11247_v11 = vld [vmem:[#allocation34_spill] sm:$0xff] }
  0xad   :  { %v1050_v14 = vsel %vm1048_vm0, %v1033_v57, %v11239_v56  ;;  %v6947_v15 = vmul.bf16 %v6506_v61, %v475_v52  ;;  %v471_v25 = vpack.c.bf16 %v464_v38, %v464_v38  ;;  %v6953_v17 = vsel %vm972_vm1, %v272_v29, %v875_v54  ;;  %v6966_v54 = vpop.permute.xlu1 %5155 }
  0xae   :  { %v1067_v13 = vsel %vm1065_vm13, %v1050_v14, %v948_v6  ;;  %v10941_v57 = vunpack.i.l.bf16 %v6919_v63  ;;  %v6959_v50 = vsel %vm972_vm1, %v268_v18, %v871_v55  ;;  %v10944_v6 = vunpack.i.h.bf16 %v6921_v44 }
  0xaf   :  { %v1084_v0 = vsel %vm1082_vm14, %v1067_v13, %v964_v37  ;;  %v6962_v52 = vmul.bf16 %v6502_v2, %v471_v25  ;;  %v10943_v38 = vunpack.i.l.bf16 %v6921_v44  ;;  %v11240_v29 = vunpack.i.h.bf16 %v6739_v31 }
  0xb0   :  { %1173 = vmatpush1.bf16.msra.mxu1 %v1084_v0  ;;  %v11241_v37 = vunpack.i.l.bf16 %v6739_v31  ;;  %v11242_v56 = vunpack.i.h.bf16 %v6812_v40  ;;  %v11243_v14 = vunpack.i.l.bf16 %v6812_v40  ;;  %v10945_v25 = vunpack.i.h.bf16 %v6950_v20 }
  0xb1   :  { %4860 = vmatprep.subr.msk.bf16.mxu1 %vm972_vm1, %v853_v34  ;;  %v544_v55 = vsel %vm540_vm7, %v11240_v29, %v10941_v57  ;;  %v11244_v31 = vunpack.i.h.bf16 %v6764_v41  ;;  %v11248_v41 = vunpack.i.l.bf16 %v6788_v19 }
  0xb2   :  { %v548_v18 = vsel %vm540_vm7, %v10940_v35, %v11241_v37  ;;  %v766_v34 = vsel %vm759_vm12, %v11243_v14, %v11242_v56  ;;  %v552_v0 = vpack.c.bf16 %v544_v55, %v544_v55  ;;  %v5161_v35 = vpop.permute.xlu0 %5160  ;;  %v7004_v56 = vsel %vm613_vm9, %v10944_v6, %v11245_v49  ;;  %v11246_v14 = vld [vmem:[#allocation33_spill] sm:$0xff] }
  0xb3   :  { %v556_v29 = vpack.c.bf16 %v548_v18, %v548_v18  ;;  %v6995_v37 = vsel %vm613_vm9, %v11244_v31, %v10943_v38  ;;  %v768_v55 = vpack.c.bf16 %v766_v34, %v766_v34  ;;  %v10949_v18 = vunpack.i.l.bf16 %v6950_v20 }
  0xb4   :  { %v7008_v13 = vmul.bf16 %v11246_v14, %v552_v0  ;;  %v625_v38 = vpack.c.bf16 %v6995_v37, %v6995_v37  ;;  %v7021_v49 = vsel %vm686_vm11, %v10945_v25, %v11248_v41  ;;  %v5163_v25 = vunpack.i.h.bf16 %v5161_v35 }
  0xb5   :  { %v7011_v31 = vmul.bf16 %v11247_v11, %v556_v29  ;;  %v852_v0 = vmul.bf16 %v6522_v4, %v768_v55  ;;  %v11249_v29 = vunpack.i.h.bf16 %v6788_v19  ;;  %v5162_v5 = vunpack.i.l.bf16 %v5161_v35  ;;  %v5166_v11 = vpop.permute.xlu1 %5165  ;;  %v7040_v55 = vld [vmem:[%s10832_s5] sm:$0xff]  }
  0xb6   :  { %v5168_v61 = vunpack.i.h.bf16 %v5166_v11  ;;  %v11250_v6 = vunpack.i.h.bf16 %v6846_v21  ;;  %v11254_v4 = vunpack.i.h.bf16 %v6848_v36  ;;  %v11258_v14 = vmov 0  }
  0xb7   :  { %v690_v37 = vsel %vm686_vm11, %v11249_v29, %v10949_v18  ;;  %v1149_v34 = vsel %vm972_vm1, %v852_v0, 0  ;;  %v5167_v29 = vunpack.i.l.bf16 %v5166_v11  ;;  %v5171_v18 = vpop.permute.xlu0 %5170  ;;  %v292_v35 = vsel %vm289_vm2, %v5163_v25, %v5162_v5 }
  0xb8   :  { %v698_v19 = vpack.c.bf16 %v690_v37, %v690_v37  ;;  %1175 = vmatpush1.bf16.msra.mxu1 %v1149_v34  ;;  %v291_v57 = vsel %vm289_vm2, %v5162_v5, %v11250_v6  ;;  %v11251_v0 = vunpack.i.l.bf16 %v6846_v21  ;;  %v5173_v48 = vunpack.i.h.bf16 %v5171_v18 }
  0xb9   :  { %v11252_v37 = vunpack.i.l.bf16 %v6966_v54  ;;  %v11253_v11 = vunpack.i.h.bf16 %v6814_v59  ;;  %v303_v16 = vpack.c.bf16 %v292_v35, %v292_v35  ;;  %v304_v6 = vpack.c.bf16 %v291_v57, %v291_v57  ;;  %v11256_v57 = vld [vmem:[#allocation40_spill] sm:$0xff] }
  0xba   :  { %v293_v41 = vsel %vm289_vm2, %v11251_v0, %v5163_v25  ;;  %v388_v21 = vsel %vm386_vm3, %v5167_v29, %v11254_v4  ;;  %v389_v5 = vsel %vm386_vm3, %v5168_v61, %v5167_v29  ;;  %v11255_v25 = vunpack.i.l.bf16 %v6848_v36 }
  0xbb   :  { %v7058_v34 = vsel %vm759_vm12, %v11253_v11, %v11252_v37  ;;  %v302_v22 = vpack.c.bf16 %v293_v41, %v293_v41  ;;  %v5172_v46 = vunpack.i.l.bf16 %v5171_v18  ;;  %4861 = vmatmul.mubr.msk.bf16.vlgmr.msra.gmra.mrb[0].mxu1 %vm1141_vm15, %v7040_v55  ;;  %v7076_v35 = vmul.bf16 %v11256_v57, %v303_v16  ;;  %v11257_v37 = vld [vmem:[#allocation39_spill] sm:$0xff] }
  0xbc   :  { %v390_v0 = vsel %vm386_vm3, %v11255_v25, %v5168_v61  ;;  %v368_v4 = vmul.bf16 %v11257_v37, %v304_v6  ;;  %v400_v60 = vpack.c.bf16 %v389_v5, %v389_v5  ;;  %v401_v29 = vpack.c.bf16 %v388_v21, %v388_v21  ;;  %1214 = vmatprep.mubr.bf16.mxu1 %v11258_v14  ;;  %v11260_v25 = vld [vmem:[#allocation41_spill] sm:$0xff]  ;;  %v11261_v21 = vld [vmem:[#allocation42_spill] sm:$0xff]  ;;  %v11262_v37 = vld [vmem:[#allocation43_spill] sm:$0xff] }
  0xbd   :  { %v7073_v41 = vmul.bf16 %v6530_v8, %v302_v22  ;;  %v399_v11 = vpack.c.bf16 %v390_v0, %v390_v0  ;;  %v11259_v36 = vunpack.i.h.bf16 %v6888_v23  ;;  %v175_v18 = vsel %vm172_vm4, %v5173_v48, %v5172_v46  ;;  %v5176_v22 = vpop.permute.xlu1 %5175  ;;  %v7106_v16 = vld [vmem:[%s10832_s5 + $0x8] sm:$0xff]  }
  0xbe   :  { %v7094_v0 = vmul.bf16 %v11261_v21, %v400_v60  ;;  %v7097_v57 = vmul.bf16 %v11262_v37, %v401_v29  ;;  %v186_v8 = vpack.c.bf16 %v175_v18, %v175_v18  ;;  %v874_v2 = vrot.slane %v368_v4, 7  ;;  %v11264_v21 = vld [vmem:[#allocation45_spill] sm:$0xff]  ;;  %v11265_v18 = vld [vmem:[#allocation46_spill] sm:$0xff] }
  0xbf   :  { %v174_v61 = vsel %vm172_vm4, %v5172_v46, %v11259_v36  ;;  %v7091_v5 = vmul.bf16 %v11260_v25, %v399_v11  ;;  %v11263_v36 = vunpack.i.l.bf16 %v6888_v23  ;;  %v5178_v60 = vunpack.i.h.bf16 %v5176_v22 }
  0xc0   :  { %v187_v6 = vpack.c.bf16 %v174_v61, %v174_v61  ;;  %v5177_v37 = vunpack.i.l.bf16 %v5176_v22  ;;  %v665_v61 = vmul.bf16 %v6576_v62, %v625_v38  ;;  %v935_v38 = vrot.slane %v7008_v13, 3 }
  0xc1   :  { %v176_v46 = vsel %vm172_vm4, %v11263_v36, %v5173_v48  ;;  %v7112_v48 = vmul.bf16 %v11264_v21, %v186_v8  ;;  %v11266_v36 = vunpack.i.l.bf16 %v6890_v10  ;;  %v738_v8 = vmul.bf16 %v6586_v33, %v698_v19  ;;  %v5181_v19 = vpop.permute.xlu0 %5180 }
  0xc2   :  { %v185_v11 = vpack.c.bf16 %v176_v46, %v176_v46  ;;  %v271_v4 = vmul.bf16 %v11265_v18, %v187_v6  ;;  %v11267_v46 = vunpack.i.h.bf16 %v6890_v10  ;;  %v462_v22 = vsel %vm459_vm5, %v5178_v60, %v5177_v37  ;;  %v11268_v6 = vld [vmem:[#allocation44_spill] sm:$0xff] }
  0xc3   :  { %v463_v12 = vsel %vm459_vm5, %v11266_v36, %v5178_v60  ;;  %4862 = vmatmul.mubr.msk.bf16.gmra.mrb[4].mxu1 %vm1141_vm15, %v7106_v16  ;;  %v473_v36 = vpack.c.bf16 %v462_v22, %v462_v22  ;;  %v967_v21 = vrot.slane %v738_v8, 1  ;;  %v11270_v60 = vld [vmem:[#allocation48_spill] sm:$0xff]  ;;  %v11271_v22 = vld [vmem:[#allocation49_spill] sm:$0xff]  ;;  %v11272_v13 = vrot.slane %v6962_v52, 5  ;;  %v5186_v8 = vpop.permute.xlu1 %5185 }
  0xc4   :  { %v461_v25 = vsel %vm459_vm5, %v5177_v37, %v11267_v46  ;;  %v472_v23 = vpack.c.bf16 %v463_v12, %v463_v12  ;;  %v7130_v29 = vmul.bf16 %v11268_v6, %v185_v11  ;;  %v951_v46 = vrot.slane %v665_v61, 2  ;;  %1257 = vmatprep.mubr.bf16.mxu1 %v11258_v14 }
  0xc5   :  { %v474_v18 = vpack.c.bf16 %v461_v25, %v461_v25  ;;  %v11269_v37 = vrot.slane %v6917_v30, 6  ;;  %v7142_v11 = vmul.bf16 %v11270_v60, %v473_v36  ;;  %v5183_v61 = vunpack.i.h.bf16 %v5181_v19 }
  0xc6   :  { %v7134_v10 = vmul.bf16 %v6566_v3, %v472_v23  ;;  %v7151_v30 = vsel %vm972_vm1, %v271_v4, %v874_v2  ;;  %v5188_v3 = vunpack.i.h.bf16 %v5186_v8  ;;  %v11273_v52 = vunpack.i.l.bf16 %v6919_v63 }
  0xc7   :  { %v1005_v12 = vsel %vm997_vm6, %v6959_v50, %v11269_v37  ;;  %v7145_v25 = vmul.bf16 %v11271_v22, %v474_v18  ;;  %v5182_v37 = vunpack.i.l.bf16 %v5181_v19  ;;  %v11275_v2 = vunpack.i.l.bf16 %v6921_v44 }
  0xc8   :  { %v1022_v23 = vsel %vm1014_vm8, %v1005_v12, %v11272_v13  ;;  %v7162_v12 = vsel %vm540_vm7, %v11273_v52, %v5183_v61  ;;  %v5187_v52 = vunpack.i.l.bf16 %v5186_v8 }
  0xc9   :  { %v1039_v50 = vsel %vm1031_vm10, %v1022_v23, %v6596_v39  ;;  %v11274_v39 = vunpack.i.h.bf16 %v6919_v63  ;;  %v542_v13 = vsel %vm540_vm7, %v5183_v61, %v5182_v37  ;;  %v7179_v63 = vsel %vm613_vm9, %v11275_v2, %v5188_v3  ;;  %v11282_v23 = vld [vmem:[#allocation54_spill] sm:$0xff] }
  0xca   :  { %v1056_v18 = vsel %vm1048_vm0, %v1039_v50, %v935_v38  ;;  %v554_v36 = vpack.c.bf16 %v542_v13, %v542_v13  ;;  %v615_v2 = vsel %vm613_vm9, %v5188_v3, %v5187_v52  ;;  %v7199_v13 = vpop.permute.xlu0 %5190 }
  0xcb   :  { %v1073_v4 = vsel %vm1065_vm13, %v1056_v18, %v951_v46  ;;  %v541_v19 = vsel %vm540_vm7, %v5182_v37, %v11274_v39  ;;  %v11276_v46 = vpack.c.bf16 %v6824_v58, %v6824_v58  ;;  %v11277_v18 = vld [vmem:[#allocation37_spill] sm:$0xff]  ;;  %v11280_v39 = vunpack.i.h.bf16 %v6921_v44  ;;  %v7206_v44 = vpop.permute.xlu1 %5195 }
  0xcc   :  { %v1093_v38 = vsel %vm1082_vm14, %v1073_v4, %v967_v21  ;;  %v555_v50 = vpack.c.bf16 %v541_v19, %v541_v19  ;;  %v11278_v21 = vrot.slane %v6723_v53, 6  ;;  %v11279_v4 = vld [vmem:[#allocation52_spill] sm:$0xff]  ;;  %v950_v58 = vrot.slane %v6810_v43, 2 }
  0xcd   :  { %1225 = vmatprep.subr.bf16.mxu1 %v1093_v38  ;;  %v737_v61 = vmul.bf16 %v11277_v18, %v11276_v46  ;;  %v614_v19 = vsel %vm613_vm9, %v5187_v52, %v11280_v39  ;;  %v627_v39 = vpack.c.bf16 %v615_v2, %v615_v2  ;;  %v11283_v43 = vpack.c.bf16 %v7058_v34, %v7058_v34  ;;  %v11284_v52 = vld [vmem:[#allocation60_spill] sm:$0xff] }
  0xce   :  { %v1003_v37 = vsel %vm997_vm6, %v6783_v45, %v11278_v21  ;;  %v7190_v8 = vmul.bf16 %v11279_v4, %v555_v50  ;;  %v628_v38 = vpack.c.bf16 %v614_v19, %v614_v19  ;;  %v11281_v50 = vrot.slane %v6753_v24, 5  ;;  %v11301_v4 = vld [vmem:[#allocation59_spill] sm:$0xff] }
  0xcf   :  { %v966_v45 = vrot.slane %v737_v61, 1  ;;  %v855_v60 = vmul.bf16 %v11284_v52, %v11283_v43  ;;  %v11285_v19 = vrot.slane %v6786_v28, 3  ;;  %v5193_v24 = vunpack.i.h.bf16 %v7199_v13 }
  0xd0   :  { %v1020_v46 = vsel %vm1014_vm8, %v1003_v37, %v11281_v50  ;;  %v938_v21 = vrot.slane %v7190_v8, 3  ;;  %v5192_v37 = vunpack.i.l.bf16 %v7199_v13  ;;  %v11287_v34 = vunpack.i.l.bf16 %v6814_v59 }
  0xd1   :  { %v1037_v3 = vsel %vm1031_vm10, %v1020_v46, %v11282_v23  ;;  %v11286_v23 = vunpack.i.h.bf16 %v6814_v59  ;;  %v11288_v28 = vpack.c.bf16 %v7004_v56, %v7004_v56  ;;  %v11292_v50 = vunpack.i.h.bf16 %v6966_v54 }
  0xd2   :  { %v1054_v61 = vsel %vm1048_vm0, %v1037_v3, %v11285_v19  ;;  %v11289_v3 = vld [vmem:[#allocation55_spill] sm:$0xff]  ;;  %v11290_v19 = vld [vmem:[#allocation53_spill] sm:$0xff] }
  0xd3   :  { %v1071_v8 = vsel %vm1065_vm13, %v1054_v61, %v950_v58  ;;  %v764_v46 = vsel %vm759_vm12, %v11287_v34, %v11286_v23  ;;  %v669_v43 = vmul.bf16 %v11289_v3, %v11288_v28  ;;  %v668_v13 = vmul.bf16 %v11290_v19, %v628_v38 }
  0xd4   :  { %v1090_v53 = vsel %vm1082_vm14, %v1071_v8, %v966_v45  ;;  %v11291_v58 = vunpack.i.h.bf16 %v6950_v20  ;;  %v770_v2 = vpack.c.bf16 %v764_v46, %v764_v46  ;;  %v11293_v23 = vunpack.i.h.bf16 %v7206_v44 }
  0xd5   :  { %1226 = vmatpush1.bf16.msra.mxu1 %v1090_v53  ;;  %v11294_v38 = vunpack.i.l.bf16 %v6812_v40  ;;  %v11295_v45 = vunpack.i.l.bf16 %v7206_v44  ;;  %v11296_v34 = vpack.c.bf16 %v7021_v49, %v7021_v49  ;;  %v11297_v53 = vld [vmem:[#allocation56_spill] sm:$0xff]  ;;  %v11299_v40 = vrot.slane %v6897_v51, 6 }
  0xd6   :  { %v687_v61 = vsel %vm686_vm11, %v5192_v37, %v11291_v58  ;;  %v7245_v56 = vsel %vm759_vm12, %v11293_v23, %v11292_v50  ;;  %4863 = vmatprep.subr.msk.bf16.mxu1 %vm972_vm1, %v855_v60  ;;  %v11298_v58 = vld [vmem:[#allocation61_spill] sm:$0xff]  ;;  %v939_v50 = vrot.slane %v7011_v31, 3  ;;  %v955_v23 = vrot.slane %v669_v43, 2 }
  0xd7   :  { %v701_v59 = vpack.c.bf16 %v687_v61, %v687_v61  ;;  %v767_v8 = vsel %vm759_vm12, %v11295_v45, %v11294_v38  ;;  %v742_v46 = vmul.bf16 %v11297_v53, %v11296_v34  ;;  %v854_v61 = vmul.bf16 %v11298_v58, %v770_v2  ;;  %v11300_v38 = vld [vmem:[#allocation58_spill] sm:$0xff] }
  0xd8   :  { %v775_v28 = vpack.c.bf16 %v767_v8, %v767_v8  ;;  %v1013_v3 = vsel %vm997_vm6, %v6953_v17, %v11299_v40  ;;  %v594_v45 = vmul.bf16 %v11300_v38, %v554_v36  ;;  %v667_v49 = vmul.bf16 %v11301_v4, %v627_v39  ;;  %v11304_v17 = vld [vmem:[#allocation57_spill] sm:$0xff]  ;;  %v11306_v40 = vld [vmem:[#allocation64_spill] sm:$0xff]  ;;  %v11307_v53 = vld [vmem:[#allocation62_spill] sm:$0xff] }
  0xd9   :  { %v971_v19 = vrot.slane %v742_v46, 1  ;;  %v1155_v34 = vsel %vm972_vm1, %v854_v61, 0  ;;  %v11302_v60 = vrot.slane %v6947_v15, 5  ;;  %v688_v31 = vsel %vm686_vm11, %v5193_v24, %v5192_v37 }
  0xda   :  { %v11303_v2 = vrot.slane %v7076_v35, 7  ;;  %1228 = vmatpush1.bf16.msra.mxu1 %v1155_v34  ;;  %v700_v43 = vpack.c.bf16 %v688_v31, %v688_v31  ;;  %v937_v39 = vrot.slane %v594_v45, 3  ;;  %v953_v46 = vrot.slane %v667_v49, 2 }
  0xdb   :  { %v1030_v8 = vsel %vm1014_vm8, %v1013_v3, %v11302_v60  ;;  %v11305_v15 = vrot.slane %v7094_v0, 6  ;;  %v741_v37 = vmul.bf16 %v11306_v40, %v701_v59  ;;  %v954_v60 = vrot.slane %v668_v13, 2  ;;  %v11310_v59 = vld [vmem:[#allocation63_spill] sm:$0xff] }
  0xdc   :  { %v990_v51 = vsel %vm972_vm1, %v7112_v48, %v11303_v2  ;;  %v1047_v36 = vsel %vm1031_vm10, %v1030_v8, %v11304_v17  ;;  %v740_v48 = vmul.bf16 %v11307_v53, %v700_v43  ;;  %v11308_v34 = vrot.slane %v7142_v11, 5 }
  0xdd   :  { %v1064_v61 = vsel %vm1048_vm0, %v1047_v36, %v939_v50  ;;  %v1009_v3 = vsel %vm997_vm6, %v990_v51, %v11305_v15  ;;  %v11309_v45 = vrot.slane %v7097_v57, 6  ;;  %4864 = vmatmul.mubr.msk.bf16.vlgmr.msra.gmra.mrb[8].mxu1 %vm1141_vm15, %v7040_v55  ;;  %v11311_v49 = vrot.slane %v7145_v25, 5  ;;  %v11314_v51 = vld [vmem:[#allocation66_spill] sm:$0xff] }
  0xde   :  { %v1081_v35 = vsel %vm1065_vm13, %v1064_v61, %v955_v23  ;;  %v1026_v8 = vsel %vm1014_vm8, %v1009_v3, %v11308_v34  ;;  %v970_v23 = vrot.slane %v741_v37, 1  ;;  %1267 = vmatprep.mubr.bf16.mxu1 %v11258_v14  ;;  %v969_v57 = vrot.slane %v740_v48, 1  ;;  %v11316_v61 = vld [vmem:[#allocation67_spill] sm:$0xff] }
  0xdf   :  { %v1011_v50 = vsel %vm997_vm6, %v7151_v30, %v11309_v45  ;;  %v1105_v0 = vsel %vm1082_vm14, %v1081_v35, %v971_v19  ;;  %v1043_v13 = vsel %vm1031_vm10, %v1026_v8, %v11310_v59  ;;  %v11312_v30 = vld [vmem:[#allocation65_spill] sm:$0xff]  ;;  %v11313_v2 = vpack.c.bf16 %v7162_v12, %v7162_v12 }
  0xe0   :  { %v1028_v11 = vsel %vm1014_vm8, %v1011_v50, %v11311_v49  ;;  %1331 = vmatprep.subr.bf16.mxu1 %v1105_v0  ;;  %v1060_v31 = vsel %vm1048_vm0, %v1043_v13, %v937_v39  ;;  %v11315_v43 = vpack.c.bf16 %v7179_v63, %v7179_v63  ;;  %v11317_v3 = vunpack.i.l.bf16 %v6950_v20 }
  0xe1   :  { %v1045_v19 = vsel %vm1031_vm10, %v1028_v11, %v11312_v30  ;;  %v593_v17 = vmul.bf16 %v11314_v51, %v11313_v2  ;;  %v1077_v36 = vsel %vm1065_vm13, %v1060_v31, %v953_v46  ;;  %v773_v37 = vpack.c.bf16 %v7245_v56, %v7245_v56  ;;  %v11326_v11 = vld [vmem:[#allocation69_spill] sm:$0xff] }
  0xe2   :  { %v1062_v25 = vsel %vm1048_vm0, %v1045_v19, %v938_v21  ;;  %v666_v15 = vmul.bf16 %v11316_v61, %v11315_v43  ;;  %v689_v39 = vsel %vm686_vm11, %v11317_v3, %v5193_v24  ;;  %v1099_v12 = vsel %vm1082_vm14, %v1077_v36, %v969_v57  ;;  %v11319_v24 = vld [vmem:[#allocation68_spill] sm:$0xff] }
  0xe3   :  { %v1079_v35 = vsel %vm1065_vm13, %v1062_v25, %v954_v60  ;;  %v699_v46 = vpack.c.bf16 %v689_v39, %v689_v39  ;;  %1278 = vmatprep.subr.bf16.mxu0 %v1099_v12  ;;  %v936_v48 = vrot.slane %v593_v17, 3  ;;  %v11318_v63 = vrot.slane %v7073_v41, 7 }
  0xe4   :  { %v1102_v21 = vsel %vm1082_vm14, %v1079_v35, %v970_v23  ;;  %v859_v34 = vmul.bf16 %v6668_v1, %v775_v28  ;;  %v952_v56 = vrot.slane %v666_v15, 2  ;;  %v11320_v45 = vrot.slane %v7091_v5, 6 }
  0xe5   :  { %v987_v20 = vsel %vm972_vm1, %v7130_v29, %v11318_v63  ;;  %1332 = vmatpush1.bf16.msra.mxu1 %v1102_v21  ;;  %v739_v8 = vmul.bf16 %v11319_v24, %v699_v46  ;;  %v11321_v50 = vunpack.i.h.bf16 %v7206_v44  ;;  %v11322_v0 = vunpack.i.l.bf16 %v6966_v54 }
  0xe6   :  { %v1007_v60 = vsel %vm997_vm6, %v987_v20, %v11320_v45  ;;  %v11323_v59 = vrot.slane %v7134_v10, 5  ;;  %4869 = vmatprep.subr.msk.bf16.mxu1 %vm972_vm1, %v859_v34  ;;  %v11324_v13 = vunpack.i.l.bf16 %v7206_v44  ;;  %v11325_v5 = vunpack.i.h.bf16 %v6966_v54  ;;  %4865 = vmatmul.mubr.msk.bf16.gmra.mrb[12].mxu1 %vm1141_vm15, %v7106_v16 }
  0xe7   :  { %v762_v41 = vsel %vm759_vm12, %v11322_v0, %v11321_v50  ;;  %v968_v49 = vrot.slane %v739_v8, 1  ;;  %v857_v30 = vmul.bf16 %v6684_v32, %v773_v37  ;;  %1363 = vmatprep.mubr.bf16.mxu1 %v11258_v14 }
  0xe8   :  { %v1024_v29 = vsel %vm1014_vm8, %v1007_v60, %v11323_v59  ;;  %v772_v28 = vpack.c.bf16 %v762_v41, %v762_v41  ;;  %v760_v23 = vsel %vm759_vm12, %v11325_v5, %v11324_v13  ;;  %v7372_v25 = vpop.permute.xlu0 %1113 }
  0xe9   :  { %v1041_v57 = vsel %vm1031_vm10, %v1024_v29, %v11326_v11  ;;  %v774_v31 = vpack.c.bf16 %v760_v23, %v760_v23 }
  0xea   :  { %v1058_v10 = vsel %vm1048_vm0, %v1041_v57, %v936_v48  ;;  %v856_v19 = vmul.bf16 %v6687_v42, %v772_v28  ;;  %v7375_v39 = vpop.permute.xlu1 %1118 }
  0xeb   :  { %v1075_v44 = vsel %vm1065_vm13, %v1058_v10, %v952_v56  ;;  %v858_v54 = vmul.bf16 %v6697_v27, %v774_v31 }
  0xec   :  { %v1096_v2 = vsel %vm1082_vm14, %v1075_v44, %v968_v49  ;;  %v1161_v36 = vsel %vm972_vm1, %v856_v19, 0 }
  0xed   :  { %1279 = vmatpush1.bf16.msra.mxu0 %v1096_v2  ;;  %v1167_v17 = vsel %vm972_vm1, %v858_v54, 0  ;;  %v7399_v29 = vpop.permute.xlu0 %1128 }
  0xee   :  { %4866 = vmatprep.subr.msk.bf16.mxu0 %vm972_vm1, %v857_v30  ;;  %1334 = vmatpush1.bf16.msra.mxu1 %v1167_v17  ;;  %v7386_v56 = vpop.permute.xlu1 %1123 }
  0xf1   :  { %1281 = vmatpush1.bf16.msra.mxu0 %v1161_v36  ;;  %4870 = vmatmul.mubr.msk.bf16.vlgmr.msra.gmra.mrb[16].mxu1 %vm1141_vm15, %v7040_v55 }
  0xf2   :  { %1373 = vmatprep.mubr.bf16.mxu1 %v11258_v14 }
  0xf4   :  { %4867 = vmatmul.mubr.msk.bf16.vlgmr.msra.gmra.mrb[0].mxu0 %vm1141_vm15, %v7040_v55 }
  0xf5   :  { %1320 = vmatprep.mubr.bf16.mxu0 %v11258_v14 }
  0xf9   :  { %4871 = vmatmul.mubr.msk.bf16.gmra.mrb[20].mxu1 %vm1141_vm15, %v7106_v16 }
  0xfc   :  { %4868 = vmatmul.mubr.msk.bf16.gmra.mrb[4].mxu0 %vm1141_vm15, %v7106_v16 }
 0x18e   :  { %v1206_v43 = vpop.f32.mrb[0].mxu1 }
 0x18f   :  { %v1207_v15 = vadd.f32 %v1206_v43, %v7372_v25  ;;  %v1208_v3 = vpop.f32.mrb[1].mxu1 }
 0x190   :  { %v1209_v37 = vadd.f32 %v1208_v3, %v7372_v25  ;;  %v1210_v12 = vpop.f32.mrb[2].mxu1 }
 0x191   :  { %v1416_v55 = vmul.f32 0.1, %v1207_v15  ;;  %v1211_v35 = vadd.f32 %v1210_v12, %v7375_v39  ;;  %v1212_v46 = vpop.f32.mrb[3].mxu1  ;;  %vm1384_vm0 = vcmp.gt.f32.partialorder %v1207_v15, 0.0 }
 0x192   :  { %vm1385_vm1 = vcmp.gt.f32.partialorder %v1209_v37, 0.0  ;;  %v1417_v21 = vmul.f32 0.1, %v1209_v37  ;;  %v1213_v16 = vadd.f32 %v1212_v46, %v7375_v39 }
 0x193   :  { %vm1392_vm6 = vcmp.gt.f32.partialorder %v1211_v35, 0.0  ;;  %v1424_v48 = vmul.f32 0.1, %v1211_v35  ;;  %v7380_v20 = vsel %vm1384_vm0, %v1207_v15, %v1416_v55 }
 0x194   :  { %vm1393_vm8 = vcmp.gt.f32.partialorder %v1213_v16, 0.0  ;;  %v1425_v63 = vmul.f32 0.1, %v1213_v16  ;;  %11327 = vst [vmem:[#allocation54_spill] sm:$0xff] %v7380_v20  ;;  %v7382_v34 = vsel %vm1385_vm1, %v1209_v37, %v1417_v21 }
 0x195   :  { %11328 = vst [vmem:[#allocation57_spill] sm:$0xff] %v7382_v34  ;;  %v7384_v8 = vsel %vm1392_vm6, %v1211_v35, %v1424_v48 }
 0x196   :  { %11329 = vst [vmem:[#allocation63_spill] sm:$0xff] %v7384_v8  ;;  %v7388_v45 = vsel %vm1393_vm8, %v1213_v16, %v1425_v63  ;;  %v1216_v60 = vpop.f32.mrb[4].mxu1  ;;  %v7392_v50 = vpack.i.bf16 %v7384_v8, %v7380_v20 }
 0x197   :  { %11330 = vst [vmem:[#allocation65_spill] sm:$0xff] %v7388_v45  ;;  %v1217_v0 = vadd.f32 %v1216_v60, %v7386_v56  ;;  %v1218_v41 = vpop.f32.mrb[5].mxu1  ;;  %v7397_v59 = vpack.i.bf16 %v7388_v45, %v7382_v34 }
 0x198   :  { %v1219_v28 = vadd.f32 %v1218_v41, %v7386_v56  ;;  %v1220_v13 = vpop.f32.mrb[6].mxu1  ;;  %5202 = vrot.lane.b32.xlu1 %v7392_v50, %s5940_s18 }
 0x199   :  { %vm1400_vm10 = vcmp.gt.f32.partialorder %v1217_v0, 0.0  ;;  %v1432_v5 = vmul.f32 0.1, %v1217_v0  ;;  %v1221_v23 = vadd.f32 %v1220_v13, %v7399_v29  ;;  %v1222_v49 = vpop.f32.mrb[7].mxu1  ;;  %5232 = vrot.lane.b32.xlu0 %v7397_v59, %s5940_s18 }
 0x19a   :  { %vm1401_vm13 = vcmp.gt.f32.partialorder %v1219_v28, 0.0  ;;  %v1433_v11 = vmul.f32 0.1, %v1219_v28  ;;  %v1223_v57 = vadd.f32 %v1222_v49, %v7399_v29 }
 0x19b   :  { %v7408_v31 = vsel %vm1400_vm10, %v1217_v0, %v1432_v5  ;;  %vm1408_vm14 = vcmp.gt.f32.partialorder %v1221_v23, 0.0  ;;  %v1440_v10 = vmul.f32 0.1, %v1221_v23 }
 0x19c   :  { %11331 = vst [vmem:[#allocation69_spill] sm:$0xff] %v7408_v31  ;;  %v7410_v30 = vsel %vm1401_vm13, %v1219_v28, %v1433_v11  ;;  %vm1409_vm15 = vcmp.gt.f32.partialorder %v1223_v57, 0.0  ;;  %v1441_v19 = vmul.f32 0.1, %v1223_v57  ;;  %5207 = vrot.lane.b32.xlu1 %v7392_v50, %s5939_s17 }
 0x19d   :  { %11332 = vst [vmem:[#allocation74_spill] sm:$0xff] %v7410_v30  ;;  %v7414_v44 = vsel %vm1408_vm14, %v1221_v23, %v1440_v10  ;;  %5237 = vrot.lane.b32.xlu0 %v7397_v59, %s5939_s17 }
 0x19e   :  { %11333 = vst [vmem:[#allocation75_spill] sm:$0xff] %v7414_v44  ;;  %v7418_v54 = vsel %vm1409_vm15, %v1223_v57, %v1441_v19  ;;  %v7422_v2 = vpack.i.bf16 %v7414_v44, %v7408_v31 }
 0x19f   :  { %11334 = vst [vmem:[#allocation76_spill] sm:$0xff] %v7418_v54  ;;  %v7426_v17 = vpack.i.bf16 %v7418_v54, %v7410_v30 }
 0x1a0   :  { %5212 = vrot.lane.b32.xlu1 %v7392_v50, %s11158_s26 }
 0x1a1   :  { %5242 = vrot.lane.b32.xlu0 %v7397_v59, %s11158_s26 }
 0x1a4   :  { %5217 = vrot.lane.b32.xlu1 %v7392_v50, %s5941_s19 }
 0x1a5   :  { %5247 = vrot.lane.b32.xlu0 %v7397_v59, %s5941_s19 }
 0x1a8   :  { %5222 = vrot.lane.b32.xlu1 %v7392_v50, %s5942_s20 }
 0x1a9   :  { %5262 = vrot.lane.b32.xlu0 %v7422_v2, %s5940_s18 }
 0x1ac   :  { %5227 = vrot.lane.b32.xlu1 %v7392_v50, %s5943_s21 }
 0x1ad   :  { %5267 = vrot.lane.b32.xlu0 %v7422_v2, %s5939_s17 }
 0x1b0   :  { %v1259_v37 = vpop.f32.mrb[8].mxu1  ;;  %5252 = vrot.lane.b32.xlu1 %v7397_v59, %s5942_s20 }
 0x1b1   :  { %v1260_v12 = vadd.f32 %v1259_v37, %v7372_v25  ;;  %v1261_v55 = vpop.f32.mrb[9].mxu1  ;;  %5272 = vrot.lane.b32.xlu0 %v7422_v2, %s11158_s26 }
 0x1b2   :  { %v1262_v35 = vadd.f32 %v1261_v55, %v7372_v25  ;;  %v1263_v46 = vpop.f32.mrb[10].mxu1 }
 0x1b3   :  { %v1418_v21 = vmul.f32 0.1, %v1260_v12  ;;  %v1264_v16 = vadd.f32 %v1263_v46, %v7375_v39  ;;  %v1265_v48 = vpop.f32.mrb[11].mxu1  ;;  %vm1386_vm0 = vcmp.gt.f32.partialorder %v1260_v12, 0.0 }
 0x1b4   :  { %vm1387_vm1 = vcmp.gt.f32.partialorder %v1262_v35, 0.0  ;;  %v1419_v63 = vmul.f32 0.1, %v1262_v35  ;;  %v1266_v60 = vadd.f32 %v1265_v48, %v7375_v39  ;;  %5257 = vrot.lane.b32.xlu1 %v7397_v59, %s5943_s21 }
 0x1b5   :  { %vm1394_vm6 = vcmp.gt.f32.partialorder %v1264_v16, 0.0  ;;  %v1426_v0 = vmul.f32 0.1, %v1264_v16  ;;  %v7460_v28 = vsel %vm1386_vm0, %v1260_v12, %v1418_v21  ;;  %5277 = vrot.lane.b32.xlu0 %v7422_v2, %s5941_s19 }
 0x1b6   :  { %vm1395_vm8 = vcmp.gt.f32.partialorder %v1266_v60, 0.0  ;;  %v1427_v41 = vmul.f32 0.1, %v1266_v60  ;;  %11335 = vst [vmem:[#allocation77_spill] sm:$0xff] %v7460_v28  ;;  %v7462_v13 = vsel %vm1387_vm1, %v1262_v35, %v1419_v63 }
 0x1b7   :  { %11336 = vst [vmem:[#allocation78_spill] sm:$0xff] %v7462_v13  ;;  %v7464_v5 = vsel %vm1394_vm6, %v1264_v16, %v1426_v0 }
 0x1b8   :  { %11337 = vst [vmem:[#allocation79_spill] sm:$0xff] %v7464_v5  ;;  %v7466_v23 = vsel %vm1395_vm8, %v1266_v60, %v1427_v41  ;;  %v7470_v11 = vpack.i.bf16 %v7464_v5, %v7460_v28  ;;  %5292 = vrot.lane.b32.xlu1 %v7426_v17, %s5940_s18 }
 0x1b9   :  { %11338 = vst [vmem:[#allocation80_spill] sm:$0xff] %v7466_v23  ;;  %v1269_v49 = vpop.f32.mrb[12].mxu1  ;;  %v7477_v19 = vpack.i.bf16 %v7466_v23, %v7462_v13  ;;  %5282 = vrot.lane.b32.xlu0 %v7422_v2, %s5942_s20 }
 0x1ba   :  { %v1270_v57 = vadd.f32 %v1269_v49, %v7386_v56  ;;  %v1271_v10 = vpop.f32.mrb[13].mxu1 }
 0x1bb   :  { %v1272_v37 = vadd.f32 %v1271_v10, %v7386_v56  ;;  %v1273_v12 = vpop.f32.mrb[14].mxu1 }
 0x1bc   :  { %vm1402_vm10 = vcmp.gt.f32.partialorder %v1270_v57, 0.0  ;;  %v1434_v55 = vmul.f32 0.1, %v1270_v57  ;;  %v1274_v35 = vadd.f32 %v1273_v12, %v7399_v29  ;;  %v1275_v46 = vpop.f32.mrb[15].mxu1  ;;  %5297 = vrot.lane.b32.xlu1 %v7426_v17, %s5939_s17 }
 0x1bd   :  { %vm1403_vm13 = vcmp.gt.f32.partialorder %v1272_v37, 0.0  ;;  %v1435_v21 = vmul.f32 0.1, %v1272_v37  ;;  %v1276_v16 = vadd.f32 %v1275_v46, %v7399_v29  ;;  %5287 = vrot.lane.b32.xlu0 %v7422_v2, %s5943_s21 }
 0x1be   :  { %v7484_v48 = vsel %vm1402_vm10, %v1270_v57, %v1434_v55  ;;  %vm1410_vm14 = vcmp.gt.f32.partialorder %v1274_v35, 0.0  ;;  %v1442_v63 = vmul.f32 0.1, %v1274_v35 }
 0x1bf   :  { %11339 = vst [vmem:[#allocation81_spill] sm:$0xff] %v7484_v48  ;;  %v7488_v60 = vsel %vm1403_vm13, %v1272_v37, %v1435_v21  ;;  %vm1411_vm15 = vcmp.gt.f32.partialorder %v1276_v16, 0.0  ;;  %v1443_v0 = vmul.f32 0.1, %v1276_v16 }
 0x1c0   :  { %11340 = vst [vmem:[#allocation82_spill] sm:$0xff] %v7488_v60  ;;  %v7492_v41 = vsel %vm1410_vm14, %v1274_v35, %v1442_v63  ;;  %5302 = vrot.lane.b32.xlu1 %v7426_v17, %s11158_s26 }
 0x1c1   :  { %11341 = vst [vmem:[#allocation83_spill] sm:$0xff] %v7492_v41  ;;  %v7494_v49 = vsel %vm1411_vm15, %v1276_v16, %v1443_v0  ;;  %v7498_v57 = vpack.i.bf16 %v7492_v41, %v7484_v48  ;;  %5312 = vrot.lane.b32.xlu0 %v7426_v17, %s5942_s20 }
 0x1c2   :  { %11342 = vst [vmem:[#allocation84_spill] sm:$0xff] %v7494_v49  ;;  %v7505_v37 = vpack.i.bf16 %v7494_v49, %v7488_v60 }
 0x1c4   :  { %v1365_v10 = vpop.f32.mrb[16].mxu1  ;;  %5307 = vrot.lane.b32.xlu1 %v7426_v17, %s5941_s19 }
 0x1c5   :  { %v1366_v12 = vadd.f32 %v1365_v10, %v7372_v25  ;;  %v1367_v55 = vpop.f32.mrb[17].mxu1  ;;  %5317 = vrot.lane.b32.xlu0 %v7426_v17, %s5943_s21 }
 0x1c6   :  { %v1368_v35 = vadd.f32 %v1367_v55, %v7372_v25  ;;  %v1369_v21 = vpop.f32.mrb[18].mxu1 }
 0x1c7   :  { %v1312_v46 = vpop.f32.mrb[0].mxu0  ;;  %vm1390_vm0 = vcmp.gt.f32.partialorder %v1366_v12, 0.0  ;;  %v1422_v63 = vmul.f32 0.1, %v1366_v12  ;;  %v1370_v10 = vadd.f32 %v1369_v21, %v7375_v39  ;;  %v1371_v3 = vpop.f32.mrb[19].mxu1 }
 0x1c8   :  { %v1313_v16 = vadd.f32 %v1312_v46, %v7372_v25  ;;  %v1314_v0 = vpop.f32.mrb[1].mxu0  ;;  %vm1391_vm1 = vcmp.gt.f32.partialorder %v1368_v35, 0.0  ;;  %v1423_v43 = vmul.f32 0.1, %v1368_v35  ;;  %v1372_v27 = vadd.f32 %v1371_v3, %v7375_v39  ;;  %5322 = vrot.lane.b32.xlu1 %v7470_v11, %s5940_s18 }
 0x1c9   :  { %v1315_v15 = vadd.f32 %v1314_v0, %v7372_v25  ;;  %v1316_v36 = vpop.f32.mrb[2].mxu0  ;;  %v7514_v1 = vsel %vm1390_vm0, %v1366_v12, %v1422_v63  ;;  %vm1398_vm10 = vcmp.gt.f32.partialorder %v1370_v10, 0.0  ;;  %v1430_v12 = vmul.f32 0.1, %v1370_v10  ;;  %5337 = vrot.lane.b32.xlu0 %v7470_v11, %s5942_s20 }
 0x1ca   :  { %vm1388_vm6 = vcmp.gt.f32.partialorder %v1313_v16, 0.0  ;;  %v1420_v55 = vmul.f32 0.1, %v1313_v16  ;;  %11343 = vst [vmem:[#allocation85_spill] sm:$0xff] %v7514_v1  ;;  %v1317_v40 = vadd.f32 %v1316_v36, %v7375_v39  ;;  %v1318_v46 = vpop.f32.mrb[3].mxu0  ;;  %v7519_v42 = vsel %vm1391_vm1, %v1368_v35, %v1423_v43 }
 0x1cb   :  { %vm1389_vm8 = vcmp.gt.f32.partialorder %v1315_v15, 0.0  ;;  %v1421_v21 = vmul.f32 0.1, %v1315_v15  ;;  %11344 = vst [vmem:[#allocation86_spill] sm:$0xff] %v7519_v42  ;;  %v1319_v36 = vadd.f32 %v1318_v46, %v7375_v39  ;;  %vm1399_vm14 = vcmp.gt.f32.partialorder %v1372_v27, 0.0 }
 0x1cc   :  { %v7523_v25 = vsel %vm1388_vm6, %v1313_v16, %v1420_v55  ;;  %vm1396_vm13 = vcmp.gt.f32.partialorder %v1317_v40, 0.0  ;;  %v1428_v3 = vmul.f32 0.1, %v1317_v40  ;;  %v1431_v0 = vmul.f32 0.1, %v1372_v27  ;;  %v1375_v32 = vpop.f32.mrb[20].mxu1  ;;  %5327 = vrot.lane.b32.xlu1 %v7470_v11, %s5939_s17 }
 0x1cd   :  { %11345 = vst [vmem:[#allocation87_spill] sm:$0xff] %v7523_v25  ;;  %v7525_v63 = vsel %vm1389_vm8, %v1315_v15, %v1421_v21  ;;  %v7530_v43 = vsel %vm1398_vm10, %v1370_v10, %v1430_v12  ;;  %v1376_v35 = vadd.f32 %v1375_v32, %v7386_v56  ;;  %v1377_v53 = vpop.f32.mrb[21].mxu1  ;;  %vm1397_vm15 = vcmp.gt.f32.partialorder %v1319_v36, 0.0  ;;  %5347 = vrot.lane.b32.xlu0 %v7470_v11, %s5943_s21 }
 0x1ce   :  { %11346 = vst [vmem:[#allocation88_spill] sm:$0xff] %v7525_v63  ;;  %v7528_v24 = vsel %vm1396_vm13, %v1317_v40, %v1428_v3  ;;  %11348 = vst [vmem:[#allocation90_spill] sm:$0xff] %v7530_v43  ;;  %v1429_v16 = vmul.f32 0.1, %v1319_v36  ;;  %v7535_v55 = vsel %vm1399_vm14, %v1372_v27, %v1431_v0  ;;  %v1378_v39 = vadd.f32 %v1377_v53, %v7386_v56  ;;  %v1379_v46 = vpop.f32.mrb[22].mxu1 }
 0x1cf   :  { %11347 = vst [vmem:[#allocation89_spill] sm:$0xff] %v7528_v24  ;;  %11349 = vst [vmem:[#allocation91_spill] sm:$0xff] %v7535_v55  ;;  %v1322_v15 = vpop.f32.mrb[4].mxu0  ;;  %vm1406_vm0 = vcmp.gt.f32.partialorder %v1376_v35, 0.0  ;;  %v1438_v10 = vmul.f32 0.1, %v1376_v35  ;;  %v1380_v21 = vadd.f32 %v1379_v46, %v7399_v29 }
 0x1d0   :  { %v1323_v40 = vadd.f32 %v1322_v15, %v7386_v56  ;;  %v1324_v32 = vpop.f32.mrb[5].mxu0  ;;  %v1381_v3 = vpop.f32.mrb[23].mxu1  ;;  %v7542_v12 = vsel %vm1397_vm15, %v1319_v36, %v1429_v16  ;;  %vm1407_vm1 = vcmp.gt.f32.partialorder %v1378_v39, 0.0  ;;  %v1439_v0 = vmul.f32 0.1, %v1378_v39  ;;  %5332 = vrot.lane.b32.xlu1 %v7470_v11, %s11158_s26 }
 0x1d1   :  { %11350 = vst [vmem:[#allocation92_spill] sm:$0xff] %v7542_v12  ;;  %v1325_v27 = vadd.f32 %v1324_v32, %v7386_v56  ;;  %v1326_v4 = vpop.f32.mrb[6].mxu0  ;;  %v7545_v61 = vsel %vm1406_vm0, %v1376_v35, %v1438_v10  ;;  %vm1414_vm10 = vcmp.gt.f32.partialorder %v1380_v21, 0.0  ;;  %v1446_v35 = vmul.f32 0.1, %v1380_v21  ;;  %5352 = vrot.lane.b32.xlu0 %v7477_v19, %s5940_s18 }
 0x1d2   :  { %vm1404_vm6 = vcmp.gt.f32.partialorder %v1323_v40, 0.0  ;;  %v1436_v53 = vmul.f32 0.1, %v1323_v40  ;;  %11351 = vst [vmem:[#allocation93_spill] sm:$0xff] %v7545_v61  ;;  %v1327_v22 = vadd.f32 %v1326_v4, %v7399_v29  ;;  %v1328_v15 = vpop.f32.mrb[7].mxu0  ;;  %v7550_v51 = vsel %vm1407_vm1, %v1378_v39, %v1439_v0 }
 0x1d3   :  { %vm1405_vm8 = vcmp.gt.f32.partialorder %v1325_v27, 0.0  ;;  %v1437_v46 = vmul.f32 0.1, %v1325_v27  ;;  %11352 = vst [vmem:[#allocation94_spill] sm:$0xff] %v7550_v51  ;;  %v1329_v4 = vadd.f32 %v1328_v15, %v7399_v29  ;;  %v1382_v10 = vadd.f32 %v1381_v3, %v7399_v29 }
 0x1d4   :  { %v7554_v56 = vsel %vm1404_vm6, %v1323_v40, %v1436_v53  ;;  %vm1412_vm13 = vcmp.gt.f32.partialorder %v1327_v22, 0.0  ;;  %v1444_v36 = vmul.f32 0.1, %v1327_v22  ;;  %v7562_v32 = vpack.i.bf16 %v7535_v55, %v7519_v42  ;;  %5342 = vrot.lane.b32.xlu1 %v7470_v11, %s5941_s19 }
 0x1d5   :  { %11353 = vst [vmem:[#allocation95_spill] sm:$0xff] %v7554_v56  ;;  %v7556_v16 = vsel %vm1405_vm8, %v1325_v27, %v1437_v46  ;;  %v7566_v0 = vsel %vm1414_vm10, %v1380_v21, %v1446_v35  ;;  %vm1413_vm14 = vcmp.gt.f32.partialorder %v1329_v4, 0.0  ;;  %v1445_v40 = vmul.f32 0.1, %v1329_v4  ;;  %5357 = vrot.lane.b32.xlu0 %v7477_v19, %s5939_s17 }
 0x1d6   :  { %11354 = vst [vmem:[#allocation96_spill] sm:$0xff] %v7556_v16  ;;  %11355 = vst [vmem:[#allocation97_spill] sm:$0xff] %v7562_v32  ;;  %v7564_v39 = vsel %vm1412_vm13, %v1327_v22, %v1444_v36  ;;  %vm1415_vm15 = vcmp.gt.f32.partialorder %v1382_v10, 0.0  ;;  %v1447_v27 = vmul.f32 0.1, %v1382_v10  ;;  %v7574_v29 = vpack.i.bf16 %v7528_v24, %v7523_v25 }
 0x1d7   :  { %11356 = vst [vmem:[#allocation98_spill] sm:$0xff] %v7564_v39  ;;  %11357 = vst [vmem:[#allocation99_spill] sm:$0xff] %v7566_v0  ;;  %v7576_v3 = vsel %vm1413_vm14, %v1329_v4, %v1445_v40  ;;  %v7582_v21 = vpack.i.bf16 %v7564_v39, %v7554_v56  ;;  %v7594_v15 = vpack.i.bf16 %v7542_v12, %v7525_v63  ;;  %vm2582_vm0 = vcmask 261120  }
 0x1d8   :  { %11358 = vst [vmem:[#allocation100_spill] sm:$0xff] %v7576_v3  ;;  %v7578_v22 = vsel %vm1415_vm15, %v1382_v10, %v1447_v27  ;;  %v7598_v46 = vpack.i.bf16 %v7576_v3, %v7556_v16  ;;  %v7606_v36 = vpack.i.bf16 %v7530_v43, %v7514_v1  ;;  %v7610_v35 = vpack.i.bf16 %v7566_v0, %v7545_v61  ;;  %v11362_v43 = vld [vmem:[#allocation10_spill] sm:$0xff] }
 0x1d9   :  { %11359 = vst [vmem:[#allocation101_spill] sm:$0xff] %v7578_v22  ;;  %v7588_v53 = vpack.i.bf16 %v7578_v22, %v7550_v51  ;;  %5377 = vrot.lane.b32.xlu1 %v7498_v57, %s5939_s17  ;;  %5362 = vrot.lane.b32.xlu0 %v7477_v19, %s11158_s26 }
 0x1db   :  { %11360 = vst [vmem:[#allocation102_spill] sm:$0xff] %v7588_v53 }
 0x1dd   :  { %5387 = vrot.lane.b32.xlu1 %v7498_v57, %s5942_s20  ;;  %5367 = vrot.lane.b32.xlu0 %v7477_v19, %s5941_s19 }
 0x1e1   :  { %5397 = vrot.lane.b32.xlu1 %v7498_v57, %s5943_s21  ;;  %5372 = vrot.lane.b32.xlu0 %v7498_v57, %s5940_s18 }
 0x1e5   :  { %5402 = vrot.lane.b32.xlu1 %v7505_v37, %s5940_s18  ;;  %5382 = vrot.lane.b32.xlu0 %v7498_v57, %s11158_s26 }
 0x1e9   :  { %5412 = vrot.lane.b32.xlu1 %v7505_v37, %s11158_s26  ;;  %5392 = vrot.lane.b32.xlu0 %v7498_v57, %s5941_s19 }
 0x1ed   :  { %5417 = vrot.lane.b32.xlu1 %v7505_v37, %s5941_s19  ;;  %5407 = vrot.lane.b32.xlu0 %v7505_v37, %s5939_s17 }
 0x1f1   :  { %5422 = vrot.lane.b32.xlu1 %v7562_v32, %s5940_s18  ;;  %5432 = vrot.lane.b32.xlu0 %v7470_v11, %s5944_s22 }
 0x1f5   :  { %5427 = vrot.lane.b32.xlu1 %v7397_v59, %s5944_s22  ;;  %5457 = vrot.lane.b32.xlu0 %v7588_v53, %s5940_s18 }
 0x1f9   :  { %5437 = vrot.lane.b32.xlu1 %v7562_v32, %s5939_s17  ;;  %5462 = vrot.lane.b32.xlu0 %v7426_v17, %s5944_s22 }
 0x1fd   :  { %5442 = vrot.lane.b32.xlu1 %v7392_v50, %s5944_s22  ;;  %5472 = vrot.lane.b32.xlu0 %v7588_v53, %s5939_s17 }
 0x201   :  { %5447 = vrot.lane.b32.xlu1 %v7562_v32, %s11158_s26  ;;  %5477 = vrot.lane.b32.xlu0 %v7422_v2, %s5944_s22 }
 0x205   :  { %5452 = vrot.lane.b32.xlu1 %v7562_v32, %s5941_s19  ;;  %5487 = vrot.lane.b32.xlu0 %v7588_v53, %s11158_s26 }
 0x209   :  { %5467 = vrot.lane.b32.xlu1 %v7498_v57, %s5944_s22  ;;  %5492 = vrot.lane.b32.xlu0 %v7574_v29, %s5942_s20 }
 0x20a   :  { %v7688_v38 = vpop.permute.xlu1 %5202 }
 0x20b   :  { %v10986_v58 = vunpack.i.l.bf16 %v7688_v38  ;;  %v7692_v27 = vpop.permute.xlu0 %5232  ;;  %v11361_v0 = vunpack.i.h.bf16 %v7688_v38 }
 0x20c   :  { %v10988_v40 = vunpack.i.h.bf16 %v7692_v27  ;;  %v10987_v10 = vunpack.i.l.bf16 %v7692_v27  ;;  %v11366_v54 = vunpack.i.h.bf16 %v7692_v27  ;;  %v11367_v8 = vunpack.i.l.bf16 %v7692_v27 }
 0x20d   :  { %5482 = vrot.lane.b32.xlu1 %v7477_v19, %s5942_s20  ;;  %5502 = vrot.lane.b32.xlu0 %v7588_v53, %s5941_s19 }
 0x20e   :  { %v7700_v61 = vpop.permute.xlu1 %5207  ;;  %v1576_v4 = vsel %vm172_vm4, %v10986_v58, %v10987_v10  ;;  %v1577_v51 = vsel %vm172_vm4, %v11361_v0, %v10988_v40 }
 0x20f   :  { %v7714_v22 = vpop.permute.xlu0 %5237  ;;  %v1585_v1 = vpack.c.bf16 %v1577_v51, %v1576_v4  ;;  %v11372_v45 = vunpack.i.l.bf16 %v7700_v61  ;;  %v11374_v53 = vunpack.i.h.bf16 %v7700_v61 }
 0x210   :  { %v11399_v28 = vunpack.i.l.bf16 %v7714_v22 }
 0x211   :  { %5497 = vrot.lane.b32.xlu1 %v7505_v37, %s5942_s20  ;;  %5507 = vrot.lane.b32.xlu0 %v7582_v21, %s5942_s20  ;;  %v1601_v42 = vmul.bf16 %v1585_v1, %v11362_v43 }
 0x212   :  { %v7721_v55 = vpop.permute.xlu1 %5212 }
 0x213   :  { %v7723_v58 = vpop.permute.xlu0 %5242  ;;  %2589 = vmatprep.subr.bf16.mxu0 %v1601_v42 }
 0x215   :  { %5512 = vrot.lane.b32.xlu1 %v7397_v59, %s5945_s23  ;;  %5517 = vrot.lane.b32.xlu0 %v7470_v11, %s5945_s23 }
 0x216   :  { %v7729_v51 = vpop.permute.xlu1 %5217 }
 0x217   :  { %v7731_v0 = vpop.permute.xlu0 %5247 }
 0x219   :  { %5522 = vrot.lane.b32.xlu1 %v7477_v19, %s5943_s21  ;;  %5527 = vrot.lane.b32.xlu0 %v7574_v29, %s5943_s21 }
 0x21a   :  { %v7737_v1 = vpop.permute.xlu1 %5222 }
 0x21b   :  { %11363 = vst [vmem:[#allocation10_spill] sm:$0xff] %v7737_v1  ;;  %v7739_v4 = vpop.permute.xlu0 %5262 }
 0x21d   :  { %5532 = vrot.lane.b32.xlu1 %v7392_v50, %s5945_s23  ;;  %5537 = vrot.lane.b32.xlu0 %v7426_v17, %s5945_s23 }
 0x21e   :  { %v7745_v42 = vpop.permute.xlu1 %5227 }
 0x21f   :  { %11364 = vst [vmem:[#allocation103_spill] sm:$0xff] %v7745_v42  ;;  %v7747_v59 = vpop.permute.xlu0 %5267 }
 0x221   :  { %5542 = vrot.lane.b32.xlu1 %v7498_v57, %s5945_s23  ;;  %5547 = vrot.lane.b32.xlu0 %v7505_v37, %s5943_s21 }
 0x222   :  { %v7753_v11 = vpop.permute.xlu1 %5252 }
 0x223   :  { %11365 = vst [vmem:[#allocation104_spill] sm:$0xff] %v7753_v11  ;;  %v7755_v10 = vpop.permute.xlu0 %5272  ;;  %v11022_v49 = vunpack.i.l.bf16 %v7753_v11 }
 0x225   :  { %5552 = vrot.lane.b32.xlu1 %v7582_v21, %s5943_s21  ;;  %5557 = vrot.lane.b32.xlu0 %v7422_v2, %s5945_s23  ;;  %v5883_v2 = vld [vmem:[%s10835_s7 + $0x4] ss:$12 sps:$4 sm:$0xff]  }
 0x226   :  { %v7761_v50 = vpop.permute.xlu1 %5257  ;;  %2621 = vmatprep.mubr.bf16.mxu0 %v5883_v2  ;;  %2727 = vmatprep.mubr.bf16.mxu1 %v5883_v2 }
 0x227   :  { %v7763_v17 = vpop.permute.xlu0 %5277 }
 0x229   :  { %5562 = vrot.lane.b32.xlu1 %v7574_v29, %s5940_s18  ;;  %5567 = vrot.lane.b32.xlu0 %v7594_v15, %s5940_s18 }
 0x22a   :  { %v7769_v57 = vpop.permute.xlu1 %5292 }
 0x22b   :  { %v7771_v40 = vpop.permute.xlu0 %5282 }
 0x22d   :  { %5572 = vrot.lane.b32.xlu1 %v7477_v19, %s5944_s22  ;;  %5577 = vrot.lane.b32.xlu0 %v7574_v29, %s5944_s22 }
 0x22e   :  { %v7780_v56 = vpop.permute.xlu1 %5297 }
 0x22f   :  { %v7782_v39 = vpop.permute.xlu0 %5287  ;;  %v5299_v13 = vunpack.i.l.bf16 %v7780_v56 }
 0x231   :  { %5582 = vrot.lane.b32.xlu1 %v7582_v21, %s5940_s18  ;;  %5587 = vrot.lane.b32.xlu0 %v7598_v46, %s5940_s18 }
 0x232   :  { %v7788_v16 = vpop.permute.xlu1 %5302 }
 0x233   :  { %v7790_v3 = vpop.permute.xlu0 %5312 }
 0x235   :  { %5592 = vrot.lane.b32.xlu1 %v7505_v37, %s5944_s22  ;;  %5597 = vrot.lane.b32.xlu0 %v7582_v21, %s5944_s22 }
 0x236   :  { %v7796_v25 = vpop.permute.xlu1 %5307 }
 0x237   :  { %v7798_v2 = vpop.permute.xlu0 %5317 }
 0x239   :  { %5602 = vrot.lane.b32.xlu1 %v7574_v29, %s5939_s17  ;;  %5607 = vrot.lane.b32.xlu0 %v7594_v15, %s5939_s17 }
 0x23a   :  { %v5323_v24 = vpop.permute.xlu1 %5322 }
 0x23b   :  { %v7804_v63 = vpop.permute.xlu0 %5337  ;;  %v5325_v52 = vunpack.i.h.bf16 %v5323_v24  ;;  %v5324_v6 = vunpack.i.l.bf16 %v5323_v24 }
 0x23d   :  { %5612 = vrot.lane.b32.xlu1 %v7582_v21, %s5939_s17  ;;  %5617 = vrot.lane.b32.xlu0 %v7598_v46, %s5939_s17  ;;  %v1573_v20 = vsel %vm172_vm4, %v11366_v54, %v5325_v52  ;;  %v1572_v18 = vsel %vm172_vm4, %v11367_v8, %v5324_v6  ;;  %v11371_v8 = vunpack.i.l.bf16 %v7714_v22 }
 0x23e   :  { %v7810_v12 = vpop.permute.xlu1 %5327  ;;  %v1586_v62 = vpack.c.bf16 %v1573_v20, %v1572_v18  ;;  %v11373_v20 = vunpack.i.h.bf16 %v7714_v22 }
 0x23f   :  { %v7812_v14 = vpop.permute.xlu0 %5347  ;;  %v1704_v18 = vsel %vm289_vm2, %v11372_v45, %v11371_v8  ;;  %v11378_v45 = vunpack.i.h.bf16 %v7721_v55 }
 0x241   :  { %5622 = vrot.lane.b32.xlu1 %v7574_v29, %s11158_s26  ;;  %5627 = vrot.lane.b32.xlu0 %v7594_v15, %s11158_s26 }
 0x242   :  { %v7822_v44 = vpop.permute.xlu1 %5332 }
 0x243   :  { %v7834_v33 = vpop.permute.xlu0 %5352 }
 0x244   :  { %11368 = vst [vmem:[#allocation105_spill] sm:$0xff] %v7834_v33  ;;  %v11012_v30 = vunpack.i.l.bf16 %v7834_v33 }
 0x245   :  { %5632 = vrot.lane.b32.xlu1 %v7477_v19, %s5945_s23  ;;  %5637 = vrot.lane.b32.xlu0 %v7574_v29, %s5945_s23  ;;  %v11369_v19 = vunpack.i.h.bf16 %v7834_v33 }
 0x246   :  { %v7848_v31 = vpop.permute.xlu1 %5342  ;;  %v1568_v24 = vsel %vm172_vm4, %v5324_v6, %v11012_v30  ;;  %v1705_v6 = vsel %vm289_vm2, %v11374_v53, %v11373_v20  ;;  %v11379_v20 = vunpack.i.l.bf16 %v7731_v0  ;;  %v11380_v30 = vunpack.i.l.bf16 %v7729_v51 }
 0x247   :  { %v1569_v54 = vsel %vm172_vm4, %v5325_v52, %v11369_v19  ;;  %v7858_v27 = vpop.permute.xlu0 %5357  ;;  %v11375_v52 = vunpack.i.l.bf16 %v7723_v58  ;;  %v11377_v19 = vunpack.i.h.bf16 %v7723_v58  ;;  %v1713_v32 = vpack.c.bf16 %v1705_v6, %v1704_v18  ;;  %v11385_v6 = vld [vmem:[#allocation9_spill] sm:$0xff] }
 0x248   :  { %11370 = vst [vmem:[#allocation106_spill] sm:$0xff] %v7858_v27  ;;  %v1587_v34 = vpack.c.bf16 %v1569_v54, %v1568_v24  ;;  %v11376_v24 = vunpack.i.l.bf16 %v7721_v55  ;;  %v1960_v33 = vsel %vm459_vm5, %v11380_v30, %v11379_v20  ;;  %v11393_v20 = vunpack.i.h.bf16 %v7737_v1 }
 0x249   :  { %5642 = vrot.lane.b32.xlu1 %v7582_v21, %s11158_s26  ;;  %v1833_v8 = vsel %vm386_vm3, %v11378_v45, %v11377_v19  ;;  %5647 = vrot.lane.b32.xlu0 %v7598_v46, %s11158_s26  ;;  %v11383_v45 = vld [vmem:[#allocation19_spill] sm:$0xff] }
 0x24a   :  { %v1832_v54 = vsel %vm386_vm3, %v11376_v24, %v11375_v52  ;;  %v1603_v53 = vmul.bf16 %v1587_v34, %v6481_v9  ;;  %v11381_v52 = vunpack.i.h.bf16 %v7731_v0  ;;  %v11382_v24 = vunpack.i.h.bf16 %v7729_v51 }
 0x24b   :  { %v7901_v19 = vpop.permute.xlu1 %5377  ;;  %v1602_v41 = vmul.bf16 %v1586_v62, %v11383_v45  ;;  %v7904_v34 = vpop.permute.xlu0 %5362  ;;  %v1841_v60 = vpack.c.bf16 %v1833_v8, %v1832_v54  ;;  %v5294_v62 = vunpack.i.l.bf16 %v7769_v57  ;;  %v7917_v54 = vmul.bf16 %v1713_v32, %v11385_v6  ;;  %v11387_v8 = vld [vmem:[#allocation8_spill] sm:$0xff] }
 0x24c   :  { %v1961_v48 = vsel %vm459_vm5, %v11382_v24, %v11381_v52  ;;  %2695 = vmatprep.subr.bf16.mxu1 %v1603_v53  ;;  %v5295_v52 = vunpack.i.h.bf16 %v7769_v57  ;;  %v11388_v32 = vld [vmem:[#allocation12_spill] sm:$0xff]  ;;  %v11392_v57 = vunpack.i.h.bf16 %v7753_v11  ;;  %v5334_v11 = vunpack.i.l.bf16 %v7822_v44 }
 0x24d   :  { %5652 = vrot.lane.b32.xlu1 %v7505_v37, %s5945_s23  ;;  %2696 = vmatpush1.bf16.msra.mxu1 %v1602_v41  ;;  %v1969_v30 = vpack.c.bf16 %v1961_v48, %v1960_v33  ;;  %v7925_v53 = vmul.bf16 %v1841_v60, %v11387_v8  ;;  %v11390_v48 = vunpack.i.l.bf16 %v7737_v1  ;;  %v11397_v1 = vunpack.i.h.bf16 %v7739_v4 }
 0x24e   :  { %5657 = vrot.lane.b32.xlu0 %v7582_v21, %s5945_s23  ;;  %v7950_v24 = vsel %vm540_vm7, %v11393_v20, %v11392_v57 }
 0x24f   :  { %v7914_v18 = vpop.permute.xlu1 %5387  ;;  %v7922_v41 = vpop.permute.xlu0 %5367  ;;  %v7933_v37 = vmul.bf16 %v1969_v30, %v11388_v32  ;;  %v7942_v60 = vsel %vm540_vm7, %v11390_v48, %v11022_v49  ;;  %11394 = vst [vmem:[#allocation108_spill] sm:$0xff] %v7950_v24  ;;  %v5330_v30 = vunpack.i.h.bf16 %v7810_v12  ;;  %v11396_v48 = vunpack.i.l.bf16 %v7739_v4 }
 0x250   :  { %11384 = vst [vmem:[#allocation19_spill] sm:$0xff] %v7914_v18  ;;  %11386 = vst [vmem:[#allocation9_spill] sm:$0xff] %v7922_v41  ;;  %v1579_v20 = vsel %vm172_vm4, %v11397_v1, %v5295_v52  ;;  %v5379_v24 = vunpack.i.l.bf16 %v7901_v19 }
 0x251   :  { %5662 = vrot.lane.b32.xlu1 %v7606_v36, %s5940_s18  ;;  %11389 = vst [vmem:[#allocation8_spill] sm:$0xff] %v7933_v37  ;;  %11391 = vst [vmem:[#allocation107_spill] sm:$0xff] %v7942_v60  ;;  %v5329_v37 = vunpack.i.l.bf16 %v7810_v12  ;;  %v1578_v49 = vsel %vm172_vm4, %v11396_v48, %v5294_v62  ;;  %v5335_v12 = vunpack.i.h.bf16 %v7822_v44 }
 0x252   :  { %5667 = vrot.lane.b32.xlu0 %v7574_v29, %s5941_s19  ;;  %v11398_v29 = vunpack.i.h.bf16 %v7714_v22  ;;  %v11401_v22 = vunpack.i.l.bf16 %v7858_v27 }
 0x253   :  { %v7957_v18 = vpop.permute.xlu1 %5397  ;;  %v5373_v32 = vpop.permute.xlu0 %5372 }
 0x254   :  { %11395 = vst [vmem:[#allocation109_spill] sm:$0xff] %v7957_v18  ;;  %v5375_v48 = vunpack.i.h.bf16 %v5373_v32  ;;  %v5374_v5 = vunpack.i.l.bf16 %v5373_v32  ;;  %v1701_v33 = vsel %vm289_vm2, %v11398_v29, %v5330_v30  ;;  %v1593_v18 = vpack.c.bf16 %v1579_v20, %v1578_v49 }
 0x255   :  { %5672 = vrot.lane.b32.xlu1 %v7594_v15, %s5941_s19  ;;  %v1700_v32 = vsel %vm289_vm2, %v11399_v28, %v5329_v37  ;;  %v1696_v28 = vsel %vm289_vm2, %v5329_v37, %v11401_v22  ;;  %v11402_v20 = vunpack.i.h.bf16 %v7858_v27  ;;  %v5380_v29 = vunpack.i.h.bf16 %v7901_v19 }
 0x256   :  { %5677 = vrot.lane.b32.xlu0 %v7610_v35, %s5940_s18  ;;  %v1575_v1 = vsel %vm172_vm4, %v5295_v52, %v5375_v48  ;;  %v1574_v57 = vsel %vm172_vm4, %v5294_v62, %v5374_v5  ;;  %v5300_v62 = vunpack.i.h.bf16 %v7780_v56  ;;  %v11405_v19 = vunpack.i.l.bf16 %v7761_v50 }
 0x257   :  { %v7993_v60 = vpop.permute.xlu1 %5402  ;;  %v7997_v49 = vpop.permute.xlu0 %5382  ;;  %v1697_v52 = vsel %vm289_vm2, %v5330_v30, %v11402_v20  ;;  %v1594_v23 = vpack.c.bf16 %v1575_v1, %v1574_v57  ;;  %v1714_v57 = vpack.c.bf16 %v1701_v33, %v1700_v32 }
 0x258   :  { %11400 = vst [vmem:[#allocation110_spill] sm:$0xff] %v7993_v60  ;;  %v11403_v37 = vunpack.i.l.bf16 %v7993_v60  ;;  %v11404_v44 = vunpack.i.h.bf16 %v7993_v60  ;;  %v1715_v27 = vpack.c.bf16 %v1697_v52, %v1696_v28  ;;  %v11410_v28 = vunpack.i.l.bf16 %v7723_v58 }
 0x259   :  { %5682 = vrot.lane.b32.xlu1 %v7582_v21, %s5941_s19  ;;  %v11406_v21 = vunpack.i.l.bf16 %v7745_v42 }
 0x25a   :  { %5687 = vrot.lane.b32.xlu0 %v7598_v46, %s5941_s19  ;;  %v1570_v30 = vsel %vm172_vm4, %v5374_v5, %v11403_v37  ;;  %v1571_v22 = vsel %vm172_vm4, %v5375_v48, %v11404_v44  ;;  %v11407_v5 = vunpack.i.h.bf16 %v7761_v50  ;;  %v11408_v37 = vunpack.i.h.bf16 %v7745_v42 }
 0x25b   :  { %v8030_v56 = vsel %vm613_vm9, %v11406_v21, %v11405_v19  ;;  %v8032_v1 = vpop.permute.xlu1 %5412  ;;  %v1595_v20 = vpack.c.bf16 %v1571_v22, %v1570_v30  ;;  %v11409_v44 = vunpack.i.h.bf16 %v7723_v58  ;;  %v8048_v32 = vpop.permute.xlu0 %5392  ;;  %v1828_v52 = vsel %vm386_vm3, %v11410_v28, %v5334_v11 }
 0x25c   :  { %v8040_v48 = vsel %vm613_vm9, %v11408_v37, %v11407_v5  ;;  %v1703_v30 = vsel %vm289_vm2, %v5300_v62, %v5380_v29  ;;  %v1702_v22 = vsel %vm289_vm2, %v5299_v13, %v5379_v24  ;;  %v1610_v5 = vmul.bf16 %v1594_v23, %v11383_v45  ;;  %v11413_v45 = vld [vmem:[#allocation14_spill] sm:$0xff] }
 0x25d   :  { %v1829_v60 = vsel %vm386_vm3, %v11409_v44, %v5335_v12  ;;  %5692 = vrot.lane.b32.xlu1 %v7606_v36, %s5939_s17  ;;  %v1611_v21 = vmul.bf16 %v1595_v20, %v6481_v9  ;;  %v8065_v58 = vmul.bf16 %v1593_v18, %v11362_v43  ;;  %v11411_v37 = vunpack.i.l.bf16 %v7747_v59 }
 0x25e   :  { %5697 = vrot.lane.b32.xlu0 %v7610_v35, %s5939_s17  ;;  %v11412_v28 = vunpack.i.h.bf16 %v7747_v59  ;;  %v1731_v43 = vmul.bf16 %v1715_v27, %v6455_v47  ;;  %v1730_v18 = vmul.bf16 %v1714_v57, %v11413_v45  ;;  %v1842_v33 = vpack.c.bf16 %v1829_v60, %v1828_v52 }
 0x25f   :  { %v8071_v44 = vsel %vm289_vm2, %v11411_v37, %v5299_v13  ;;  %v8081_v23 = vpop.permute.xlu1 %5417  ;;  %2697 = vmatprep.subr.bf16.mxu1 %v1611_v21  ;;  %v1722_v13 = vpack.c.bf16 %v1703_v30, %v1702_v22  ;;  %v8085_v37 = vpop.permute.xlu0 %5407  ;;  %v11414_v42 = vunpack.i.l.bf16 %v7904_v34  ;;  %v11043_v27 = vunpack.i.l.bf16 %v8032_v1 }
 0x260   :  { %v8077_v19 = vsel %vm289_vm2, %v11412_v28, %v5300_v62  ;;  %2698 = vmatpush1.bf16.msra.mxu1 %v1610_v5  ;;  %v11415_v28 = vunpack.i.h.bf16 %v7904_v34  ;;  %v11041_v60 = vunpack.i.h.bf16 %v8085_v37  ;;  %v11040_v57 = vunpack.i.l.bf16 %v8085_v37 }
 0x261   :  { %v1824_v62 = vsel %vm386_vm3, %v5334_v11, %v11414_v42  ;;  %5702 = vrot.lane.b32.xlu1 %v7606_v36, %s11158_s26  ;;  %2699 = vmatprep.subr.bf16.mxu1 %v1731_v43  ;;  %v5345_v52 = vunpack.i.h.bf16 %v7848_v31  ;;  %v5344_v42 = vunpack.i.l.bf16 %v7848_v31  ;;  %v5385_v30 = vunpack.i.h.bf16 %v7997_v49 }
 0x262   :  { %v1825_v20 = vsel %vm386_vm3, %v5335_v12, %v11415_v28  ;;  %5707 = vrot.lane.b32.xlu0 %v7594_v15, %s5942_s20  ;;  %v5384_v22 = vunpack.i.l.bf16 %v7997_v49  ;;  %v1698_v43 = vsel %vm289_vm2, %v5379_v24, %v11040_v57  ;;  %v1699_v31 = vsel %vm289_vm2, %v5380_v29, %v11041_v60  ;;  %v11416_v24 = vld [vmem:[#allocation16_spill] sm:$0xff] }
 0x263   :  { %v8109_v5 = vpop.permute.xlu1 %5422  ;;  %v8121_v9 = vpop.permute.xlu0 %5432  ;;  %v1723_v49 = vpack.c.bf16 %v1699_v31, %v1698_v43  ;;  %v1843_v12 = vpack.c.bf16 %v1825_v20, %v1824_v62  ;;  %v1738_v21 = vmul.bf16 %v1722_v13, %v11413_v45  ;;  %v1858_v57 = vmul.bf16 %v1842_v33, %v11416_v24 }
 0x264   :  { %v11042_v28 = vunpack.i.h.bf16 %v8109_v5  ;;  %2700 = vmatpush1.bf16.msra.mxu1 %v1730_v18  ;;  %v1826_v29 = vsel %vm386_vm3, %v5384_v22, %v11043_v27  ;;  %v11417_v60 = vunpack.i.h.bf16 %v8032_v1  ;;  %v11418_v18 = vunpack.i.h.bf16 %v7688_v38 }
 0x265   :  { %5712 = vrot.lane.b32.xlu1 %v7606_v36, %s5942_s20  ;;  %v11419_v45 = vunpack.i.l.bf16 %v7688_v38  ;;  %v11420_v33 = vunpack.i.l.bf16 %v8109_v5  ;;  %v1739_v62 = vmul.bf16 %v1723_v49, %v6455_v47  ;;  %v11422_v31 = vunpack.i.h.bf16 %v7788_v16 }
 0x266   :  { %v1827_v11 = vsel %vm386_vm3, %v5385_v30, %v11417_v60  ;;  %v1581_v20 = vsel %vm172_vm4, %v11042_v28, %v11418_v18  ;;  %5717 = vrot.lane.b32.xlu0 %v7610_v35, %s11158_s26  ;;  %v11421_v60 = vunpack.i.l.bf16 %v7922_v41  ;;  %v11423_v18 = vunpack.i.l.bf16 %v7788_v16 }
 0x267   :  { %v1580_v13 = vsel %vm172_vm4, %v11420_v33, %v11419_v45  ;;  %v1831_v38 = vsel %vm386_vm3, %v11422_v31, %v5385_v30  ;;  %v8162_v28 = vpop.permute.xlu1 %5427  ;;  %v11424_v47 = vunpack.i.h.bf16 %v7922_v41  ;;  %v8175_v31 = vpop.permute.xlu0 %5457  ;;  %2701 = vmatprep.subr.bf16.mxu1 %v1739_v62  ;;  %v11048_v30 = vunpack.i.l.bf16 %v7771_v40 }
 0x268   :  { %v1952_v43 = vsel %vm459_vm5, %v5344_v42, %v11421_v60  ;;  %v1830_v45 = vsel %vm386_vm3, %v11423_v18, %v5384_v22  ;;  %v1584_v33 = vpack.c.bf16 %v1581_v20, %v1580_v13  ;;  %v11425_v60 = vunpack.i.h.bf16 %v7731_v0  ;;  %2702 = vmatpush1.bf16.msra.mxu1 %v1738_v21 }
 0x269   :  { %v1953_v49 = vsel %vm459_vm5, %v5345_v52, %v11424_v47  ;;  %v1859_v22 = vmul.bf16 %v1843_v12, %v6463_v7  ;;  %v1851_v20 = vpack.c.bf16 %v1827_v11, %v1826_v29  ;;  %v11049_v18 = vunpack.i.h.bf16 %v8175_v31  ;;  %5722 = vrot.lane.b32.xlu1 %v7598_v46, %s5942_s20 }
 0x26a   :  { %v8172_v27 = vsel %vm459_vm5, %v11425_v60, %v5345_v52  ;;  %v11050_v47 = vunpack.i.l.bf16 %v8175_v31  ;;  %v11426_v52 = vld [vmem:[#allocation18_spill] sm:$0xff]  ;;  %v11427_v41 = vunpack.i.l.bf16 %v7731_v0  ;;  %v1850_v11 = vpack.c.bf16 %v1831_v38, %v1830_v45  ;;  %5727 = vrot.lane.b32.xlu0 %v7610_v35, %s5942_s20 }
 0x26b   :  { %v1600_v60 = vmul.bf16 %v1584_v33, %v11426_v52  ;;  %2703 = vmatprep.subr.bf16.mxu1 %v1859_v22  ;;  %v1971_v29 = vpack.c.bf16 %v1953_v49, %v1952_v43  ;;  %v5395_v62 = vunpack.i.h.bf16 %v8048_v32  ;;  %v5394_v13 = vunpack.i.l.bf16 %v8048_v32  ;;  %v8209_v45 = vpop.permute.xlu0 %5462 }
 0x26c   :  { %v1956_v12 = vsel %vm459_vm5, %v11427_v41, %v5344_v42  ;;  %v11428_v21 = vunpack.i.h.bf16 %v7739_v4  ;;  %v11429_v33 = vunpack.i.l.bf16 %v7739_v4  ;;  %v8205_v42 = vpop.permute.xlu1 %5437  ;;  %v1867_v49 = vmul.bf16 %v1851_v20, %v6463_v7  ;;  %2704 = vmatpush1.bf16.msra.mxu1 %v1858_v57 }
 0x26d   :  { %2590 = vmatpush1.bf16.msra.mxu0 %v1600_v60  ;;  %v11046_v32 = vunpack.i.h.bf16 %v8205_v42  ;;  %v11047_v38 = vunpack.i.l.bf16 %v8205_v42  ;;  %v5310_v4 = vunpack.i.h.bf16 %v7796_v25  ;;  %5732 = vrot.lane.b32.xlu1 %v7606_v36, %s5941_s19  ;;  %v1721_v22 = vpack.c.bf16 %v8077_v19, %v8071_v44 }
 0x26e   :  { %v1583_v0 = vsel %vm172_vm4, %v11049_v18, %v11428_v21  ;;  %v1582_v41 = vsel %vm172_vm4, %v11050_v47, %v11429_v33  ;;  %2591 = vmatprep.subr.bf16.mxu0 %v8065_v58  ;;  %v11430_v60 = vunpack.i.l.bf16 %v8081_v23  ;;  %v5309_v7 = vunpack.i.l.bf16 %v7796_v25  ;;  %5737 = vrot.lane.b32.xlu0 %v7594_v15, %s5943_s21 }
 0x26f   :  { %v1592_v43 = vpack.c.bf16 %v1583_v0, %v1582_v41  ;;  %v11431_v0 = vunpack.i.h.bf16 %v8081_v23  ;;  %v11432_v20 = vunpack.i.h.bf16 %v7700_v61  ;;  %v11433_v19 = vunpack.i.l.bf16 %v7700_v61  ;;  %2705 = vmatprep.subr.bf16.mxu1 %v1867_v49  ;;  %v8253_v49 = vpop.permute.xlu0 %5472 }
 0x270   :  { %v1954_v21 = vsel %vm459_vm5, %v5394_v13, %v11430_v60  ;;  %v11066_v41 = vunpack.i.h.bf16 %v7790_v3  ;;  %v11051_v60 = vunpack.i.l.bf16 %v7790_v3  ;;  %v1959_v61 = vsel %vm459_vm5, %v5310_v4, %v5395_v62 }
 0x271   :  { %v1955_v58 = vsel %vm459_vm5, %v5395_v62, %v11431_v0  ;;  %v1709_v57 = vsel %vm289_vm2, %v11046_v32, %v11432_v20  ;;  %v1708_v44 = vsel %vm289_vm2, %v11047_v38, %v11433_v19  ;;  %v1608_v33 = vmul.bf16 %v1592_v43, %v11426_v52  ;;  %v8245_v32 = vpop.permute.xlu1 %5442  ;;  %v11434_v43 = vld [vmem:[#allocation31_spill] sm:$0xff]  ;;  %5742 = vrot.lane.b32.xlu1 %v7606_v36, %s5943_s21 }
 0x272   :  { %v1970_v0 = vpack.c.bf16 %v8172_v27, %v1956_v12  ;;  %v1712_v20 = vpack.c.bf16 %v1709_v57, %v1708_v44  ;;  %v1958_v19 = vsel %vm459_vm5, %v5309_v7, %v5394_v13  ;;  %v1866_v52 = vmul.bf16 %v1850_v11, %v11416_v24  ;;  %v11435_v62 = vld [vmem:[#allocation11_spill] sm:$0xff]  ;;  %5747 = vrot.lane.b32.xlu0 %v7610_v35, %s5941_s19 }
 0x273   :  { %2592 = vmatpush1.bf16.msra.mxu0 %v1608_v33  ;;  %v1987_v38 = vmul.bf16 %v1971_v29, %v11434_v43  ;;  %v11057_v27 = vunpack.i.h.bf16 %v8253_v49  ;;  %v11061_v12 = vunpack.i.l.bf16 %v8253_v49  ;;  %v1979_v44 = vpack.c.bf16 %v1955_v58, %v1954_v21 }
 0x274   :  { %2593 = vmatprep.subr.bf16.mxu0 %v7917_v54  ;;  %v1728_v57 = vmul.bf16 %v1712_v20, %v11435_v62  ;;  %v11052_v13 = vunpack.i.h.bf16 %v7771_v40  ;;  %2706 = vmatpush1.bf16.msra.mxu1 %v1866_v52  ;;  %v1737_v24 = vmul.bf16 %v1721_v22, %v11385_v6  ;;  %v11436_v11 = vunpack.i.l.bf16 %v7788_v16 }
 0x275   :  { %v11437_v29 = vunpack.i.l.bf16 %v7755_v10  ;;  %v11438_v54 = vunpack.i.h.bf16 %v7788_v16  ;;  %v11439_v20 = vunpack.i.h.bf16 %v7755_v10  ;;  %v8285_v6 = vsel %vm540_vm7, %v11048_v30, %v11051_v60  ;;  %2707 = vmatprep.subr.bf16.mxu1 %v1987_v38  ;;  %v8304_v60 = vpop.permute.xlu0 %5477  ;;  %5752 = vrot.lane.b32.xlu1 %v7598_v46, %s5943_s21 }
 0x276   :  { %v11440_v22 = vunpack.i.h.bf16 %v7747_v59  ;;  %v11441_v58 = vunpack.i.l.bf16 %v7747_v59  ;;  %11443 = vst [vmem:[#allocation14_spill] sm:$0xff] %v8304_v60  ;;  %v5279_v59 = vunpack.i.l.bf16 %v7763_v17  ;;  %v8313_v38 = vsel %vm540_vm7, %v11052_v13, %v11066_v41  ;;  %5757 = vrot.lane.b32.xlu0 %v7610_v35, %s5943_s21  ;;  %v11471_v41 = vld [vmem:[#allocation81_spill] sm:$0xff] }
 0x277   :  { %v1834_v33 = vsel %vm386_vm3, %v11437_v29, %v11436_v11  ;;  %v1835_v21 = vsel %vm386_vm3, %v11439_v20, %v11438_v54  ;;  %v8299_v11 = vpop.permute.xlu1 %5447  ;;  %v11442_v29 = vld [vmem:[#allocation17_spill] sm:$0xff]  ;;  %v1978_v20 = vpack.c.bf16 %v1959_v61, %v1958_v19  ;;  %2594 = vmatpush1.bf16.msra.mxu0 %v1728_v57  ;;  %v11062_v19 = vunpack.i.h.bf16 %v7782_v39 }
 0x278   :  { %v1711_v16 = vsel %vm289_vm2, %v11057_v27, %v11440_v22  ;;  %v1710_v52 = vsel %vm289_vm2, %v11061_v12, %v11441_v58  ;;  %v1986_v54 = vmul.bf16 %v1970_v0, %v11442_v29  ;;  %v11055_v18 = vunpack.i.h.bf16 %v8299_v11  ;;  %2595 = vmatprep.subr.bf16.mxu0 %v1737_v24 }
 0x279   :  { %v1720_v30 = vpack.c.bf16 %v1711_v16, %v1710_v52  ;;  %v11056_v47 = vunpack.i.l.bf16 %v8299_v11  ;;  %v1995_v0 = vmul.bf16 %v1979_v44, %v11434_v43  ;;  %v1849_v61 = vpack.c.bf16 %v1835_v21, %v1834_v33  ;;  %5762 = vrot.lane.b32.xlu1 %v7594_v15, %s5944_s22 }
 0x27a   :  { %v11444_v57 = vunpack.i.h.bf16 %v7721_v55  ;;  %v11445_v16 = vunpack.i.l.bf16 %v7721_v55  ;;  %2708 = vmatpush1.bf16.msra.mxu1 %v1986_v54  ;;  %v5340_v44 = vunpack.i.h.bf16 %v7804_v63  ;;  %v1962_v55 = vsel %vm459_vm5, %v5279_v59, %v5309_v7  ;;  %5767 = vrot.lane.b32.xlu0 %v7606_v36, %s5944_s22 }
 0x27b   :  { %v1736_v43 = vmul.bf16 %v1720_v30, %v11435_v62  ;;  %2709 = vmatprep.subr.bf16.mxu1 %v1995_v0  ;;  %v8335_v33 = vpop.permute.xlu1 %5452  ;;  %v11446_v21 = vunpack.i.h.bf16 %v7763_v17  ;;  %v5339_v30 = vunpack.i.l.bf16 %v7804_v63  ;;  %v8350_v0 = vpop.permute.xlu0 %5487  ;;  %v11063_v7 = vunpack.i.h.bf16 %v7798_v2 }
 0x27c   :  { %v1837_v22 = vsel %vm386_vm3, %v11055_v18, %v11444_v57  ;;  %v1836_v58 = vsel %vm386_vm3, %v11056_v47, %v11445_v16  ;;  %v11053_v62 = vunpack.i.h.bf16 %v8335_v33  ;;  %v11054_v54 = vunpack.i.l.bf16 %v8335_v33 }
 0x27d   :  { %v1840_v24 = vpack.c.bf16 %v1837_v22, %v1836_v58  ;;  %v1963_v52 = vsel %vm459_vm5, %v11446_v21, %v5310_v4  ;;  %2596 = vmatpush1.bf16.msra.mxu0 %v1736_v43  ;;  %v1994_v57 = vmul.bf16 %v1978_v20, %v11442_v29  ;;  %v11058_v25 = vunpack.i.h.bf16 %v8350_v0  ;;  %v11447_v4 = vld [vmem:[#allocation15_spill] sm:$0xff]  ;;  %5772 = vrot.lane.b32.xlu1 %v7598_v46, %s5944_s22 }
 0x27e   :  { %v11060_v22 = vunpack.i.l.bf16 %v8350_v0  ;;  %2597 = vmatprep.subr.bf16.mxu0 %v7925_v53  ;;  %v11064_v58 = vunpack.i.l.bf16 %v7798_v2  ;;  %v11448_v21 = vunpack.i.h.bf16 %v7729_v51  ;;  %v11449_v20 = vunpack.i.l.bf16 %v7729_v51  ;;  %5777 = vrot.lane.b32.xlu0 %v7610_v35, %s5944_s22 }
 0x27f   :  { %v1856_v16 = vmul.bf16 %v1840_v24, %v11447_v4  ;;  %2710 = vmatpush1.bf16.msra.mxu1 %v1994_v57  ;;  %v1865_v53 = vmul.bf16 %v1849_v61, %v11387_v8  ;;  %v11065_v24 = vunpack.i.l.bf16 %v7812_v14  ;;  %v11450_v13 = vunpack.i.h.bf16 %v7755_v10  ;;  %v8392_v8 = vpop.permute.xlu1 %5467  ;;  %v8395_v27 = vpop.permute.xlu0 %5492 }
 0x280   :  { %v1965_v29 = vsel %vm459_vm5, %v11053_v62, %v11448_v21  ;;  %v1964_v43 = vsel %vm459_vm5, %v11054_v54, %v11449_v20  ;;  %v11451_v21 = vunpack.i.l.bf16 %v7755_v10  ;;  %v11452_v20 = vld [vmem:[#allocation80_spill] sm:$0xff]  ;;  %v11453_v62 = vld [vmem:[#allocation78_spill] sm:$0xff]  ;;  %v1977_v61 = vpack.c.bf16 %v1963_v52, %v1962_v55  ;;  %v11470_v55 = vld [vmem:[#allocation83_spill] sm:$0xff] }
 0x281   :  { %v1839_v51 = vsel %vm386_vm3, %v11058_v25, %v11450_v13  ;;  %v11454_v54 = vpack.c.bf16 %v11452_v20, %v11453_v62  ;;  %v11059_v18 = vunpack.i.l.bf16 %v7782_v39  ;;  %2598 = vmatpush1.bf16.msra.mxu0 %v1856_v16  ;;  %v11455_v13 = vld [vmem:[#allocation104_spill] sm:$0xff]  ;;  %v1968_v16 = vpack.c.bf16 %v1965_v29, %v1964_v43  ;;  %v11458_v29 = vld [vmem:[#allocation79_spill] sm:$0xff]  ;;  %v11459_v43 = vld [vmem:[#allocation77_spill] sm:$0xff] }
 0x282   :  { %v1838_v57 = vsel %vm386_vm3, %v11060_v22, %v11451_v21  ;;  %v11456_v10 = vunpack.i.l.bf16 %v11455_v13  ;;  %v11457_v62 = vunpack.i.h.bf16 %v11455_v13  ;;  %2599 = vmatprep.subr.bf16.mxu0 %v1865_v53  ;;  %v8431_v21 = vsel %vm613_vm9, %v11062_v19, %v11063_v7  ;;  %v11461_v13 = vld [vmem:[#allocation84_spill] sm:$0xff]  ;;  %5792 = vrot.lane.b32.xlu0 %v7594_v15, %s5945_s23 }
 0x283   :  { %2711 = vmatprep.subr.bf16.mxu1 %v11454_v54  ;;  %v1848_v47 = vpack.c.bf16 %v1839_v51, %v1838_v57  ;;  %v8423_v51 = vsel %vm613_vm9, %v11059_v18, %v11064_v58  ;;  %v11460_v57 = vpack.c.bf16 %v11458_v29, %v11459_v43  ;;  %v5483_v18 = vpop.permute.xlu1 %5482  ;;  %v11464_v22 = vld [vmem:[#allocation12_spill] sm:$0xff]  ;;  %v11465_v29 = vunpack.i.l.bf16 %v7761_v50  ;;  %v11467_v58 = vld [vmem:[#allocation97_spill] sm:$0xff] }
 0x284   :  { %v8401_v25 = vsel %vm540_vm7, %v11456_v10, %v5339_v30  ;;  %v8409_v54 = vsel %vm540_vm7, %v11457_v62, %v5340_v44  ;;  %v11462_v10 = vld [vmem:[#allocation82_spill] sm:$0xff]  ;;  %v1993_v12 = vmul.bf16 %v1977_v61, %v11464_v22  ;;  %v11069_v22 = vunpack.i.h.bf16 %v8395_v27  ;;  %5782 = vrot.lane.b32.xlu1 %v11467_v58, %s5942_s20 }
 0x285   :  { %2712 = vmatpush1.bf16.msra.mxu1 %v11460_v57  ;;  %v1864_v53 = vmul.bf16 %v1848_v47, %v11447_v4  ;;  %v11463_v62 = vpack.c.bf16 %v11461_v13, %v11462_v10  ;;  %v8452_v43 = vsel %vm613_vm9, %v11465_v29, %v11065_v24  ;;  %v11466_v47 = vld [vmem:[#allocation19_spill] sm:$0xff]  ;;  %v11070_v57 = vunpack.i.l.bf16 %v8395_v27  ;;  %v11468_v29 = vld [vmem:[#allocation8_spill] sm:$0xff]  ;;  %v11469_v24 = vld [vmem:[#allocation13_spill] sm:$0xff] }
 0x286   :  { %v5390_v4 = vunpack.i.h.bf16 %v11466_v47  ;;  %v5485_v13 = vunpack.i.h.bf16 %v5483_v18  ;;  %v5484_v10 = vunpack.i.l.bf16 %v5483_v18  ;;  %v1984_v19 = vmul.bf16 %v1968_v16, %v11469_v24 }
 0x287   :  { %2713 = vmatprep.subr.bf16.mxu1 %v11463_v62  ;;  %v8456_v62 = vpop.permute.xlu0 %5502  ;;  %2600 = vmatpush1.bf16.msra.mxu0 %v1864_v53  ;;  %v5389_v52 = vunpack.i.l.bf16 %v11466_v47  ;;  %v11472_v20 = vpack.c.bf16 %v11470_v55, %v11471_v41  ;;  %v11473_v63 = vunpack.i.h.bf16 %v7763_v17  ;;  %v5498_v41 = vpop.permute.xlu1 %5497 }
 0x288   :  { %v11067_v61 = vunpack.i.h.bf16 %v8456_v62  ;;  %v11068_v7 = vunpack.i.l.bf16 %v8456_v62  ;;  %2601 = vmatprep.subr.bf16.mxu0 %v11468_v29  ;;  %v2097_v18 = vsel %vm540_vm7, %v5340_v44, %v5485_v13  ;;  %v2096_v53 = vsel %vm540_vm7, %v5339_v30, %v5484_v10  ;;  %5787 = vrot.lane.b32.xlu1 %v11467_v58, %s5943_s21 }
 0x289   :  { %2714 = vmatpush1.bf16.msra.mxu1 %v11472_v20  ;;  %v2092_v16 = vsel %vm540_vm7, %v5484_v10, %v11070_v57  ;;  %v2114_v47 = vpack.c.bf16 %v2097_v18, %v2096_v53  ;;  %v2093_v30 = vsel %vm540_vm7, %v5485_v13, %v11069_v22  ;;  %v5500_v20 = vunpack.i.h.bf16 %v5498_v41 }
 0x28a   :  { %v1967_v44 = vsel %vm459_vm5, %v11067_v61, %v11473_v63  ;;  %v1966_v15 = vsel %vm459_vm5, %v11068_v7, %v5279_v59  ;;  %v5499_v10 = vunpack.i.l.bf16 %v5498_v41  ;;  %v2115_v18 = vpack.c.bf16 %v2093_v30, %v2092_v16  ;;  %v11474_v59 = vld [vmem:[#allocation20_spill] sm:$0xff]  ;;  %v11478_v41 = vld [vmem:[#allocation33_spill] sm:$0xff] }
 0x28b   :  { %v1976_v55 = vpack.c.bf16 %v1967_v44, %v1966_v15  ;;  %v8497_v29 = vpop.permute.xlu0 %5507  ;;  %2602 = vmatpush1.bf16.msra.mxu0 %v1984_v19  ;;  %v2130_v63 = vmul.bf16 %v2114_v47, %v11474_v59  ;;  %v11475_v61 = vunpack.i.h.bf16 %v7812_v14  ;;  %v11476_v13 = vunpack.i.h.bf16 %v7761_v50  ;;  %v11477_v15 = vld [vmem:[#allocation102_spill] sm:$0xff]  ;;  %v11479_v30 = vld [vmem:[#allocation109_spill] sm:$0xff]  ;;  %v11483_v7 = vld [vmem:[#allocation108_spill] sm:$0xff] }
 0x28c   :  { %v11072_v17 = vunpack.i.h.bf16 %v8497_v29  ;;  %v11071_v53 = vunpack.i.l.bf16 %v8497_v29  ;;  %2603 = vmatprep.subr.bf16.mxu0 %v1993_v12  ;;  %v2098_v19 = vsel %vm540_vm7, %v5389_v52, %v5499_v10  ;;  %v2099_v16 = vsel %vm540_vm7, %v5390_v4, %v5500_v20  ;;  %5807 = vrot.lane.b32.xlu0 %v11477_v15, %s5942_s20 }
 0x28d   :  { %v2229_v44 = vsel %vm613_vm9, %v11476_v13, %v11475_v61  ;;  %v2131_v12 = vmul.bf16 %v2115_v18, %v11478_v41  ;;  %v1992_v47 = vmul.bf16 %v1976_v55, %v11469_v24  ;;  %v8527_v13 = vpop.permute.xlu1 %5512  ;;  %v11480_v22 = vunpack.i.l.bf16 %v7790_v3  ;;  %5797 = vrot.lane.b32.xlu1 %v7606_v36, %s5945_s23 }
 0x28e   :  { %v2094_v50 = vsel %vm540_vm7, %v5499_v10, %v11071_v53  ;;  %v2095_v61 = vsel %vm540_vm7, %v5500_v20, %v11072_v17  ;;  %v2122_v55 = vpack.c.bf16 %v2099_v16, %v2098_v19  ;;  %v11481_v53 = vunpack.i.h.bf16 %v7790_v3  ;;  %v11482_v17 = vld [vmem:[#allocation24_spill] sm:$0xff]  ;;  %v11486_v19 = vld [vmem:[#allocation26_spill] sm:$0xff] }
 0x28f   :  { %v2102_v18 = vsel %vm540_vm7, %v11480_v22, %v5389_v52  ;;  %2715 = vmatprep.subr.bf16.mxu1 %v2131_v12  ;;  %v8534_v57 = vpop.permute.xlu0 %5517  ;;  %2604 = vmatpush1.bf16.msra.mxu0 %v1992_v47  ;;  %v2123_v10 = vpack.c.bf16 %v2095_v61, %v2094_v50  ;;  %v11484_v52 = vld [vmem:[#allocation107_spill] sm:$0xff]  ;;  %v11487_v16 = vpack.c.bf16 %v8040_v48, %v8030_v56  ;;  %v11488_v47 = vld [vmem:[#allocation65_spill] sm:$0xff] }
 0x290   :  { %v2103_v20 = vsel %vm540_vm7, %v11481_v53, %v5390_v4  ;;  %2716 = vmatpush1.bf16.msra.mxu1 %v2130_v63  ;;  %v11485_v22 = vpack.c.bf16 %v11483_v7, %v11484_v52  ;;  %v11489_v4 = vld [vmem:[#allocation57_spill] sm:$0xff]  ;;  %5812 = vrot.lane.b32.xlu0 %v11477_v15, %s5943_s21  ;;  %v11491_v7 = vpack.c.bf16 %v8313_v38, %v8285_v6 }
 0x291   :  { %v8550_v12 = vmul.bf16 %v11487_v16, %v11486_v19  ;;  %v11490_v53 = vpack.c.bf16 %v11488_v47, %v11489_v4  ;;  %v2139_v36 = vmul.bf16 %v2123_v10, %v11478_v41  ;;  %v5523_v56 = vpop.permute.xlu1 %5522  ;;  %v11492_v48 = vld [vmem:[#allocation21_spill] sm:$0xff]  ;;  %v11493_v50 = vpack.c.bf16 %v8409_v54, %v8401_v25  ;;  %v11496_v10 = vld [vmem:[#allocation63_spill] sm:$0xff]  ;;  %v11497_v4 = vld [vmem:[#allocation54_spill] sm:$0xff]  ;;  %5802 = vrot.lane.b32.xlu1 %v7598_v46, %s5945_s23 }
 0x292   :  { %v2128_v24 = vmul.bf16 %v11485_v22, %v11482_v17  ;;  %v8564_v63 = vmul.bf16 %v11491_v7, %v11482_v17  ;;  %v2121_v52 = vpack.c.bf16 %v2103_v20, %v2102_v18  ;;  %v2241_v22 = vpack.c.bf16 %v2229_v44, %v8452_v43 }
 0x293   :  { %2605 = vmatprep.subr.bf16.mxu0 %v11490_v53  ;;  %v2129_v61 = vmul.bf16 %v11493_v50, %v11492_v48  ;;  %v11494_v16 = vunpack.i.l.bf16 %v11479_v30  ;;  %v11495_v47 = vunpack.i.l.bf16 %v7798_v2  ;;  %v5525_v6 = vunpack.i.h.bf16 %v5523_v56  ;;  %v8579_v17 = vpop.permute.xlu0 %5527  ;;  %2717 = vmatprep.subr.bf16.mxu1 %v2139_v36  ;;  %v11501_v36 = vld [vmem:[#allocation76_spill] sm:$0xff] }
 0x294   :  { %v5524_v38 = vunpack.i.l.bf16 %v5523_v56  ;;  %v11498_v53 = vpack.c.bf16 %v11496_v10, %v11497_v4  ;;  %v2138_v25 = vmul.bf16 %v2122_v55, %v11474_v59  ;;  %v11499_v54 = vunpack.i.h.bf16 %v11479_v30  ;;  %v11502_v59 = vld [vmem:[#allocation74_spill] sm:$0xff]  ;;  %5817 = vrot.lane.b32.xlu0 %v7610_v35, %s5945_s23  ;;  %v11507_v35 = vld [vmem:[#allocation75_spill] sm:$0xff] }
 0x295   :  { %v8577_v41 = vsel %vm613_vm9, %v11495_v47, %v11494_v16  ;;  %v11500_v43 = vunpack.i.h.bf16 %v7798_v2  ;;  %v5430_v18 = vunpack.i.h.bf16 %v8162_v28  ;;  %v5429_v20 = vunpack.i.l.bf16 %v8162_v28  ;;  %5822 = vrot.lane.b32.xlu1 %v11467_v58, %s5944_s22 }
 0x296   :  { %2606 = vmatpush1.bf16.msra.mxu0 %v11498_v53  ;;  %v11074_v7 = vunpack.i.h.bf16 %v8579_v17  ;;  %v11076_v56 = vunpack.i.l.bf16 %v8579_v17  ;;  %v11503_v55 = vpack.c.bf16 %v11501_v36, %v11502_v59  ;;  %v11086_v2 = vunpack.i.h.bf16 %v8121_v9  ;;  %2718 = vmatpush1.bf16.msra.mxu1 %v2138_v25  ;;  %v11508_v36 = vld [vmem:[#allocation69_spill] sm:$0xff] }
 0x297   :  { %v2231_v44 = vsel %vm613_vm9, %v11500_v43, %v11499_v54  ;;  %v11085_v50 = vunpack.i.l.bf16 %v8121_v9  ;;  %v11504_v16 = vunpack.i.h.bf16 %v7812_v14  ;;  %v11505_v47 = vunpack.i.l.bf16 %v7812_v14  ;;  %v8622_v54 = vpop.permute.xlu1 %5532  ;;  %v8624_v43 = vpop.permute.xlu0 %5537 }
 0x298   :  { %2607 = vmatprep.subr.bf16.mxu0 %v11503_v55  ;;  %v11075_v46 = vunpack.i.h.bf16 %v8245_v32  ;;  %v11073_v4 = vunpack.i.l.bf16 %v8245_v32  ;;  %v2220_v53 = vsel %vm613_vm9, %v5524_v38, %v11076_v56  ;;  %v2221_v14 = vsel %vm613_vm9, %v5525_v6, %v11074_v7  ;;  %11506 = vst [vmem:[#allocation16_spill] sm:$0xff] %v8622_v54  ;;  %5827 = vrot.lane.b32.xlu0 %v11477_v15, %s5944_s22 }
 0x299   :  { %v2225_v28 = vsel %vm613_vm9, %v11504_v16, %v5525_v6  ;;  %v2224_v10 = vsel %vm613_vm9, %v11505_v47, %v5524_v38  ;;  %v11509_v59 = vpack.c.bf16 %v11507_v35, %v11508_v36  ;;  %v2243_v55 = vpack.c.bf16 %v2221_v14, %v2220_v53  ;;  %v11510_v47 = vld [vmem:[#allocation23_spill] sm:$0xff]  ;;  %5832 = vrot.lane.b32.xlu1 %v11467_v58, %s5945_s23 }
 0x29a   :  { %v2242_v25 = vpack.c.bf16 %v2225_v28, %v2224_v10  ;;  %v2137_v16 = vmul.bf16 %v2121_v52, %v11492_v48  ;;  %v2257_v3 = vmul.bf16 %v2241_v22, %v11510_v47  ;;  %v2249_v6 = vpack.c.bf16 %v2231_v44, %v8577_v41  ;;  %v11511_v22 = vld [vmem:[#allocation50_spill] sm:$0xff] }
 0x29b   :  { %2608 = vmatpush1.bf16.msra.mxu0 %v11509_v59  ;;  %v8638_v38 = vsel %vm686_vm11, %v5429_v20, %v11085_v50  ;;  %v8644_v28 = vsel %vm686_vm11, %v5430_v18, %v11086_v2  ;;  %v5465_v48 = vunpack.i.h.bf16 %v8209_v45  ;;  %v11078_v52 = vunpack.i.h.bf16 %v8392_v8  ;;  %v8666_v35 = vpop.permute.xlu1 %5542 }
 0x29c   :  { %2609 = vmatprep.subr.bf16.mxu0 %v2129_v61  ;;  %v11077_v61 = vunpack.i.l.bf16 %v8392_v8  ;;  %v2259_v41 = vmul.bf16 %v2243_v55, %v11511_v22  ;;  %v5464_v44 = vunpack.i.l.bf16 %v8209_v45  ;;  %v8657_v10 = vsel %vm686_vm11, %v11073_v4, %v5429_v20  ;;  %v5548_v55 = vpop.permute.xlu0 %5547  ;;  %v11512_v20 = vld [vmem:[#allocation22_spill] sm:$0xff]  ;;  %5837 = vrot.lane.b32.xlu0 %v11477_v15, %s5945_s23 }
 0x29d   :  { %v8663_v53 = vsel %vm686_vm11, %v11075_v46, %v5430_v18  ;;  %v11079_v14 = vunpack.i.h.bf16 %v8304_v60  ;;  %v11080_v36 = vunpack.i.l.bf16 %v8304_v60  ;;  %v5515_v45 = vunpack.i.h.bf16 %v8527_v13 }
 0x29e   :  { %v5514_v59 = vunpack.i.l.bf16 %v8527_v13  ;;  %2719 = vmatprep.subr.bf16.mxu1 %v2259_v41  ;;  %v2258_v4 = vmul.bf16 %v2242_v25, %v11512_v20  ;;  %v11084_v7 = vunpack.i.h.bf16 %v8534_v57  ;;  %v11083_v18 = vunpack.i.l.bf16 %v8534_v57  ;;  %v3603_v13 = vld [vmem:[%s10837_s10 + $0x8] sm:$0xff] }
 0x29f   :  { %2610 = vmatpush1.bf16.msra.mxu0 %v2128_v24  ;;  %v5550_v46 = vunpack.i.h.bf16 %v5548_v55  ;;  %v5549_v56 = vunpack.i.l.bf16 %v5548_v55  ;;  %v2528_v24 = vld [vmem:[%s10836_s8] sm:$0xff]  ;;  %v2265_v25 = vmul.bf16 %v2249_v6, %v11510_v47  ;;  %v2358_v41 = vsel %vm686_vm11, %v5464_v44, %v11077_v61  ;;  %v8700_v55 = vpop.permute.xlu1 %5552  ;;  %v2529_v61 = vld [vmem:[%s10836_s8 + $0x8] sm:$0xff] }
 0x2a0   :  { %2611 = vmatprep.subr.bf16.mxu0 %v2137_v16  ;;  %2720 = vmatpush1.bf16.msra.mxu1 %v2258_v4  ;;  %v2359_v58 = vsel %vm686_vm11, %v5465_v48, %v11078_v52  ;;  %v2368_v4 = vpack.c.bf16 %v8663_v53, %v8657_v10  ;;  %v11513_v15 = vunpack.i.l.bf16 %v11479_v30  ;;  %v11514_v47 = vunpack.i.h.bf16 %v11479_v30 }
 0x2a1   :  { %v2369_v52 = vpack.c.bf16 %v8644_v28, %v8638_v38  ;;  %v8711_v10 = vsel %vm686_vm11, %v11080_v36, %v5464_v44  ;;  %v8717_v30 = vsel %vm686_vm11, %v11079_v14, %v5465_v48  ;;  %v11081_v53 = vunpack.i.h.bf16 %v8700_v55  ;;  %2534 = vperm.xlu1 %5200, %v2528_v24   ;;  %2539 = vperm.xlu0 %5199, %v2529_v61   ;;  %v2530_v24 = vld [vmem:[%s10836_s8 + $0x10] sm:$0xff] }
 0x2a2   :  { %v2226_v16 = vsel %vm613_vm9, %v11513_v15, %v5549_v56  ;;  %v2227_v6 = vsel %vm613_vm9, %v11514_v47, %v5550_v46  ;;  %v11082_v15 = vunpack.i.l.bf16 %v8700_v55  ;;  %v8721_v47 = vpop.permute.xlu0 %5557  ;;  %v8730_v38 = vsel %vm759_vm12, %v5514_v59, %v11083_v18 }
 0x2a3   :  { %11515 = vst [vmem:[#allocation18_spill] sm:$0xff] %v8721_v47  ;;  %2612 = vmatpush1.bf16.msra.mxu0 %v8564_v63  ;;  %v8738_v28 = vsel %vm759_vm12, %v5515_v45, %v11084_v7  ;;  %v2377_v48 = vpack.c.bf16 %v2359_v58, %v2358_v41  ;;  %v11089_v63 = vunpack.i.h.bf16 %v8622_v54  ;;  %v2250_v44 = vpack.c.bf16 %v2227_v6, %v2226_v16  ;;  %v8755_v16 = vpop.permute.xlu1 %5562 }
 0x2a4   :  { %2613 = vmatprep.subr.bf16.mxu0 %v2257_v3  ;;  %v2223_v14 = vsel %vm613_vm9, %v5550_v46, %v11081_v53  ;;  %v2222_v36 = vsel %vm613_vm9, %v5549_v56, %v11082_v15  ;;  %v11090_v3 = vunpack.i.l.bf16 %v8622_v54  ;;  %v11106_v41 = vunpack.i.h.bf16 %v8666_v35  ;;  %v2531_v46 = vld [vmem:[%s10836_s8 + $0x18] sm:$0xff] }
 0x2a5   :  { %v2251_v6 = vpack.c.bf16 %v2223_v14, %v2222_v36  ;;  %v11516_v56 = vpack.c.bf16 %v8431_v21, %v8423_v51  ;;  %v11517_v15 = vld [vmem:[#allocation25_spill] sm:$0xff]  ;;  %v5540_v7 = vunpack.i.h.bf16 %v8624_v43  ;;  %v5539_v50 = vunpack.i.l.bf16 %v8624_v43  ;;  %2544 = vperm.xlu1 %5200, %v2530_v24   ;;  %v11518_v14 = vld [vmem:[#allocation27_spill] sm:$0xff]  ;;  %2549 = vperm.xlu0 %5199, %v2531_v46   ;;  %v3602_v51 = vld [vmem:[%s10837_s10] sm:$0xff] }
 0x2a6   :  { %v8760_v53 = vpop.permute.xlu0 %5567  ;;  %v2385_v18 = vmul.bf16 %v2369_v52, %v11517_v15  ;;  %v2384_v36 = vmul.bf16 %v2368_v4, %v11518_v14  ;;  %v2266_v58 = vmul.bf16 %v2250_v44, %v11512_v20  ;;  %v2393_v21 = vmul.bf16 %v2377_v48, %v11517_v15 }
 0x2a7   :  { %2614 = vmatpush1.bf16.msra.mxu0 %v8550_v12  ;;  %v2264_v61 = vmul.bf16 %v11516_v56, %v11486_v19  ;;  %v2267_v2 = vmul.bf16 %v2251_v6, %v11511_v22  ;;  %v2376_v12 = vpack.c.bf16 %v8717_v30, %v8711_v10  ;;  %v2497_v19 = vpack.c.bf16 %v8738_v28, %v8730_v38  ;;  %v5573_v4 = vpop.permute.xlu1 %5572 }
 0x2a8   :  { %2615 = vmatprep.subr.bf16.mxu0 %v2265_v25  ;;  %v2488_v43 = vsel %vm759_vm12, %v11090_v3, %v5514_v59  ;;  %v2489_v52 = vsel %vm759_vm12, %v11089_v63, %v5515_v45  ;;  %v2487_v22 = vsel %vm759_vm12, %v5540_v7, %v11106_v41  ;;  %v11519_v20 = vunpack.i.l.bf16 %v8666_v35  ;;  %v11551_v41 = vld [vmem:[#allocation61_spill] sm:$0xff] }
 0x2a9   :  { %2721 = vmatprep.subr.bf16.mxu1 %v2267_v2  ;;  %v11087_v59 = vunpack.i.h.bf16 %v8721_v47  ;;  %v11088_v45 = vunpack.i.l.bf16 %v8721_v47  ;;  %v5575_v10 = vunpack.i.h.bf16 %v5573_v4  ;;  %v5574_v30 = vunpack.i.l.bf16 %v5573_v4  ;;  %3608 = vperm.xlu1 %5200, %v3602_v51   ;;  %v3605_v4 = vld [vmem:[%s10837_s10 + $0x18] sm:$0xff] }
 0x2aa   :  { %v2486_v25 = vsel %vm759_vm12, %v5539_v50, %v11519_v20  ;;  %v8806_v15 = vpop.permute.xlu0 %5577  ;;  %2722 = vmatpush1.bf16.msra.mxu1 %v2266_v58  ;;  %v5565_v38 = vunpack.i.h.bf16 %v8755_v16  ;;  %v5564_v28 = vunpack.i.l.bf16 %v8755_v16  ;;  %v11102_v44 = vunpack.i.h.bf16 %v8760_v53  ;;  %3613 = vperm.xlu0 %5199, %v3603_v13  }
 0x2ab   :  { %2616 = vmatpush1.bf16.msra.mxu0 %v2264_v61  ;;  %v11094_v2 = vunpack.i.h.bf16 %v8806_v15  ;;  %v11091_v48 = vunpack.i.l.bf16 %v8806_v15  ;;  %v11101_v24 = vunpack.i.l.bf16 %v8760_v53  ;;  %v11520_v46 = vunpack.i.h.bf16 %v8121_v9  ;;  %v3604_v61 = vld [vmem:[%s10837_s10 + $0x10] sm:$0xff] }
 0x2ac   :  { %2617 = vmatprep.subr.bf16.mxu0 %v2385_v18  ;;  %v11521_v58 = vunpack.i.l.bf16 %v8121_v9  ;;  %v2496_v18 = vpack.c.bf16 %v2489_v52, %v2488_v43  ;;  %v8833_v9 = vpop.permute.xlu1 %5582  ;;  %v2505_v13 = vpack.c.bf16 %v2487_v22, %v2486_v25  ;;  %v2490_v52 = vsel %vm759_vm12, %v11088_v45, %v5539_v50  ;;  %v11525_v45 = vld [vmem:[#allocation37_spill] sm:$0xff] }
 0x2ad   :  { %v2353_v6 = vsel %vm686_vm11, %v11520_v46, %v5575_v10  ;;  %v2348_v51 = vsel %vm686_vm11, %v5574_v30, %v11091_v48  ;;  %v2349_v20 = vsel %vm686_vm11, %v5575_v10, %v11094_v2  ;;  %v2491_v10 = vsel %vm759_vm12, %v11087_v59, %v5540_v7  ;;  %3618 = vperm.xlu1 %5200, %v3604_v61   ;;  %v11522_v7 = vld [vmem:[#allocation51_spill] sm:$0xff] }
 0x2ae   :  { %v2352_v56 = vsel %vm686_vm11, %v11521_v58, %v5574_v30  ;;  %v8838_v58 = vpop.permute.xlu0 %5587  ;;  %v2371_v43 = vpack.c.bf16 %v2349_v20, %v2348_v51  ;;  %v1561_v50 = vsel %vm172_vm4, %v5565_v38, %v11102_v44  ;;  %3623 = vperm.xlu0 %5199, %v3605_v4   ;;  %v2392_v22 = vmul.bf16 %v2376_v12, %v11518_v14  ;;  %v8869_v61 = vld [vmem:[%s10835_s7] ss:$12 sps:$4 sm:$0xff]   ;;  %v11524_v51 = vld [vmem:[#allocation36_spill] sm:$0xff] }
 0x2af   :  { %v2370_v46 = vpack.c.bf16 %v2353_v6, %v2352_v56  ;;  %2618 = vmatpush1.bf16.msra.mxu0 %v2384_v36  ;;  %v1560_v36 = vsel %vm172_vm4, %v5564_v28, %v11101_v24  ;;  %v11523_v6 = vld [vmem:[#allocation35_spill] sm:$0xff]  ;;  %v2512_v20 = vmul.bf16 %v2496_v18, %v11524_v51  ;;  %v2504_v59 = vpack.c.bf16 %v2491_v10, %v2490_v52 }
 0x2b0   :  { %2619 = vmatprep.subr.bf16.mxu0 %v2393_v21  ;;  %v2387_v25 = vmul.bf16 %v2371_v43, %v11522_v7  ;;  %v3706_v21 = vld [vmem:[%s10838_s12] sm:$0x3]  ;;  %v5593_v30 = vpop.permute.xlu1 %5592  ;;  %v2513_v56 = vmul.bf16 %v2497_v19, %v11523_v6  ;;  %v2521_v4 = vmul.bf16 %v2505_v13, %v11523_v6  ;;  %v8879_v19 = vld [vmem:[%s10835_s7 + $0x1c] ss:$12 sps:$4 sm:$0xff]   ;;  %v5585_v3 = vunpack.i.h.bf16 %v8833_v9 }
 0x2b1   :  { %v5595_v14 = vunpack.i.h.bf16 %v5593_v30  ;;  %v5594_v12 = vunpack.i.l.bf16 %v5593_v30  ;;  %v2386_v63 = vmul.bf16 %v2370_v46, %v11525_v45  ;;  %3709 = vperm.xlu1 %5200, %v3706_v21   ;;  %v1589_v52 = vpack.c.bf16 %v1561_v50, %v1560_v36 }
 0x2b2   :  { %v8873_v43 = vpop.permute.xlu0 %5597  ;;  %2723 = vmatprep.subr.bf16.mxu1 %v2387_v25  ;;  %v5584_v10 = vunpack.i.l.bf16 %v8833_v9  ;;  %v11526_v46 = vunpack.i.l.bf16 %v8392_v8  ;;  %v11527_v30 = vunpack.i.h.bf16 %v8392_v8  ;;  %v11095_v48 = vunpack.i.h.bf16 %v8838_v58 }
 0x2b3   :  { %2620 = vmatpush1.bf16.msra.mxu0 %v2392_v22  ;;  %v11093_v18 = vunpack.i.h.bf16 %v8873_v43  ;;  %v11092_v13 = vunpack.i.l.bf16 %v8873_v43  ;;  %v11096_v22 = vunpack.i.l.bf16 %v8838_v58  ;;  %2724 = vmatpush1.bf16.msra.mxu1 %v2386_v63 }
 0x2b4   :  { %2642 = vmatprep.subr.bf16.mxu0 %v2513_v56  ;;  %v2354_v25 = vsel %vm686_vm11, %v11526_v46, %v5594_v12  ;;  %v2355_v6 = vsel %vm686_vm11, %v11527_v30, %v5595_v14  ;;  %v5603_v50 = vpop.permute.xlu1 %5602  ;;  %v11528_v56 = vld [vmem:[#allocation105_spill] sm:$0xff] }
 0x2b5   :  { %v2378_v21 = vpack.c.bf16 %v2355_v6, %v2354_v25  ;;  %v2350_v9 = vsel %vm686_vm11, %v5594_v12, %v11092_v13  ;;  %v2351_v36 = vsel %vm686_vm11, %v5595_v14, %v11093_v18  ;;  %v11529_v46 = vunpack.i.h.bf16 %v11528_v56  ;;  %v11531_v30 = vld [vmem:[#allocation45_spill] sm:$0xff] }
 0x2b6   :  { %2622 = vmatmul.mubr.bf16.vlgmr.msra.gmra.mrb[8].mxu0 %v8869_v61  ;;  %v8904_v8 = vpop.permute.xlu0 %5607  ;;  %v2379_v63 = vpack.c.bf16 %v2351_v36, %v2350_v9  ;;  %v11530_v14 = vunpack.i.l.bf16 %v11528_v56  ;;  %v1605_v6 = vmul.bf16 %v1589_v52, %v11531_v30  ;;  %v11532_v9 = vld [vmem:[#allocation110_spill] sm:$0xff] }
 0x2b7   :  { %2643 = vmatpush1.bf16.msra.mxu0 %v2512_v20  ;;  %2631 = vmatprep.mubr.bf16.mxu0 %v8879_v19  ;;  %v1565_v12 = vsel %vm172_vm4, %v11529_v46, %v5565_v38  ;;  %v2520_v20 = vmul.bf16 %v2504_v59, %v11524_v51  ;;  %v11533_v36 = vunpack.i.l.bf16 %v11532_v9  ;;  %v11534_v18 = vunpack.i.h.bf16 %v11532_v9 }
 0x2b8   :  { %v1564_v25 = vsel %vm172_vm4, %v11530_v14, %v5564_v28  ;;  %2644 = vmatprep.subr.bf16.mxu0 %v2521_v4  ;;  %v1562_v38 = vsel %vm172_vm4, %v5584_v10, %v11096_v22  ;;  %v2395_v28 = vmul.bf16 %v2379_v63, %v11522_v7  ;;  %v1563_v59 = vsel %vm172_vm4, %v5585_v3, %v11095_v48  ;;  %v5613_v52 = vpop.permute.xlu1 %5612  ;;  %v11535_v14 = vld [vmem:[#allocation106_spill] sm:$0xff] }
 0x2b9   :  { %v1566_v13 = vsel %vm172_vm4, %v11533_v36, %v5584_v10  ;;  %v1567_v16 = vsel %vm172_vm4, %v11534_v18, %v5585_v3  ;;  %v5605_v51 = vunpack.i.h.bf16 %v5603_v50  ;;  %v5604_v4 = vunpack.i.l.bf16 %v5603_v50  ;;  %v8942_v18 = vld [vmem:[%s10835_s7 + $0x18] ss:$12 sps:$4 sm:$0xff]  }
 0x2ba   :  { %v2394_v56 = vmul.bf16 %v2378_v21, %v11525_v45  ;;  %v11100_v46 = vunpack.i.h.bf16 %v8904_v8  ;;  %v11097_v10 = vunpack.i.l.bf16 %v8904_v8  ;;  %v8946_v7 = vpop.permute.xlu0 %5617  ;;  %2725 = vmatprep.subr.bf16.mxu1 %v2395_v28  ;;  %v1588_v3 = vpack.c.bf16 %v1565_v12, %v1564_v25 }
 0x2bb   :  { %2645 = vmatpush1.bf16.msra.mxu0 %v2520_v20  ;;  %v1596_v50 = vpack.c.bf16 %v1567_v16, %v1566_v13  ;;  %v1597_v63 = vpack.c.bf16 %v1563_v59, %v1562_v38  ;;  %v11536_v45 = vunpack.i.h.bf16 %v11535_v14  ;;  %v11537_v9 = vunpack.i.l.bf16 %v11535_v14  ;;  %v11539_v38 = vld [vmem:[#allocation44_spill] sm:$0xff] }
 0x2bc   :  { %2726 = vmatpush1.bf16.msra.mxu1 %v2394_v56  ;;  %2801 = vmatprep.subr.bf16.mxu0 %v1605_v6  ;;  %v5615_v2 = vunpack.i.h.bf16 %v5613_v52  ;;  %v5614_v48 = vunpack.i.l.bf16 %v5613_v52  ;;  %v5623_v22 = vpop.permute.xlu1 %5622  ;;  %v1688_v13 = vsel %vm289_vm2, %v5604_v4, %v11097_v10  ;;  %v1689_v12 = vsel %vm289_vm2, %v5605_v51, %v11100_v46 }
 0x2bd   :  { %v1693_v21 = vsel %vm289_vm2, %v11536_v45, %v5605_v51  ;;  %v1692_v36 = vsel %vm289_vm2, %v11537_v9, %v5604_v4  ;;  %v11099_v25 = vunpack.i.h.bf16 %v8946_v7  ;;  %v11098_v20 = vunpack.i.l.bf16 %v8946_v7 }
 0x2be   :  { %2632 = vmatmul.mubr.bf16.gmra.mrb[12].mxu0 %v8942_v18  ;;  %v8967_v6 = vpop.permute.xlu0 %5627  ;;  %v11538_v16 = vmov 0   ;;  %v1604_v28 = vmul.bf16 %v1588_v3, %v11539_v38  ;;  %v1613_v59 = vmul.bf16 %v1597_v63, %v11531_v30  ;;  %v1612_v4 = vmul.bf16 %v1596_v50, %v11539_v38  ;;  %v8990_v30 = vld [vmem:[%s10835_s7 + $0x8] ss:$12 sps:$4 sm:$0xff]  }
 0x2bf   :  { %2674 = vmatprep.mubr.bf16.mxu0 %v11538_v16  ;;  %2728 = vmatmul.mubr.bf16.vlgmr.msra.gmra.mrb[24].mxu1 %v8869_v61  ;;  %v1716_v51 = vpack.c.bf16 %v1693_v21, %v1692_v36  ;;  %v11540_v52 = vunpack.i.h.bf16 %v8085_v37  ;;  %v11541_v14 = vunpack.i.l.bf16 %v8085_v37  ;;  %v1717_v3 = vpack.c.bf16 %v1689_v12, %v1688_v13 }
 0x2c0   :  { %2737 = vmatprep.mubr.bf16.mxu1 %v8879_v19  ;;  %v5633_v9 = vpop.permute.xlu1 %5632  ;;  %v1690_v50 = vsel %vm289_vm2, %v5614_v48, %v11098_v20  ;;  %v1691_v37 = vsel %vm289_vm2, %v5615_v2, %v11099_v25  ;;  %v5625_v38 = vunpack.i.h.bf16 %v5623_v22  ;;  %v11107_v12 = vunpack.i.h.bf16 %v8967_v6 }
 0x2c1   :  { %v8979_v56 = vsel %vm289_vm2, %v11540_v52, %v5615_v2  ;;  %v8985_v45 = vsel %vm289_vm2, %v11541_v14, %v5614_v48  ;;  %v5635_v63 = vunpack.i.h.bf16 %v5633_v9  ;;  %v5634_v21 = vunpack.i.l.bf16 %v5633_v9 }
 0x2c2   :  { %v9000_v36 = vpop.permute.xlu0 %5637  ;;  %v5624_v52 = vunpack.i.l.bf16 %v5623_v22  ;;  %v11105_v10 = vunpack.i.l.bf16 %v8967_v6  ;;  %v11542_v48 = vunpack.i.h.bf16 %v8534_v57  ;;  %v11543_v2 = vunpack.i.l.bf16 %v8534_v57 }
 0x2c3   :  { %v11104_v14 = vunpack.i.h.bf16 %v9000_v36  ;;  %v11103_v13 = vunpack.i.l.bf16 %v9000_v36 }
 0x2c4   :  { %v2481_v20 = vsel %vm759_vm12, %v11542_v48, %v5635_v63  ;;  %v2480_v9 = vsel %vm759_vm12, %v11543_v2, %v5634_v21  ;;  %v5643_v24 = vpop.permute.xlu1 %5642  ;;  %v11544_v48 = vld [vmem:[#allocation38_spill] sm:$0xff]  ;;  %v1724_v2 = vpack.c.bf16 %v8979_v56, %v8985_v45  ;;  %v1725_v56 = vpack.c.bf16 %v1691_v37, %v1690_v50 }
 0x2c5   :  { %v2498_v25 = vpack.c.bf16 %v2481_v20, %v2480_v9  ;;  %v2476_v22 = vsel %vm759_vm12, %v5634_v21, %v11103_v13  ;;  %v2477_v46 = vsel %vm759_vm12, %v5635_v63, %v11104_v14  ;;  %v1732_v57 = vmul.bf16 %v1716_v51, %v11544_v48 }
 0x2c6   :  { %4878 = vmatmul.mubr.msk.bf16.vlgmr.msra.gmra.mrb[8].mxu0 %vm2582_vm0, %v8990_v30  ;;  %v5645_v20 = vunpack.i.h.bf16 %v5643_v24  ;;  %v5644_v9 = vunpack.i.l.bf16 %v5643_v24  ;;  %v9027_v44 = vpop.permute.xlu0 %5647  ;;  %v2499_v21 = vpack.c.bf16 %v2477_v46, %v2476_v22  ;;  %v11545_v13 = vunpack.i.h.bf16 %v7904_v34 }
 0x2c7   :  { %2802 = vmatpush1.bf16.msra.mxu0 %v1604_v28  ;;  %2684 = vmatprep.mubr.bf16.mxu0 %v11538_v16  ;;  %v11114_v51 = vunpack.i.l.bf16 %v9027_v44  ;;  %v11546_v24 = vunpack.i.l.bf16 %v7904_v34  ;;  %v1816_v28 = vsel %vm386_vm3, %v5624_v52, %v11105_v10  ;;  %v1817_v45 = vsel %vm386_vm3, %v5625_v38, %v11107_v12 }
 0x2c8   :  { %v1821_v63 = vsel %vm386_vm3, %v11545_v13, %v5625_v38  ;;  %2803 = vmatprep.subr.bf16.mxu0 %v1613_v59  ;;  %2738 = vmatmul.mubr.bf16.gmra.mrb[28].mxu1 %v8942_v18  ;;  %v11547_v13 = vld [vmem:[#allocation60_spill] sm:$0xff]  ;;  %v11548_v50 = vunpack.i.l.bf16 %v8032_v1  ;;  %v11549_v37 = vunpack.i.h.bf16 %v8032_v1  ;;  %v2514_v14 = vmul.bf16 %v2498_v25, %v11551_v41  ;;  %v9064_v38 = vld [vmem:[%s10835_s7 + $0x20] ss:$12 sps:$4 sm:$0xff]  }
 0x2c9   :  { %v1820_v46 = vsel %vm386_vm3, %v11546_v24, %v5624_v52  ;;  %v2515_v59 = vmul.bf16 %v2499_v21, %v11547_v13  ;;  %2780 = vmatprep.mubr.bf16.mxu1 %v11538_v16  ;;  %v5653_v52 = vpop.permute.xlu1 %5652  ;;  %v11550_v24 = vld [vmem:[#allocation40_spill] sm:$0xff]  ;;  %v1818_v21 = vsel %vm386_vm3, %v5644_v9, %v11114_v51  ;;  %v11552_v1 = vunpack.i.h.bf16 %v9027_v44 }
 0x2ca   :  { %v1822_v34 = vsel %vm386_vm3, %v11548_v50, %v5644_v9  ;;  %v1823_v22 = vsel %vm386_vm3, %v11549_v37, %v5645_v20  ;;  %v1733_v10 = vmul.bf16 %v1717_v3, %v11550_v24  ;;  %v5655_v37 = vunpack.i.h.bf16 %v5653_v52  ;;  %v9074_v3 = vpop.permute.xlu0 %5657 }
 0x2cb   :  { %v1819_v50 = vsel %vm386_vm3, %v5645_v20, %v11552_v1  ;;  %v5654_v12 = vunpack.i.l.bf16 %v5653_v52  ;;  %2804 = vmatpush1.bf16.msra.mxu0 %v1612_v4  ;;  %2748 = vmatprep.subr.bf16.mxu1 %v2515_v59  ;;  %v1844_v25 = vpack.c.bf16 %v1821_v63, %v1820_v46  ;;  %v5660_v47 = vunpack.i.h.bf16 %v9074_v3 }
 0x2cc   :  { %v5659_v54 = vunpack.i.l.bf16 %v9074_v3  ;;  %2805 = vmatprep.subr.bf16.mxu0 %v1733_v10  ;;  %2749 = vmatpush1.bf16.msra.mxu1 %v2514_v14  ;;  %v1845_v60 = vpack.c.bf16 %v1817_v45, %v1816_v28  ;;  %v11553_v9 = vunpack.i.l.bf16 %v8666_v35  ;;  %v11554_v20 = vunpack.i.h.bf16 %v8666_v35 }
 0x2cd   :  { %v1741_v59 = vmul.bf16 %v1725_v56, %v11550_v24  ;;  %v1740_v63 = vmul.bf16 %v1724_v2, %v11544_v48  ;;  %v1852_v46 = vpack.c.bf16 %v1823_v22, %v1822_v34  ;;  %v2479_v14 = vsel %vm759_vm12, %v5655_v37, %v5660_v47  ;;  %v5663_v28 = vpop.permute.xlu1 %5662  ;;  %v11555_v24 = vld [vmem:[#allocation42_spill] sm:$0xff] }
 0x2ce   :  { %v2482_v51 = vsel %vm759_vm12, %v11553_v9, %v5654_v12  ;;  %v2483_v4 = vsel %vm759_vm12, %v11554_v20, %v5655_v37  ;;  %v2478_v10 = vsel %vm759_vm12, %v5654_v12, %v5659_v54  ;;  %4879 = vmatmul.mubr.msk.bf16.gmra.mrb[12].mxu0 %vm2582_vm0, %v9064_v38  ;;  %v1853_v35 = vpack.c.bf16 %v1819_v50, %v1818_v21  ;;  %v5668_v48 = vpop.permute.xlu0 %5667  ;;  %v9101_v12 = vld [vmem:[%s10835_s7 + $0x4] ss:$12 sps:$4 sm:$0xff]   ;;  %v11556_v37 = vld [vmem:[#allocation41_spill] sm:$0xff] }
 0x2cf   :  { %v2506_v45 = vpack.c.bf16 %v2483_v4, %v2482_v51  ;;  %v5665_v56 = vunpack.i.h.bf16 %v5663_v28  ;;  %v5664_v52 = vunpack.i.l.bf16 %v5663_v28  ;;  %2806 = vmatpush1.bf16.msra.mxu0 %v1732_v57  ;;  %v2507_v2 = vpack.c.bf16 %v2479_v14, %v2478_v10  ;;  %2833 = vmatprep.mubr.bf16.mxu0 %v9101_v12 }
 0x2d0   :  { %v5670_v34 = vunpack.i.h.bf16 %v5668_v48  ;;  %v5669_v22 = vunpack.i.l.bf16 %v5668_v48  ;;  %2807 = vmatprep.subr.bf16.mxu0 %v1741_v59  ;;  %v1861_v1 = vmul.bf16 %v1845_v60, %v11555_v24  ;;  %v1860_v21 = vmul.bf16 %v1844_v25, %v11556_v37 }
 0x2d1   :  { %v11557_v51 = vunpack.i.h.bf16 %v8760_v53  ;;  %v11558_v50 = vunpack.i.l.bf16 %v8109_v5  ;;  %v11559_v20 = vunpack.i.h.bf16 %v8109_v5  ;;  %v11560_v59 = vunpack.i.l.bf16 %v8760_v53  ;;  %v9122_v10 = vpop.permute.xlu1 %5672 }
 0x2d2   :  { %v2523_v14 = vmul.bf16 %v2507_v2, %v11547_v13  ;;  %v1869_v28 = vmul.bf16 %v1853_v35, %v11555_v24  ;;  %v1868_v48 = vmul.bf16 %v1852_v46, %v11556_v37  ;;  %v5674_v5 = vunpack.i.l.bf16 %v9122_v10  ;;  %v11565_v37 = vld [vmem:[#allocation46_spill] sm:$0xff] }
 0x2d3   :  { %v1557_v57 = vsel %vm172_vm4, %v11557_v51, %v5665_v56  ;;  %v1552_v9 = vsel %vm172_vm4, %v5664_v52, %v11558_v50  ;;  %v1553_v4 = vsel %vm172_vm4, %v5665_v56, %v11559_v20  ;;  %v1556_v60 = vsel %vm172_vm4, %v11560_v59, %v5664_v52  ;;  %2808 = vmatpush1.bf16.msra.mxu0 %v1740_v63  ;;  %v5678_v56 = vpop.permute.xlu0 %5677  ;;  %v11561_v20 = vld [vmem:[#allocation9_spill] sm:$0xff] }
 0x2d4   :  { %v1590_v25 = vpack.c.bf16 %v1557_v57, %v1556_v60  ;;  %v5675_v51 = vunpack.i.h.bf16 %v9122_v10  ;;  %v2522_v53 = vmul.bf16 %v2506_v45, %v11551_v41  ;;  %v1591_v50 = vpack.c.bf16 %v1553_v4, %v1552_v9  ;;  %2750 = vmatprep.subr.bf16.mxu1 %v2523_v14  ;;  %2809 = vmatprep.subr.bf16.mxu0 %v1861_v1  ;;  %v11564_v45 = vld [vmem:[#allocation30_spill] sm:$0xff] }
 0x2d5   :  { %v11562_v52 = vunpack.i.l.bf16 %v11561_v20  ;;  %v11563_v13 = vunpack.i.h.bf16 %v11561_v20  ;;  %v5680_v46 = vunpack.i.h.bf16 %v5678_v56  ;;  %v5679_v2 = vunpack.i.l.bf16 %v5678_v56  ;;  %v5683_v56 = vpop.permute.xlu1 %5682 }
 0x2d6   :  { %v1945_v41 = vsel %vm459_vm5, %v5670_v34, %v5675_v51  ;;  %v1944_v63 = vsel %vm459_vm5, %v5669_v22, %v5674_v5  ;;  %2751 = vmatpush1.bf16.msra.mxu1 %v2522_v53  ;;  %v1607_v24 = vmul.bf16 %v1591_v50, %v11564_v45  ;;  %v1606_v9 = vmul.bf16 %v1590_v25, %v11565_v37 }
 0x2d7   :  { %v1948_v57 = vsel %vm459_vm5, %v11562_v52, %v5669_v22  ;;  %v1949_v35 = vsel %vm459_vm5, %v11563_v13, %v5670_v34  ;;  %v11566_v4 = vunpack.i.l.bf16 %v8175_v31  ;;  %v11567_v59 = vunpack.i.h.bf16 %v8175_v31  ;;  %2810 = vmatpush1.bf16.msra.mxu0 %v1860_v21  ;;  %v9164_v31 = vpop.permute.xlu0 %5687 }
 0x2d8   :  { %v11568_v60 = vunpack.i.l.bf16 %v8838_v58  ;;  %v11569_v14 = vunpack.i.h.bf16 %v8838_v58  ;;  %v5685_v50 = vunpack.i.h.bf16 %v5683_v56  ;;  %v5684_v20 = vunpack.i.l.bf16 %v5683_v56  ;;  %2907 = vmatprep.subr.bf16.mxu1 %v1607_v24  ;;  %2811 = vmatprep.subr.bf16.mxu0 %v1869_v28  ;;  %v11573_v56 = vld [vmem:[#allocation47_spill] sm:$0xff] }
 0x2d9   :  { %v1554_v1 = vsel %vm172_vm4, %v5679_v2, %v11566_v4  ;;  %v1555_v34 = vsel %vm172_vm4, %v5680_v46, %v11567_v59  ;;  %v1973_v52 = vpack.c.bf16 %v1945_v41, %v1944_v63  ;;  %v1972_v13 = vpack.c.bf16 %v1949_v35, %v1948_v57  ;;  %4880 = vmatmul.mubr.msk.bf16.vlgmr.msra.gmra.mrb[24].mxu1 %vm2582_vm0, %v8990_v30  ;;  %v11572_v57 = vld [vmem:[#allocation48_spill] sm:$0xff] }
 0x2da   :  { %v1558_v22 = vsel %vm172_vm4, %v11568_v60, %v5679_v2  ;;  %v1559_v25 = vsel %vm172_vm4, %v11569_v14, %v5680_v46  ;;  %v5690_v4 = vunpack.i.h.bf16 %v9164_v31  ;;  %v5689_v59 = vunpack.i.l.bf16 %v9164_v31  ;;  %2908 = vmatpush1.bf16.msra.mxu1 %v1606_v9  ;;  %2790 = vmatprep.mubr.bf16.mxu1 %v11538_v16 }
 0x2db   :  { %v1598_v53 = vpack.c.bf16 %v1559_v25, %v1558_v22  ;;  %v1599_v58 = vpack.c.bf16 %v1555_v34, %v1554_v1  ;;  %v11570_v46 = vunpack.i.l.bf16 %v8081_v23  ;;  %v11571_v21 = vunpack.i.h.bf16 %v8081_v23  ;;  %v5693_v23 = vpop.permute.xlu1 %5692  ;;  %2812 = vmatpush1.bf16.msra.mxu0 %v1868_v48 }
 0x2dc   :  { %v1989_v35 = vmul.bf16 %v1973_v52, %v11572_v57  ;;  %v1946_v28 = vsel %vm459_vm5, %v5684_v20, %v5689_v59  ;;  %v1947_v1 = vsel %vm459_vm5, %v5685_v50, %v5690_v4  ;;  %v5695_v9 = vunpack.i.h.bf16 %v5693_v23 }
 0x2dd   :  { %v1950_v2 = vsel %vm459_vm5, %v11570_v46, %v5684_v20  ;;  %v1951_v41 = vsel %vm459_vm5, %v11571_v21, %v5685_v50  ;;  %v1614_v63 = vmul.bf16 %v1598_v53, %v11565_v37  ;;  %v1615_v34 = vmul.bf16 %v1599_v58, %v11564_v45  ;;  %v5698_v37 = vpop.permute.xlu0 %5697 }
 0x2de   :  { %v1980_v24 = vpack.c.bf16 %v1951_v41, %v1950_v2  ;;  %v5694_v60 = vunpack.i.l.bf16 %v5693_v23  ;;  %v1981_v22 = vpack.c.bf16 %v1947_v1, %v1946_v28  ;;  %v5700_v14 = vunpack.i.h.bf16 %v5698_v37  ;;  %2813 = vmatprep.subr.bf16.mxu0 %v1989_v35 }
 0x2df   :  { %v5699_v25 = vunpack.i.l.bf16 %v5698_v37  ;;  %2909 = vmatprep.subr.bf16.mxu1 %v1615_v34  ;;  %v1988_v53 = vmul.bf16 %v1972_v13, %v11573_v56  ;;  %v11574_v20 = vunpack.i.h.bf16 %v8904_v8  ;;  %v11575_v45 = vunpack.i.l.bf16 %v8205_v42  ;;  %v5703_v28 = vpop.permute.xlu1 %5702 }
 0x2e0   :  { %v11576_v48 = vunpack.i.h.bf16 %v8205_v42  ;;  %v11577_v46 = vunpack.i.l.bf16 %v8904_v8  ;;  %2910 = vmatpush1.bf16.msra.mxu1 %v1614_v63  ;;  %v11578_v21 = vunpack.i.l.bf16 %v8253_v49  ;;  %v11579_v35 = vunpack.i.l.bf16 %v8946_v7 }
 0x2e1   :  { %v1685_v50 = vsel %vm289_vm2, %v11574_v20, %v5695_v9  ;;  %v1680_v52 = vsel %vm289_vm2, %v5694_v60, %v11575_v45  ;;  %v1996_v1 = vmul.bf16 %v1980_v24, %v11573_v56  ;;  %v11580_v8 = vunpack.i.h.bf16 %v8946_v7  ;;  %2814 = vmatpush1.bf16.msra.mxu0 %v1988_v53  ;;  %4881 = vmatmul.mubr.msk.bf16.gmra.mrb[28].mxu1 %vm2582_vm0, %v9064_v38 }
 0x2e2   :  { %v1681_v58 = vsel %vm289_vm2, %v5695_v9, %v11576_v48  ;;  %v1684_v13 = vsel %vm289_vm2, %v11577_v46, %v5694_v60  ;;  %v1682_v41 = vsel %vm289_vm2, %v5699_v25, %v11578_v21  ;;  %v1686_v42 = vsel %vm289_vm2, %v11579_v35, %v5699_v25  ;;  %v5708_v9 = vpop.permute.xlu0 %5707  ;;  %v11588_v21 = vld [vmem:[#allocation28_spill] sm:$0xff]  ;;  %2939 = vmatprep.mubr.bf16.mxu1 %v9101_v12 }
 0x2e3   :  { %v1718_v2 = vpack.c.bf16 %v1685_v50, %v1684_v13  ;;  %v1687_v23 = vsel %vm289_vm2, %v11580_v8, %v5700_v14  ;;  %v5705_v63 = vunpack.i.h.bf16 %v5703_v28  ;;  %v5704_v34 = vunpack.i.l.bf16 %v5703_v28  ;;  %v11589_v8 = vld [vmem:[#allocation39_spill] sm:$0xff] }
 0x2e4   :  { %v1997_v60 = vmul.bf16 %v1981_v22, %v11572_v57  ;;  %v11581_v37 = vunpack.i.h.bf16 %v8253_v49  ;;  %v5710_v25 = vunpack.i.h.bf16 %v5708_v9  ;;  %v5709_v50 = vunpack.i.l.bf16 %v5708_v9  ;;  %v11590_v9 = vld [vmem:[#allocation92_spill] sm:$0xff] }
 0x2e5   :  { %v1719_v7 = vpack.c.bf16 %v1681_v58, %v1680_v52  ;;  %v1726_v24 = vpack.c.bf16 %v1687_v23, %v1686_v42  ;;  %v11582_v56 = vunpack.i.h.bf16 %v8967_v6  ;;  %v11583_v45 = vunpack.i.l.bf16 %v8299_v11 }
 0x2e6   :  { %v1683_v20 = vsel %vm289_vm2, %v5700_v14, %v11581_v37  ;;  %v11584_v57 = vunpack.i.l.bf16 %v8967_v6  ;;  %2815 = vmatprep.subr.bf16.mxu0 %v1997_v60  ;;  %v11585_v14 = vunpack.i.h.bf16 %v8299_v11  ;;  %v11586_v48 = vunpack.i.l.bf16 %v8395_v27  ;;  %v9251_v6 = vpop.permute.xlu1 %5712  ;;  %v5718_v28 = vpop.permute.xlu0 %5717  ;;  %v11591_v60 = vld [vmem:[#allocation88_spill] sm:$0xff] }
 0x2e7   :  { %v1813_v53 = vsel %vm386_vm3, %v11582_v56, %v5705_v63  ;;  %v1808_v49 = vsel %vm386_vm3, %v5704_v34, %v11583_v45  ;;  %v11587_v46 = vunpack.i.h.bf16 %v8395_v27  ;;  %v1735_v35 = vmul.bf16 %v1719_v7, %v11588_v21  ;;  %2816 = vmatpush1.bf16.msra.mxu0 %v1996_v1 }
 0x2e8   :  { %v1812_v22 = vsel %vm386_vm3, %v11584_v57, %v5704_v34  ;;  %v1809_v52 = vsel %vm386_vm3, %v5705_v63, %v11585_v14  ;;  %v2088_v58 = vsel %vm540_vm7, %v11586_v48, %v5709_v50  ;;  %v5715_v11 = vunpack.i.h.bf16 %v9251_v6 }
 0x2e9   :  { %v2089_v13 = vsel %vm540_vm7, %v11587_v46, %v5710_v25  ;;  %v5714_v42 = vunpack.i.l.bf16 %v9251_v6  ;;  %v1734_v23 = vmul.bf16 %v1718_v2, %v11589_v8  ;;  %v1846_v63 = vpack.c.bf16 %v1813_v53, %v1812_v22  ;;  %2911 = vmatprep.subr.bf16.mxu1 %v1735_v35  ;;  %v11598_v46 = vld [vmem:[#allocation87_spill] sm:$0xff] }
 0x2ea   :  { %v5720_v27 = vunpack.i.h.bf16 %v5718_v28  ;;  %v5719_v34 = vunpack.i.l.bf16 %v5718_v28  ;;  %v11592_v37 = vpack.c.bf16 %v11590_v9, %v11591_v60  ;;  %v1727_v56 = vpack.c.bf16 %v1683_v20, %v1682_v41  ;;  %v5723_v22 = vpop.permute.xlu1 %5722  ;;  %v9290_v35 = vpop.permute.xlu0 %5727 }
 0x2eb   :  { %v2116_v7 = vpack.c.bf16 %v2089_v13, %v2088_v58  ;;  %v2085_v12 = vsel %vm540_vm7, %v5710_v25, %v5715_v11  ;;  %v2084_v2 = vsel %vm540_vm7, %v5709_v50, %v5714_v42  ;;  %2912 = vmatpush1.bf16.msra.mxu1 %v1734_v23  ;;  %v1847_v1 = vpack.c.bf16 %v1809_v52, %v1808_v49  ;;  %v11597_v58 = vld [vmem:[#allocation89_spill] sm:$0xff] }
 0x2ec   :  { %2817 = vmatprep.subr.bf16.mxu0 %v11592_v37  ;;  %v11593_v53 = vunpack.i.l.bf16 %v8350_v0  ;;  %v11594_v41 = vunpack.i.h.bf16 %v8350_v0  ;;  %v11595_v57 = vunpack.i.l.bf16 %v9027_v44  ;;  %v1742_v50 = vmul.bf16 %v1726_v24, %v11589_v8  ;;  %v11600_v24 = vld [vmem:[#allocation100_spill] sm:$0xff] }
 0x2ed   :  { %v11596_v49 = vunpack.i.h.bf16 %v9027_v44  ;;  %v1743_v52 = vmul.bf16 %v1727_v56, %v11588_v21  ;;  %v5725_v48 = vunpack.i.h.bf16 %v5723_v22  ;;  %v5724_v0 = vunpack.i.l.bf16 %v5723_v22  ;;  %v11601_v8 = vld [vmem:[#allocation96_spill] sm:$0xff] }
 0x2ee   :  { %v1810_v45 = vsel %vm386_vm3, %v5719_v34, %v11593_v53  ;;  %v1811_v20 = vsel %vm386_vm3, %v5720_v27, %v11594_v41  ;;  %v1814_v25 = vsel %vm386_vm3, %v11595_v57, %v5719_v34  ;;  %v11599_v13 = vpack.c.bf16 %v11597_v58, %v11598_v46  ;;  %v11606_v53 = vld [vmem:[#allocation29_spill] sm:$0xff] }
 0x2ef   :  { %v1815_v14 = vsel %vm386_vm3, %v11596_v49, %v5720_v27  ;;  %v5730_v28 = vunpack.i.h.bf16 %v9290_v35  ;;  %v5729_v23 = vunpack.i.l.bf16 %v9290_v35  ;;  %v11602_v44 = vpack.c.bf16 %v11600_v24, %v11601_v8  ;;  %v11603_v27 = vld [vmem:[#allocation43_spill] sm:$0xff]  ;;  %2913 = vmatprep.subr.bf16.mxu1 %v1743_v52 }
 0x2f0   :  { %2818 = vmatpush1.bf16.msra.mxu0 %v11599_v13  ;;  %v2117_v34 = vpack.c.bf16 %v2085_v12, %v2084_v2  ;;  %v1862_v9 = vmul.bf16 %v1846_v63, %v11603_v27  ;;  %v11604_v21 = vunpack.i.h.bf16 %v8497_v29  ;;  %v11605_v37 = vunpack.i.l.bf16 %v8497_v29  ;;  %2914 = vmatpush1.bf16.msra.mxu1 %v1742_v50  ;;  %v5733_v2 = vpop.permute.xlu1 %5732  ;;  %v11607_v29 = vld [vmem:[#allocation58_spill] sm:$0xff] }
 0x2f1   :  { %2819 = vmatprep.subr.bf16.mxu0 %v11602_v44  ;;  %v1863_v41 = vmul.bf16 %v1847_v1, %v11606_v53  ;;  %v1855_v57 = vpack.c.bf16 %v1811_v20, %v1810_v45  ;;  %v1854_v22 = vpack.c.bf16 %v1815_v14, %v1814_v25  ;;  %v2086_v63 = vsel %vm540_vm7, %v5724_v0, %v5729_v23  ;;  %v11608_v1 = vld [vmem:[#allocation98_spill] sm:$0xff]  ;;  %v11609_v45 = vld [vmem:[#allocation95_spill] sm:$0xff]  ;;  %v5738_v25 = vpop.permute.xlu0 %5737 }
 0x2f2   :  { %v2091_v60 = vsel %vm540_vm7, %v11604_v21, %v5725_v48  ;;  %v2090_v56 = vsel %vm540_vm7, %v11605_v37, %v5724_v0  ;;  %v2087_v12 = vsel %vm540_vm7, %v5725_v48, %v5730_v28  ;;  %v2133_v49 = vmul.bf16 %v2117_v34, %v11607_v29  ;;  %v11611_v48 = vld [vmem:[#allocation66_spill] sm:$0xff] }
 0x2f3   :  { %2915 = vmatprep.subr.bf16.mxu1 %v1863_v41  ;;  %v5735_v52 = vunpack.i.h.bf16 %v5733_v2  ;;  %v5734_v58 = vunpack.i.l.bf16 %v5733_v2  ;;  %v11610_v20 = vpack.c.bf16 %v11608_v1, %v11609_v45  ;;  %v1871_v14 = vmul.bf16 %v1855_v57, %v11606_v53  ;;  %v11616_v1 = vld [vmem:[#allocation32_spill] sm:$0xff] }
 0x2f4   :  { %v2125_v0 = vpack.c.bf16 %v2087_v12, %v2086_v63  ;;  %v2124_v46 = vpack.c.bf16 %v2091_v60, %v2090_v56  ;;  %v5740_v13 = vunpack.i.h.bf16 %v5738_v25  ;;  %v5739_v24 = vunpack.i.l.bf16 %v5738_v25  ;;  %2916 = vmatpush1.bf16.msra.mxu1 %v1862_v9  ;;  %v9345_v57 = vpop.permute.xlu1 %5742 }
 0x2f5   :  { %2820 = vmatpush1.bf16.msra.mxu0 %v11610_v20  ;;  %v2132_v50 = vmul.bf16 %v2116_v7, %v11611_v48  ;;  %v11612_v8 = vunpack.i.l.bf16 %v8335_v33  ;;  %v11613_v34 = vunpack.i.h.bf16 %v8335_v33  ;;  %v1940_v60 = vsel %vm459_vm5, %v5674_v5, %v5734_v58  ;;  %2917 = vmatprep.subr.bf16.mxu1 %v1871_v14  ;;  %v5748_v63 = vpop.permute.xlu0 %5747 }
 0x2f6   :  { %2821 = vmatprep.subr.bf16.mxu0 %v2133_v49  ;;  %v1941_v7 = vsel %vm459_vm5, %v5675_v51, %v5735_v52  ;;  %v11614_v56 = vunpack.i.l.bf16 %v8579_v17  ;;  %v11615_v33 = vunpack.i.h.bf16 %v8579_v17  ;;  %v2141_v5 = vmul.bf16 %v2125_v0, %v11607_v29 }
 0x2f7   :  { %v1936_v44 = vsel %vm459_vm5, %v5734_v58, %v11612_v8  ;;  %v1937_v21 = vsel %vm459_vm5, %v5735_v52, %v11613_v34  ;;  %v1974_v37 = vpack.c.bf16 %v1941_v7, %v1940_v60  ;;  %v5745_v10 = vunpack.i.h.bf16 %v9345_v57 }
 0x2f8   :  { %v2216_v53 = vsel %vm613_vm9, %v11614_v56, %v5739_v24  ;;  %v2217_v41 = vsel %vm613_vm9, %v11615_v33, %v5740_v13  ;;  %v5744_v51 = vunpack.i.l.bf16 %v9345_v57  ;;  %v1870_v12 = vmul.bf16 %v1854_v22, %v11603_v27  ;;  %v11617_v27 = vld [vmem:[#allocation49_spill] sm:$0xff] }
 0x2f9   :  { %2822 = vmatpush1.bf16.msra.mxu0 %v2132_v50  ;;  %v1975_v2 = vpack.c.bf16 %v1937_v21, %v1936_v44  ;;  %v2244_v49 = vpack.c.bf16 %v2217_v41, %v2216_v53  ;;  %v5750_v17 = vunpack.i.h.bf16 %v5748_v63  ;;  %v5749_v52 = vunpack.i.l.bf16 %v5748_v63  ;;  %v11623_v53 = vld [vmem:[#allocation59_spill] sm:$0xff] }
 0x2fa   :  { %2823 = vmatprep.subr.bf16.mxu0 %v2141_v5  ;;  %v2140_v9 = vmul.bf16 %v2124_v46, %v11611_v48  ;;  %v2213_v29 = vsel %vm613_vm9, %v5740_v13, %v5745_v10  ;;  %v2212_v58 = vsel %vm613_vm9, %v5739_v24, %v5744_v51  ;;  %v1990_v22 = vmul.bf16 %v1974_v37, %v11617_v27  ;;  %v5753_v24 = vpop.permute.xlu1 %5752 }
 0x2fb   :  { %v1991_v45 = vmul.bf16 %v1975_v2, %v11616_v1  ;;  %v11618_v20 = vunpack.i.l.bf16 %v8456_v62  ;;  %v11619_v14 = vunpack.i.h.bf16 %v8456_v62  ;;  %v1942_v46 = vsel %vm459_vm5, %v5689_v59, %v5749_v52  ;;  %2918 = vmatpush1.bf16.msra.mxu1 %v1870_v12  ;;  %v9378_v62 = vpop.permute.xlu0 %5757  ;;  %v11620_v59 = vld [vmem:[#allocation67_spill] sm:$0xff] }
 0x2fc   :  { %v1943_v13 = vsel %vm459_vm5, %v5690_v4, %v5750_v17  ;;  %v5755_v50 = vunpack.i.h.bf16 %v5753_v24  ;;  %v5754_v8 = vunpack.i.l.bf16 %v5753_v24  ;;  %v2245_v44 = vpack.c.bf16 %v2213_v29, %v2212_v58  ;;  %v11627_v24 = vld [vmem:[#allocation86_spill] sm:$0xff] }
 0x2fd   :  { %v1938_v25 = vsel %vm459_vm5, %v5749_v52, %v11618_v20  ;;  %v1939_v0 = vsel %vm459_vm5, %v5750_v17, %v11619_v14  ;;  %v1982_v48 = vpack.c.bf16 %v1943_v13, %v1942_v46  ;;  %2824 = vmatpush1.bf16.msra.mxu0 %v2140_v9  ;;  %2919 = vmatprep.subr.bf16.mxu1 %v1991_v45  ;;  %v5760_v34 = vunpack.i.h.bf16 %v9378_v62  ;;  %v11626_v13 = vld [vmem:[#allocation91_spill] sm:$0xff] }
 0x2fe   :  { %v5759_v21 = vunpack.i.l.bf16 %v9378_v62  ;;  %v2260_v60 = vmul.bf16 %v2244_v49, %v11620_v59  ;;  %v1983_v31 = vpack.c.bf16 %v1939_v0, %v1938_v25  ;;  %v11621_v7 = vunpack.i.l.bf16 %v8700_v55  ;;  %v11659_v62 = vld [vmem:[#allocation53_spill] sm:$0xff] }
 0x2ff   :  { %v11622_v37 = vunpack.i.h.bf16 %v8700_v55  ;;  %v2261_v33 = vmul.bf16 %v2245_v44, %v11623_v53  ;;  %v1998_v41 = vmul.bf16 %v1982_v48, %v11617_v27  ;;  %v2215_v12 = vsel %vm613_vm9, %v5755_v50, %v5760_v34  ;;  %2920 = vmatpush1.bf16.msra.mxu1 %v1990_v22  ;;  %v5763_v55 = vpop.permute.xlu1 %5762  ;;  %v9402_v52 = vpop.permute.xlu0 %5767 }
 0x300   :  { %v2218_v4 = vsel %vm613_vm9, %v11621_v7, %v5754_v8  ;;  %v2214_v63 = vsel %vm613_vm9, %v5754_v8, %v5759_v21  ;;  %v1999_v2 = vmul.bf16 %v1983_v31, %v11616_v1  ;;  %v5765_v49 = vunpack.i.h.bf16 %v5763_v55 }
 0x301   :  { %v2219_v56 = vsel %vm613_vm9, %v11622_v37, %v5755_v50  ;;  %v5764_v17 = vunpack.i.l.bf16 %v5763_v55  ;;  %2825 = vmatprep.subr.bf16.mxu0 %v2261_v33  ;;  %v2253_v9 = vpack.c.bf16 %v2215_v12, %v2214_v63  ;;  %v5770_v29 = vunpack.i.h.bf16 %v9402_v52  ;;  %v11632_v63 = vld [vmem:[#allocation90_spill] sm:$0xff]  ;;  %v11633_v12 = vld [vmem:[#allocation85_spill] sm:$0xff] }
 0x302   :  { %v2252_v5 = vpack.c.bf16 %v2219_v56, %v2218_v4  ;;  %v5769_v58 = vunpack.i.l.bf16 %v9402_v52  ;;  %2826 = vmatpush1.bf16.msra.mxu0 %v2260_v60  ;;  %2921 = vmatprep.subr.bf16.mxu1 %v1999_v2  ;;  %v11624_v45 = vunpack.i.h.bf16 %v8806_v15  ;;  %v11625_v22 = vunpack.i.l.bf16 %v8806_v15  ;;  %v11635_v2 = vld [vmem:[#allocation68_spill] sm:$0xff] }
 0x303   :  { %v2269_v20 = vmul.bf16 %v2253_v9, %v11623_v53  ;;  %v2341_v0 = vsel %vm686_vm11, %v5765_v49, %v5770_v29  ;;  %2922 = vmatpush1.bf16.msra.mxu1 %v1998_v41  ;;  %v5773_v46 = vpop.permute.xlu1 %5772  ;;  %v11628_v48 = vpack.c.bf16 %v11626_v13, %v11627_v24  ;;  %v9427_v44 = vpop.permute.xlu0 %5777  ;;  %v11629_v4 = vunpack.i.h.bf16 %v8873_v43  ;;  %v11631_v53 = vld [vmem:[#allocation62_spill] sm:$0xff]  ;;  %v11636_v9 = vld [vmem:[#allocation101_spill] sm:$0xff] }
 0x304   :  { %v2345_v27 = vsel %vm686_vm11, %v11624_v45, %v5765_v49  ;;  %v2344_v1 = vsel %vm686_vm11, %v11625_v22, %v5764_v17  ;;  %v2340_v14 = vsel %vm686_vm11, %v5764_v17, %v5769_v58  ;;  %v2268_v15 = vmul.bf16 %v2252_v5, %v11620_v59  ;;  %v11637_v45 = vld [vmem:[#allocation94_spill] sm:$0xff] }
 0x305   :  { %v2372_v25 = vpack.c.bf16 %v2345_v27, %v2344_v1  ;;  %2923 = vmatprep.subr.bf16.mxu1 %v11628_v48  ;;  %v5775_v50 = vunpack.i.h.bf16 %v5773_v46  ;;  %v5774_v8 = vunpack.i.l.bf16 %v5773_v46  ;;  %2827 = vmatprep.subr.bf16.mxu0 %v2269_v20  ;;  %v2373_v60 = vpack.c.bf16 %v2341_v0, %v2340_v14 }
 0x306   :  { %v5780_v31 = vunpack.i.h.bf16 %v9427_v44  ;;  %v5779_v7 = vunpack.i.l.bf16 %v9427_v44  ;;  %2828 = vmatpush1.bf16.msra.mxu0 %v2268_v15  ;;  %v11630_v37 = vunpack.i.l.bf16 %v8873_v43  ;;  %v11634_v55 = vpack.c.bf16 %v11632_v63, %v11633_v12  ;;  %v11639_v15 = vld [vmem:[#allocation10_spill] sm:$0xff] }
 0x307   :  { %v2347_v59 = vsel %vm686_vm11, %v11629_v4, %v5775_v50  ;;  %v2389_v33 = vmul.bf16 %v2373_v60, %v11631_v53  ;;  %v5783_v43 = vpop.permute.xlu1 %5782  ;;  %v2388_v49 = vmul.bf16 %v2372_v25, %v11635_v2  ;;  %v11638_v27 = vpack.c.bf16 %v11636_v9, %v11637_v45  ;;  %v5793_v20 = vpop.permute.xlu0 %5792  ;;  %v11647_v45 = vld [vmem:[#allocation103_spill] sm:$0xff] }
 0x308   :  { %v2346_v56 = vsel %vm686_vm11, %v11630_v37, %v5774_v8  ;;  %v2342_v41 = vsel %vm686_vm11, %v5774_v8, %v5779_v7  ;;  %v2343_v5 = vsel %vm686_vm11, %v5775_v50, %v5780_v31  ;;  %2924 = vmatpush1.bf16.msra.mxu1 %v11634_v55  ;;  %v5785_v22 = vunpack.i.h.bf16 %v5783_v43 }
 0x309   :  { %v2380_v17 = vpack.c.bf16 %v2347_v59, %v2346_v56  ;;  %2925 = vmatprep.subr.bf16.mxu1 %v11638_v27  ;;  %v5784_v1 = vunpack.i.l.bf16 %v5783_v43  ;;  %2829 = vmatprep.subr.bf16.mxu0 %v2389_v33  ;;  %v2381_v14 = vpack.c.bf16 %v2343_v5, %v2342_v41  ;;  %v5795_v0 = vunpack.i.h.bf16 %v5793_v20 }
 0x30a   :  { %v5794_v46 = vunpack.i.l.bf16 %v5793_v20  ;;  %2830 = vmatpush1.bf16.msra.mxu0 %v2388_v49  ;;  %v11640_v13 = vunpack.i.h.bf16 %v11639_v15  ;;  %v2081_v48 = vsel %vm540_vm7, %v5715_v11, %v5785_v22  ;;  %v11641_v50 = vunpack.i.l.bf16 %v11639_v15  ;;  %v11645_v11 = vld [vmem:[#allocation93_spill] sm:$0xff] }
 0x30b   :  { %v2080_v25 = vsel %vm540_vm7, %v5714_v42, %v5784_v1  ;;  %v11642_v4 = vunpack.i.l.bf16 %v9000_v36  ;;  %v11643_v37 = vunpack.i.h.bf16 %v9000_v36  ;;  %v11644_v42 = vld [vmem:[#allocation99_spill] sm:$0xff]  ;;  %v5788_v33 = vpop.permute.xlu1 %5787  ;;  %v2397_v41 = vmul.bf16 %v2381_v14, %v11631_v53  ;;  %v5808_v55 = vpop.permute.xlu0 %5807 }
 0x30c   :  { %v2109_v24 = vsel %vm540_vm7, %v5785_v22, %v11640_v13  ;;  %v2108_v8 = vsel %vm540_vm7, %v5784_v1, %v11641_v50  ;;  %v2118_v60 = vpack.c.bf16 %v2081_v48, %v2080_v25  ;;  %v11646_v56 = vpack.c.bf16 %v11644_v42, %v11645_v11 }
 0x30d   :  { %v9475_v59 = vsel %vm759_vm12, %v11642_v4, %v5794_v46  ;;  %v9481_v6 = vsel %vm759_vm12, %v11643_v37, %v5795_v0  ;;  %v5790_v63 = vunpack.i.h.bf16 %v5788_v33  ;;  %v5789_v12 = vunpack.i.l.bf16 %v5788_v33  ;;  %2831 = vmatprep.subr.bf16.mxu0 %v2397_v41  ;;  %v11653_v4 = vld [vmem:[#allocation34_spill] sm:$0xff] }
 0x30e   :  { %2926 = vmatpush1.bf16.msra.mxu1 %v11646_v56  ;;  %v2500_v5 = vpack.c.bf16 %v9481_v6, %v9475_v59  ;;  %v2396_v43 = vmul.bf16 %v2380_v17, %v11635_v2  ;;  %v5810_v36 = vunpack.i.h.bf16 %v5808_v55  ;;  %v5809_v49 = vunpack.i.l.bf16 %v5808_v55  ;;  %v11649_v2 = vld [vmem:[#allocation52_spill] sm:$0xff] }
 0x30f   :  { %v2119_v9 = vpack.c.bf16 %v2109_v24, %v2108_v8  ;;  %v11648_v27 = vunpack.i.h.bf16 %v11647_v45  ;;  %v2208_v53 = vsel %vm613_vm9, %v5744_v51, %v5789_v12  ;;  %v2209_v1 = vsel %vm613_vm9, %v5745_v10, %v5790_v63  ;;  %v9519_v51 = vpop.permute.xlu1 %5797 }
 0x310   :  { %2832 = vmatpush1.bf16.msra.mxu0 %v2396_v43  ;;  %v2134_v17 = vmul.bf16 %v2118_v60, %v11649_v2  ;;  %v11650_v20 = vunpack.i.l.bf16 %v11647_v45  ;;  %v11651_v15 = vunpack.i.h.bf16 %v7771_v40  ;;  %v2082_v57 = vsel %vm540_vm7, %v5729_v23, %v5809_v49  ;;  %v5813_v60 = vpop.permute.xlu0 %5812 }
 0x311   :  { %v2237_v22 = vsel %vm613_vm9, %v5790_v63, %v11648_v27  ;;  %v2083_v10 = vsel %vm540_vm7, %v5730_v28, %v5810_v36  ;;  %v11652_v24 = vunpack.i.l.bf16 %v7771_v40  ;;  %v5800_v50 = vunpack.i.h.bf16 %v9519_v51 }
 0x312   :  { %v2236_v14 = vsel %vm613_vm9, %v5789_v12, %v11650_v20  ;;  %v2111_v13 = vsel %vm540_vm7, %v5810_v36, %v11651_v15  ;;  %v2126_v48 = vpack.c.bf16 %v2083_v10, %v2082_v57  ;;  %v5799_v8 = vunpack.i.l.bf16 %v9519_v51  ;;  %v11658_v57 = vld [vmem:[#allocation72_spill] sm:$0xff] }
 0x313   :  { %v2110_v25 = vsel %vm540_vm7, %v5809_v49, %v11652_v24  ;;  %v2135_v23 = vmul.bf16 %v2119_v9, %v11653_v4  ;;  %v5815_v37 = vunpack.i.h.bf16 %v5813_v60  ;;  %v5814_v35 = vunpack.i.l.bf16 %v5813_v60  ;;  %2834 = vmatmul.mubr.bf16.vlgmr.msra.gmra.mrb[16].mxu0 %v8869_v61  ;;  %v5803_v33 = vpop.permute.xlu1 %5802 }
 0x314   :  { %v2127_v28 = vpack.c.bf16 %v2111_v13, %v2110_v25  ;;  %v2469_v40 = vsel %vm759_vm12, %v5795_v0, %v5800_v50  ;;  %v2468_v42 = vsel %vm759_vm12, %v5794_v46, %v5799_v8  ;;  %v2247_v11 = vpack.c.bf16 %v2237_v22, %v2236_v14  ;;  %2843 = vmatprep.mubr.bf16.mxu0 %v8879_v19  ;;  %v9543_v55 = vpop.permute.xlu0 %5817  ;;  %v11656_v22 = vld [vmem:[#allocation55_spill] sm:$0xff] }
 0x315   :  { %v2246_v56 = vpack.c.bf16 %v2209_v1, %v2208_v53  ;;  %2927 = vmatprep.subr.bf16.mxu1 %v2135_v23  ;;  %v2142_v41 = vmul.bf16 %v2126_v48, %v11649_v2  ;;  %v11654_v61 = vunpack.i.h.bf16 %v7782_v39  ;;  %v5805_v0 = vunpack.i.h.bf16 %v5803_v33 }
 0x316   :  { %2928 = vmatpush1.bf16.msra.mxu1 %v2134_v17  ;;  %v5804_v12 = vunpack.i.l.bf16 %v5803_v33  ;;  %v2143_v46 = vmul.bf16 %v2127_v28, %v11653_v4  ;;  %v11655_v43 = vunpack.i.l.bf16 %v7782_v39  ;;  %v5820_v36 = vunpack.i.h.bf16 %v9543_v55  ;;  %v11657_v17 = vld [vmem:[#allocation71_spill] sm:$0xff] }
 0x317   :  { %v2239_v63 = vsel %vm613_vm9, %v5815_v37, %v11654_v61  ;;  %v5819_v49 = vunpack.i.l.bf16 %v9543_v55  ;;  %v2501_v9 = vpack.c.bf16 %v2469_v40, %v2468_v42  ;;  %v2210_v45 = vsel %vm613_vm9, %v5759_v21, %v5814_v35  ;;  %v5926_v55 = vld [vmem:[%s10835_s7] ss:$12 sps:$4 sm:$0xff]  }
 0x318   :  { %v2238_v19 = vsel %vm613_vm9, %v5814_v35, %v11655_v43  ;;  %v2475_v27 = vsel %vm759_vm12, %v5660_v47, %v5805_v0  ;;  %v2474_v39 = vsel %vm759_vm12, %v5659_v54, %v5804_v12  ;;  %2929 = vmatprep.subr.bf16.mxu1 %v2143_v46  ;;  %v2263_v53 = vmul.bf16 %v2247_v11, %v11656_v22  ;;  %v5823_v47 = vpop.permute.xlu1 %5822  ;;  %v5828_v15 = vpop.permute.xlu0 %5827  ;;  %v11662_v11 = vld [vmem:[#allocation14_spill] sm:$0xff] }
 0x319   :  { %v2508_v1 = vpack.c.bf16 %v2475_v27, %v2474_v39  ;;  %v2470_v2 = vsel %vm759_vm12, %v5804_v12, %v5819_v49  ;;  %v2471_v21 = vsel %vm759_vm12, %v5805_v0, %v5820_v36  ;;  %v2517_v3 = vmul.bf16 %v2501_v9, %v11657_v17 }
 0x31a   :  { %v2211_v54 = vsel %vm613_vm9, %v5760_v34, %v5815_v37  ;;  %2930 = vmatpush1.bf16.msra.mxu1 %v2142_v41  ;;  %v5825_v20 = vunpack.i.h.bf16 %v5823_v47  ;;  %v5824_v14 = vunpack.i.l.bf16 %v5823_v47  ;;  %v2255_v13 = vpack.c.bf16 %v2239_v63, %v2238_v19  ;;  %v11665_v19 = vld [vmem:[#allocation16_spill] sm:$0xff] }
 0x31b   :  { %2931 = vmatprep.subr.bf16.mxu1 %v2263_v53  ;;  %2854 = vmatprep.subr.bf16.mxu0 %v2517_v3  ;;  %v2516_v10 = vmul.bf16 %v2500_v5, %v11658_v57  ;;  %v2509_v24 = vpack.c.bf16 %v2471_v21, %v2470_v2  ;;  %v5830_v25 = vunpack.i.h.bf16 %v5828_v15  ;;  %v5829_v48 = vunpack.i.l.bf16 %v5828_v15  ;;  %v11670_v3 = vld [vmem:[#allocation18_spill] sm:$0xff] }
 0x31c   :  { %2844 = vmatmul.mubr.bf16.gmra.mrb[20].mxu0 %v8942_v18  ;;  %v2262_v60 = vmul.bf16 %v2246_v56, %v11659_v62  ;;  %v2254_v34 = vpack.c.bf16 %v2211_v54, %v2210_v45  ;;  %v11660_v4 = vunpack.i.l.bf16 %v8245_v32  ;;  %v11661_v37 = vunpack.i.h.bf16 %v8245_v32  ;;  %v5833_v59 = vpop.permute.xlu1 %5832  ;;  %v5838_v40 = vpop.permute.xlu0 %5837 }
 0x31d   :  { %2855 = vmatpush1.bf16.msra.mxu0 %v2516_v10  ;;  %v2337_v18 = vsel %vm686_vm11, %v5770_v29, %v5825_v20  ;;  %v2336_v6 = vsel %vm686_vm11, %v5769_v58, %v5824_v14  ;;  %v2271_v5 = vmul.bf16 %v2255_v13, %v11656_v22  ;;  %2886 = vmatprep.mubr.bf16.mxu0 %v11538_v16  ;;  %v5835_v32 = vunpack.i.h.bf16 %v5833_v59 }
 0x31e   :  { %v2364_v23 = vsel %vm686_vm11, %v5824_v14, %v11660_v4  ;;  %v2365_v35 = vsel %vm686_vm11, %v5825_v20, %v11661_v37  ;;  %2932 = vmatpush1.bf16.msra.mxu1 %v2262_v60  ;;  %v5834_v28 = vunpack.i.l.bf16 %v5833_v59  ;;  %v2525_v42 = vmul.bf16 %v2509_v24, %v11657_v17  ;;  %v5927_v60 = vld [vmem:[%s10835_s7 + $0x1c] ss:$12 sps:$4 sm:$0xff]  }
 0x31f   :  { %v11663_v56 = vunpack.i.l.bf16 %v11662_v11  ;;  %v11664_v52 = vunpack.i.h.bf16 %v11662_v11  ;;  %2933 = vmatprep.subr.bf16.mxu1 %v2271_v5  ;;  %v2524_v33 = vmul.bf16 %v2508_v1, %v11658_v57  ;;  %v2375_v41 = vpack.c.bf16 %v2365_v35, %v2364_v23  ;;  %v11673_v57 = vld [vmem:[#allocation70_spill] sm:$0xff]  ;;  %v9687_v23 = vld [vmem:[%s10839_s0 + $0x18] sm:$0xff]  ;;  %v9697_v35 = vld [vmem:[%s10839_s0 + $0x10] sm:$0xff] }
 0x320   :  { %v2374_v61 = vpack.c.bf16 %v2337_v18, %v2336_v6  ;;  %2856 = vmatprep.subr.bf16.mxu0 %v2525_v42  ;;  %v2270_v63 = vmul.bf16 %v2254_v34, %v11659_v62  ;;  %v2338_v0 = vsel %vm686_vm11, %v5779_v7, %v5829_v48  ;;  %v2339_v12 = vsel %vm686_vm11, %v5780_v31, %v5830_v25  ;;  %v11668_v7 = vld [vmem:[#allocation56_spill] sm:$0xff]  ;;  %v9692_v37 = vld [vmem:[%s10839_s0 + $0x58] sm:$0xff] }
 0x321   :  { %v2366_v29 = vsel %vm686_vm11, %v5829_v48, %v11663_v56  ;;  %v2367_v58 = vsel %vm686_vm11, %v5830_v25, %v11664_v52  ;;  %v5840_v46 = vunpack.i.h.bf16 %v5838_v40  ;;  %v5839_v43 = vunpack.i.l.bf16 %v5838_v40  ;;  %2857 = vmatpush1.bf16.msra.mxu0 %v2524_v33  ;;  %v11669_v31 = vld [vmem:[#allocation64_spill] sm:$0xff]  ;;  %v11674_v48 = vld [vmem:[#allocation73_spill] sm:$0xff]  ;;  %v9725_v40 = vld [vmem:[%s10839_s0 + $0x88] sm:$0xf] }
 0x322   :  { %v11666_v9 = vunpack.i.l.bf16 %v11665_v19  ;;  %v11667_v27 = vunpack.i.h.bf16 %v11665_v19  ;;  %2934 = vmatpush1.bf16.msra.mxu1 %v2270_v63  ;;  %v2391_v22 = vmul.bf16 %v2375_v41, %v11668_v7  ;;  %v2383_v44 = vpack.c.bf16 %v2367_v58, %v2366_v29  ;;  %v9704_v18 = vld [vmem:[%s10839_s0 + $0x50] sm:$0xff]  ;;  %v5928_v5 = vld [vmem:[%s10835_s7 + $0x18] ss:$12 sps:$4 sm:$0xff]   ;;  %11675 = vst [vmem:[#allocation31_spill] sm:$0xff] %v9725_v40  ;;  %v9765_v41 = vld [vmem:[%s10839_s0 + $0x68] sm:$0xff]  ;;  %v9769_v63 = vpop.permute.xlu1 %2534 }
 0x323   :  { %v2382_v53 = vpack.c.bf16 %v2339_v12, %v2338_v0  ;;  %v2390_v1 = vmul.bf16 %v2374_v61, %v11669_v31  ;;  %v2464_v2 = vsel %vm759_vm12, %v5799_v8, %v5834_v28  ;;  %v2465_v21 = vsel %vm759_vm12, %v5800_v50, %v5835_v32  ;;  %v9736_v56 = vld [vmem:[%s10839_s0 + $0x98] sm:$0xf]  ;;  %v9741_v29 = vld [vmem:[%s10839_s0 + $0x90] sm:$0xf] }
 0x324   :  { %v2492_v45 = vsel %vm759_vm12, %v5834_v28, %v11666_v9  ;;  %v2493_v39 = vsel %vm759_vm12, %v5835_v32, %v11667_v27  ;;  %2935 = vmatprep.subr.bf16.mxu1 %v2391_v22  ;;  %4882 = vmatmul.mubr.msk.bf16.vlgmr.msra.gmra.mrb[16].mxu0 %vm2582_vm0, %v8990_v30  ;;  %v2399_v47 = vmul.bf16 %v2383_v44, %v11668_v7  ;;  %v11671_v54 = vunpack.i.l.bf16 %v11670_v3  ;;  %v9715_v32 = vld [vmem:[%s10839_s0] sm:$0xff] }
 0x325   :  { %v2503_v17 = vpack.c.bf16 %v2493_v39, %v2492_v45  ;;  %2896 = vmatprep.mubr.bf16.mxu0 %v11538_v16  ;;  %v11672_v14 = vunpack.i.h.bf16 %v11670_v3  ;;  %v2502_v51 = vpack.c.bf16 %v2465_v21, %v2464_v2  ;;  %v2398_v50 = vmul.bf16 %v2382_v53, %v11669_v31  ;;  %v9720_v28 = vld [vmem:[%s10839_s0 + $0x40] sm:$0xff]  ;;  %11676 = vst [vmem:[#allocation11_spill] sm:$0xff] %v9736_v56 }
 0x326   :  { %v2494_v20 = vsel %vm759_vm12, %v5839_v43, %v11671_v54  ;;  %2936 = vmatpush1.bf16.msra.mxu1 %v2390_v1  ;;  %v2466_v15 = vsel %vm759_vm12, %v5819_v49, %v5839_v43  ;;  %v2467_v13 = vsel %vm759_vm12, %v5820_v36, %v5840_v46  ;;  %v9667_v49 = vld [vmem:[%s10839_s0 + $0x8] sm:$0xff]  ;;  %v3350_v59 = vpack.c.bf16 %v9692_v37, %v9687_v23  ;;  %v9777_v1 = vpop.permute.xlu1 %2544 }
 0x327   :  { %v2495_v8 = vsel %vm759_vm12, %v5840_v46, %v11672_v14  ;;  %2937 = vmatprep.subr.bf16.mxu1 %v2399_v47  ;;  %v2519_v10 = vmul.bf16 %v2503_v17, %v11673_v57  ;;  %v2510_v25 = vpack.c.bf16 %v2467_v13, %v2466_v15  ;;  %v2518_v62 = vmul.bf16 %v2502_v51, %v11674_v48  ;;  %v9772_v46 = vpop.permute.xlu0 %2539 }
 0x328   :  { %v2511_v24 = vpack.c.bf16 %v2495_v8, %v2494_v20  ;;  %v3348_v34 = vpack.c.bf16 %v9672_v26, %v9667_v49  ;;  %v3349_v6 = vpack.c.bf16 %v9704_v18, %v9697_v35  ;;  %3419 = vmatprep.subr.bf16.mxu0 %v3350_v59  ;;  %v3347_v42 = vpack.c.bf16 %v9720_v28, %v9715_v32 }
 0x329   :  { %v2526_v4 = vmul.bf16 %v2510_v25, %v11674_v48  ;;  %v3356_v11 = vpack.c.bf16 %v9725_v40, %v9725_v40  ;;  %11677 = vst [vmem:[#allocation17_spill] sm:$0xff] %v9741_v29  ;;  %v3358_v52 = vpack.c.bf16 %v9736_v56, %v9736_v56  ;;  %v3357_v58 = vpack.c.bf16 %v9741_v29, %v9741_v29 }
 0x32a   :  { %2938 = vmatpush1.bf16.msra.mxu1 %v2398_v50  ;;  %v2527_v36 = vmul.bf16 %v2511_v24, %v11673_v57  ;;  %3420 = vmatpush1.bf16.xpose.msra.mxu0 %v3349_v6 }
 0x32b   :  { %2960 = vmatprep.subr.bf16.mxu1 %v2519_v10  ;;  %3421 = vmatprep.subr.bf16.mxu0 %v3358_v52  ;;  %v9780_v14 = vpop.permute.xlu0 %2549 }
 0x32c   :  { %4883 = vmatmul.mubr.msk.bf16.gmra.mrb[20].mxu0 %vm2582_vm0, %v9064_v38 }
 0x32d   :  { %2940 = vmatmul.mubr.bf16.vlgmr.msra.gmra.mrb[32].mxu1 %v5926_v55 }
 0x32e   :  { %2961 = vmatpush1.bf16.msra.mxu1 %v2518_v62  ;;  %2949 = vmatprep.mubr.bf16.mxu1 %v5927_v60 }
 0x32f   :  { %2962 = vmatprep.subr.bf16.mxu1 %v2527_v36 }
 0x332   :  { %2963 = vmatpush1.bf16.msra.mxu1 %v2526_v4  ;;  %3422 = vmatpush1.bf16.xpose.msra.mxu0 %v3357_v58 }
 0x333   :  { %3363 = vmatprep.subr.bf16.mxu1 %v3348_v34 }
 0x335   :  { %2950 = vmatmul.mubr.bf16.gmra.mrb[36].mxu1 %v5928_v5 }
 0x336   :  { %2992 = vmatprep.mubr.bf16.mxu1 %v11538_v16 }
 0x33d   :  { %4884 = vmatmul.mubr.msk.bf16.vlgmr.msra.gmra.mrb[32].mxu1 %vm2582_vm0, %v8990_v30  ;;  %v9749_v30 = vld [vmem:[%s10839_s0 + $0x80] sm:$0xf] }
 0x33e   :  { %3002 = vmatprep.mubr.bf16.mxu1 %v11538_v16  ;;  %3364 = vmatpush1.bf16.xpose.msra.mxu1 %v3347_v42  ;;  %11678 = vst [vmem:[#allocation15_spill] sm:$0xff] %v9749_v30  ;;  %v3355_v33 = vpack.c.bf16 %v9749_v30, %v9749_v30  ;;  %v9760_v16 = vld [vmem:[%s10839_s0 + $0x28] sm:$0xff] }
 0x33f   :  { %3365 = vmatprep.subr.bf16.mxu1 %v3356_v11  ;;  %v3352_v61 = vpack.c.bf16 %v9765_v41, %v9760_v16 }
 0x341   :  { %3475 = vmatprep.subr.bf16.mxu0 %v3352_v61 }
 0x345   :  { %4885 = vmatmul.mubr.msk.bf16.gmra.mrb[36].mxu1 %vm2582_vm0, %v9064_v38 }
 0x346   :  { %3366 = vmatpush1.bf16.xpose.msra.mxu1 %v3355_v33  ;;  %v5947_v33 = vmov 1065369472  }
 0x399   :  { %v2676_v0 = vpop.f32.mrb[8].mxu0 }
 0x39a   :  { %v4914_v38 = vadd.f32 %v2676_v0, %v9769_v63  ;;  %v2678_v12 = vpop.f32.mrb[9].mxu0 }
 0x39b   :  { %v4915_v43 = vadd.f32 %v2678_v12, %v9769_v63  ;;  %v2680_v19 = vpop.f32.mrb[10].mxu0 }
 0x39c   :  { %v3045_v9 = vmul.f32 0.1, %v4914_v38  ;;  %v4916_v45 = vadd.f32 %v2680_v19, %v9772_v46  ;;  %v2682_v27 = vpop.f32.mrb[11].mxu0  ;;  %vm3013_vm2 = vcmp.gt.f32.partialorder %v4914_v38, 0.0  ;;  %v9798_v19 = vld [vmem:[%s10839_s0 + $0x60] sm:$0xff] }
 0x39d   :  { %v3046_v39 = vmul.f32 0.1, %v4915_v43  ;;  %v4917_v7 = vadd.f32 %v2682_v27, %v9772_v46  ;;  %vm3014_vm3 = vcmp.gt.f32.partialorder %v4915_v43, 0.0  ;;  %v9803_v27 = vld [vmem:[%s10839_s0 + $0xa8] sm:$0xf] }
 0x39e   :  { %vm3021_vm4 = vcmp.gt.f32.partialorder %v4916_v45, 0.0  ;;  %v3053_v22 = vmul.f32 0.1, %v4916_v45  ;;  %v3077_v53 = vsel %vm3013_vm2, %v4914_v38, %v3045_v9  ;;  %11679 = vst [vmem:[#allocation80_spill] sm:$0xff] %v9803_v27 }
 0x39f   :  { %vm3022_vm5 = vcmp.gt.f32.partialorder %v4917_v7, 0.0  ;;  %v3054_v44 = vmul.f32 0.1, %v4917_v7  ;;  %v3078_v47 = vsel %vm3014_vm3, %v4915_v43, %v3046_v39  ;;  %v9793_v43 = vld [vmem:[%s10839_s0 + $0x20] sm:$0xff] }
 0x3a0   :  { %v3085_v31 = vsel %vm3021_vm4, %v4916_v45, %v3053_v22 }
 0x3a1   :  { %v3331_v2 = vpack.c.bf16 %v3085_v31, %v3077_v53  ;;  %v2686_v21 = vpop.f32.mrb[12].mxu0  ;;  %v3086_v17 = vsel %vm3022_vm5, %v4917_v7, %v3054_v44 }
 0x3a2   :  { %v4918_v3 = vadd.f32 %v2686_v21, %v9777_v1  ;;  %v2688_v54 = vpop.f32.mrb[13].mxu0  ;;  %v3332_v20 = vpack.c.bf16 %v3086_v17, %v3078_v47  ;;  %v3351_v21 = vpack.c.bf16 %v9798_v19, %v9793_v43 }
 0x3a3   :  { %v4919_v8 = vadd.f32 %v2688_v54, %v9777_v1  ;;  %v2690_v51 = vpop.f32.mrb[14].mxu0 }
 0x3a4   :  { %v3061_v50 = vmul.f32 0.1, %v4918_v3  ;;  %v4920_v15 = vadd.f32 %v2690_v51, %v9780_v14  ;;  %v2692_v13 = vpop.f32.mrb[15].mxu0  ;;  %3395 = vmatprep.mubr.bf16.mxu1 %v3332_v20  ;;  %vm3029_vm7 = vcmp.gt.f32.partialorder %v4918_v3, 0.0 }
 0x3a5   :  { %v3062_v57 = vmul.f32 0.1, %v4919_v8  ;;  %v4921_v10 = vadd.f32 %v2692_v13, %v9780_v14  ;;  %3396 = vmatmul.mubr.bf16.vlgmr.msra.gmra.mrb[40].mxu1 %v3331_v2  ;;  %vm3030_vm9 = vcmp.gt.f32.partialorder %v4919_v8, 0.0 }
 0x3a6   :  { %vm3037_vm11 = vcmp.gt.f32.partialorder %v4920_v15, 0.0  ;;  %v3069_v24 = vmul.f32 0.1, %v4920_v15  ;;  %v3093_v48 = vsel %vm3029_vm7, %v4918_v3, %v3061_v50  ;;  %v3360_v3 = vpack.c.bf16 %v9803_v27, %v9803_v27 }
 0x3a7   :  { %vm3038_vm12 = vcmp.gt.f32.partialorder %v4921_v10, 0.0  ;;  %v3070_v25 = vmul.f32 0.1, %v4921_v10  ;;  %v3094_v55 = vsel %vm3030_vm9, %v4919_v8, %v3062_v57  ;;  %v9817_v57 = vld [vmem:[%s10839_s0 + $0xa0] sm:$0xf] }
 0x3a8   :  { %v3101_v62 = vsel %vm3037_vm11, %v4920_v15, %v3069_v24  ;;  %11680 = vst [vmem:[#allocation78_spill] sm:$0xff] %v9817_v57 }
 0x3a9   :  { %v3102_v36 = vsel %vm3038_vm12, %v4921_v10, %v3070_v25  ;;  %v3339_v60 = vpack.c.bf16 %v3101_v62, %v3093_v48  ;;  %v9822_v25 = vld [vmem:[%s10839_s0 + $0x38] sm:$0xff] }
 0x3aa   :  { %v3340_v34 = vpack.c.bf16 %v3102_v36, %v3094_v55  ;;  %v9827_v48 = vld [vmem:[%s10839_s0 + $0x78] sm:$0xff] }
 0x3ac   :  { %v2782_v4 = vpop.f32.mrb[24].mxu1  ;;  %3403 = vmatprep.mubr.bf16.mxu1 %v3340_v34  ;;  %v3359_v34 = vpack.c.bf16 %v9817_v57, %v9817_v57 }
 0x3ad   :  { %v4922_v59 = vadd.f32 %v2782_v4, %v9769_v63  ;;  %v2784_v6 = vpop.f32.mrb[25].mxu1  ;;  %3404 = vmatmul.mubr.bf16.gmra.mrb[44].mxu1 %v3339_v60  ;;  %v3354_v4 = vpack.c.bf16 %v9827_v48, %v9822_v25 }
 0x3ae   :  { %v4923_v5 = vadd.f32 %v2784_v6, %v9769_v63  ;;  %v2786_v42 = vpop.f32.mrb[26].mxu1  ;;  %3411 = vmatprep.mubr.bf16.mxu1 %v5947_v33 }
 0x3af   :  { %v3047_v11 = vmul.f32 0.1, %v4922_v59  ;;  %v4924_v52 = vadd.f32 %v2786_v42, %v9772_v46  ;;  %v2788_v58 = vpop.f32.mrb[27].mxu1  ;;  %vm3015_vm1 = vcmp.gt.f32.partialorder %v4922_v59, 0.0 }
 0x3b0   :  { %v3048_v61 = vmul.f32 0.1, %v4923_v5  ;;  %v4925_v0 = vadd.f32 %v2788_v58, %v9772_v46  ;;  %vm3016_vm6 = vcmp.gt.f32.partialorder %v4923_v5, 0.0 }
 0x3b1   :  { %vm3023_vm8 = vcmp.gt.f32.partialorder %v4924_v52, 0.0  ;;  %v3055_v38 = vmul.f32 0.1, %v4924_v52  ;;  %v3079_v9 = vsel %vm3015_vm1, %v4922_v59, %v3047_v11 }
 0x3b2   :  { %vm3024_vm10 = vcmp.gt.f32.partialorder %v4925_v0, 0.0  ;;  %v3056_v12 = vmul.f32 0.1, %v4925_v0  ;;  %v3080_v22 = vsel %vm3016_vm6, %v4923_v5, %v3048_v61 }
 0x3b3   :  { %v3087_v45 = vsel %vm3023_vm8, %v4924_v52, %v3055_v38 }
 0x3b4   :  { %v3333_v39 = vpack.c.bf16 %v3087_v45, %v3079_v9  ;;  %v2792_v7 = vpop.f32.mrb[28].mxu1  ;;  %v3088_v44 = vsel %vm3024_vm10, %v4925_v0, %v3056_v12  ;;  %v9842_v45 = vld [vmem:[%s10839_s0 + $0x30] sm:$0xff] }
 0x3b5   :  { %v4926_v53 = vadd.f32 %v2792_v7, %v9777_v1  ;;  %v2794_v31 = vpop.f32.mrb[29].mxu1  ;;  %v3334_v2 = vpack.c.bf16 %v3088_v44, %v3080_v22  ;;  %3412 = vmatmul.mubr.bf16.gmra.mrb[48].mxu1 %v5947_v33  ;;  %v9852_v44 = vld [vmem:[%s10839_s0 + $0xb8] sm:$0xf] }
 0x3b6   :  { %v4927_v47 = vadd.f32 %v2794_v31, %v9777_v1  ;;  %v2796_v17 = vpop.f32.mrb[30].mxu1  ;;  %11681 = vst [vmem:[#allocation104_spill] sm:$0xff] %v9852_v44 }
 0x3b7   :  { %v3063_v54 = vmul.f32 0.1, %v4926_v53  ;;  %v4928_v20 = vadd.f32 %v2796_v17, %v9780_v14  ;;  %v2798_v8 = vpop.f32.mrb[31].mxu1  ;;  %3451 = vmatprep.mubr.bf16.mxu0 %v3334_v2  ;;  %vm3031_vm13 = vcmp.gt.f32.partialorder %v4926_v53, 0.0 }
 0x3b8   :  { %v3064_v51 = vmul.f32 0.1, %v4927_v47  ;;  %v4929_v50 = vadd.f32 %v2798_v8, %v9780_v14  ;;  %3452 = vmatmul.mubr.bf16.vlgmr.msra.gmra.mrb[24].mxu0 %v3333_v39  ;;  %vm3032_vm14 = vcmp.gt.f32.partialorder %v4927_v47, 0.0  ;;  %v9847_v39 = vld [vmem:[%s10839_s0 + $0x70] sm:$0xff] }
 0x3b9   :  { %vm3039_vm15 = vcmp.gt.f32.partialorder %v4928_v20, 0.0  ;;  %v3071_v15 = vmul.f32 0.1, %v4928_v20  ;;  %3476 = vmatpush1.bf16.xpose.msra.mxu0 %v3351_v21  ;;  %v3095_v10 = vsel %vm3031_vm13, %v4926_v53, %v3063_v54  ;;  %v3353_v54 = vpack.c.bf16 %v9847_v39, %v9842_v45 }
 0x3ba   :  { %vm3040_vm2 = vcmp.gt.f32.partialorder %v4929_v50, 0.0  ;;  %v3072_v13 = vmul.f32 0.1, %v4929_v50  ;;  %3477 = vmatprep.subr.bf16.mxu0 %v3360_v3  ;;  %v3096_v62 = vsel %vm3032_vm14, %v4927_v47, %v3064_v51  ;;  %v3362_v51 = vpack.c.bf16 %v9852_v44, %v9852_v44 }
 0x3bb   :  { %v3103_v24 = vsel %vm3039_vm15, %v4928_v20, %v3071_v15 }
 0x3bc   :  { %v3104_v55 = vsel %vm3040_vm2, %v4929_v50, %v3072_v13  ;;  %v3341_v36 = vpack.c.bf16 %v3103_v24, %v3095_v10 }
 0x3bd   :  { %v3342_v60 = vpack.c.bf16 %v3104_v55, %v3096_v62 }
 0x3bf   :  { %3459 = vmatprep.mubr.bf16.mxu0 %v3342_v60 }
 0x3c0   :  { %3460 = vmatmul.mubr.bf16.gmra.mrb[28].mxu0 %v3341_v36  ;;  %v9865_v36 = vld [vmem:[%s10839_s0 + $0xb0] sm:$0xf] }
 0x3c1   :  { %3467 = vmatprep.mubr.bf16.mxu0 %v5947_v33  ;;  %3478 = vmatpush1.bf16.xpose.msra.mxu0 %v3359_v34  ;;  %11682 = vst [vmem:[#allocation79_spill] sm:$0xff] %v9865_v36 }
 0x3c2   :  { %3531 = vmatprep.subr.bf16.mxu0 %v3354_v4 }
 0x3c8   :  { %3468 = vmatmul.mubr.bf16.gmra.mrb[32].mxu0 %v5947_v33 }
 0x3f7   :  { %v2888_v59 = vpop.f32.mrb[16].mxu0 }
 0x3f8   :  { %v4930_v6 = vadd.f32 %v2888_v59, %v9769_v63  ;;  %v2890_v5 = vpop.f32.mrb[17].mxu0 }
 0x3f9   :  { %v4931_v42 = vadd.f32 %v2890_v5, %v9769_v63  ;;  %v2892_v11 = vpop.f32.mrb[18].mxu0 }
 0x3fa   :  { %v3049_v52 = vmul.f32 0.1, %v4930_v6  ;;  %v4932_v58 = vadd.f32 %v2892_v11, %v9772_v46  ;;  %v2894_v61 = vpop.f32.mrb[19].mxu0  ;;  %vm3017_vm3 = vcmp.gt.f32.partialorder %v4930_v6, 0.0 }
 0x3fb   :  { %v3050_v0 = vmul.f32 0.1, %v4931_v42  ;;  %v4933_v38 = vadd.f32 %v2894_v61, %v9772_v46  ;;  %vm3018_vm4 = vcmp.gt.f32.partialorder %v4931_v42, 0.0 }
 0x3fc   :  { %vm3025_vm5 = vcmp.gt.f32.partialorder %v4932_v58, 0.0  ;;  %v3057_v12 = vmul.f32 0.1, %v4932_v58  ;;  %v3081_v7 = vsel %vm3017_vm3, %v4930_v6, %v3049_v52 }
 0x3fd   :  { %vm3026_vm7 = vcmp.gt.f32.partialorder %v4933_v38, 0.0  ;;  %v3058_v9 = vmul.f32 0.1, %v4933_v38  ;;  %v3082_v2 = vsel %vm3018_vm4, %v4931_v42, %v3050_v0  ;;  %v3361_v42 = vpack.c.bf16 %v9865_v36, %v9865_v36 }
 0x3fe   :  { %v3089_v22 = vsel %vm3025_vm5, %v4932_v58, %v3057_v12  ;;  %vm5949_vm4 = vmmov 0  }
 0x3ff   :  { %v3335_v53 = vpack.c.bf16 %v3089_v22, %v3081_v7  ;;  %v2898_v31 = vpop.f32.mrb[20].mxu0  ;;  %v3090_v21 = vsel %vm3026_vm7, %v4933_v38, %v3058_v9 }
 0x400   :  { %v4934_v47 = vadd.f32 %v2898_v31, %v9777_v1  ;;  %v2900_v17 = vpop.f32.mrb[21].mxu0  ;;  %v3336_v3 = vpack.c.bf16 %v3090_v21, %v3082_v2 }
 0x401   :  { %v4935_v20 = vadd.f32 %v2900_v17, %v9777_v1  ;;  %v2902_v8 = vpop.f32.mrb[22].mxu0 }
 0x402   :  { %v3065_v50 = vmul.f32 0.1, %v4934_v47  ;;  %v4936_v15 = vadd.f32 %v2902_v8, %v9780_v14  ;;  %v2904_v13 = vpop.f32.mrb[23].mxu0  ;;  %3507 = vmatprep.mubr.bf16.mxu0 %v3336_v3  ;;  %vm3033_vm9 = vcmp.gt.f32.partialorder %v4934_v47, 0.0 }
 0x403   :  { %v3066_v10 = vmul.f32 0.1, %v4935_v20  ;;  %v4937_v24 = vadd.f32 %v2904_v13, %v9780_v14  ;;  %3508 = vmatmul.mubr.bf16.vlgmr.msra.gmra.mrb[24].mxu0 %v3335_v53  ;;  %vm3034_vm11 = vcmp.gt.f32.partialorder %v4935_v20, 0.0 }
 0x404   :  { %vm3041_vm12 = vcmp.gt.f32.partialorder %v4936_v15, 0.0  ;;  %v3073_v62 = vmul.f32 0.1, %v4936_v15  ;;  %3532 = vmatpush1.bf16.xpose.msra.mxu0 %v3353_v54  ;;  %v3097_v60 = vsel %vm3033_vm9, %v4934_v47, %v3065_v50 }
 0x405   :  { %vm3042_vm1 = vcmp.gt.f32.partialorder %v4937_v24, 0.0  ;;  %v3074_v55 = vmul.f32 0.1, %v4937_v24  ;;  %3533 = vmatprep.subr.bf16.mxu0 %v3362_v51  ;;  %v3098_v4 = vsel %vm3034_vm11, %v4935_v20, %v3066_v10 }
 0x406   :  { %v3105_v34 = vsel %vm3041_vm12, %v4936_v15, %v3073_v62 }
 0x407   :  { %v3106_v59 = vsel %vm3042_vm1, %v4937_v24, %v3074_v55  ;;  %v3343_v6 = vpack.c.bf16 %v3105_v34, %v3097_v60 }
 0x408   :  { %v3344_v5 = vpack.c.bf16 %v3106_v59, %v3098_v4 }
 0x40a   :  { %3515 = vmatprep.mubr.bf16.mxu0 %v3344_v5 }
 0x40b   :  { %3516 = vmatmul.mubr.bf16.gmra.mrb[28].mxu0 %v3343_v6 }
 0x40c   :  { %3523 = vmatprep.mubr.bf16.mxu0 %v5947_v33  ;;  %3534 = vmatpush1.bf16.xpose.msra.mxu0 %v3361_v42 }
 0x410   :  { %v2994_v11 = vpop.f32.mrb[32].mxu1 }
 0x411   :  { %v4938_v52 = vadd.f32 %v2994_v11, %v9769_v63  ;;  %v2996_v58 = vpop.f32.mrb[33].mxu1 }
 0x412   :  { %v4939_v61 = vadd.f32 %v2996_v58, %v9769_v63  ;;  %v2998_v0 = vpop.f32.mrb[34].mxu1 }
 0x413   :  { %v3051_v38 = vmul.f32 0.1, %v4938_v52  ;;  %v4940_v12 = vadd.f32 %v2998_v0, %v9772_v46  ;;  %v3000_v9 = vpop.f32.mrb[35].mxu1  ;;  %3524 = vmatmul.mubr.bf16.gmra.mrb[32].mxu0 %v5947_v33  ;;  %vm3019_vm6 = vcmp.gt.f32.partialorder %v4938_v52, 0.0 }
 0x414   :  { %v3052_v7 = vmul.f32 0.1, %v4939_v61  ;;  %v4941_v22 = vadd.f32 %v3000_v9, %v9772_v46  ;;  %vm3020_vm8 = vcmp.gt.f32.partialorder %v4939_v61, 0.0 }
 0x415   :  { %vm3027_vm10 = vcmp.gt.f32.partialorder %v4940_v12, 0.0  ;;  %v3059_v53 = vmul.f32 0.1, %v4940_v12  ;;  %v3083_v2 = vsel %vm3019_vm6, %v4938_v52, %v3051_v38 }
 0x416   :  { %vm3028_vm13 = vcmp.gt.f32.partialorder %v4941_v22, 0.0  ;;  %v3060_v31 = vmul.f32 0.1, %v4941_v22  ;;  %v3084_v17 = vsel %vm3020_vm8, %v4939_v61, %v3052_v7 }
 0x417   :  { %v3091_v21 = vsel %vm3027_vm10, %v4940_v12, %v3059_v53 }
 0x418   :  { %v3337_v47 = vpack.c.bf16 %v3091_v21, %v3083_v2  ;;  %v3004_v63 = vpop.f32.mrb[36].mxu1  ;;  %v3092_v3 = vsel %vm3028_vm13, %v4941_v22, %v3060_v31  ;;  %v5889_v22 = vld [vmem:[%s10840_s9] sm:$0xff]  }
 0x419   :  { %v4942_v54 = vadd.f32 %v3004_v63, %v9777_v1  ;;  %v3006_v20 = vpop.f32.mrb[37].mxu1  ;;  %v3338_v8 = vpack.c.bf16 %v3092_v3, %v3084_v17  ;;  %4902 = vmatprep.mubr.msk.bf16.mxu1 %vm2582_vm0, %v5889_v22 }
 0x41a   :  { %v4943_v51 = vadd.f32 %v3006_v20, %v9777_v1  ;;  %v3008_v50 = vpop.f32.mrb[38].mxu1 }
 0x41b   :  { %v3067_v15 = vmul.f32 0.1, %v4942_v54  ;;  %v4944_v46 = vadd.f32 %v3008_v50, %v9780_v14  ;;  %v3010_v13 = vpop.f32.mrb[39].mxu1  ;;  %3563 = vmatprep.mubr.bf16.mxu0 %v3338_v8  ;;  %vm3035_vm14 = vcmp.gt.f32.partialorder %v4942_v54, 0.0 }
 0x41c   :  { %v3068_v10 = vmul.f32 0.1, %v4943_v51  ;;  %v4945_v24 = vadd.f32 %v3010_v13, %v9780_v14  ;;  %3564 = vmatmul.mubr.bf16.vlgmr.msra.gmra.mrb[24].mxu0 %v3337_v47  ;;  %vm3036_vm15 = vcmp.gt.f32.partialorder %v4943_v51, 0.0 }
 0x41d   :  { %vm3043_vm2 = vcmp.gt.f32.partialorder %v4944_v46, 0.0  ;;  %v3075_v62 = vmul.f32 0.1, %v4944_v46  ;;  %v3099_v60 = vsel %vm3035_vm14, %v4942_v54, %v3067_v15 }
 0x41e   :  { %vm3044_vm3 = vcmp.gt.f32.partialorder %v4945_v24, 0.0  ;;  %v3076_v55 = vmul.f32 0.1, %v4945_v24  ;;  %v3100_v4 = vsel %vm3036_vm15, %v4943_v51, %v3068_v10 }
 0x41f   :  { %v3107_v34 = vsel %vm3043_vm2, %v4944_v46, %v3075_v62 }
 0x420   :  { %v3108_v1 = vsel %vm3044_vm3, %v4945_v24, %v3076_v55  ;;  %v3345_v59 = vpack.c.bf16 %v3107_v34, %v3099_v60  ;;  %v11683_v24 = vld [vmem:[#allocation4_spill] sm:$0xff] }
 0x421   :  { %v3346_v6 = vpack.c.bf16 %v3108_v1, %v3100_v4 }
 0x423   :  { %3571 = vmatprep.mubr.bf16.mxu0 %v3346_v6  ;;  %v5890_v6 = vld [vmem:[%s10840_s9 + $0x8] sm:$0xff]  }
 0x424   :  { %3572 = vmatmul.mubr.bf16.gmra.mrb[28].mxu0 %v3345_v59 }
 0x425   :  { %3579 = vmatprep.mubr.bf16.mxu0 %v5947_v33 }
 0x42c   :  { %3580 = vmatmul.mubr.bf16.gmra.mrb[32].mxu0 %v5947_v33 }
 0x478   :  { %v3397_v5 = vpop.f32.mrb[40].mxu1 }
 0x479   :  { %v3399_v14 = vpop.f32.mrb[41].mxu1 }
 0x47a   :  { %v3400_v42 = vpop.f32.mrb[42].mxu1  ;;  %v3609_v14 = vpop.permute.xlu1 %3608 }
 0x47b   :  { %v3402_v11 = vpop.f32.mrb[43].mxu1 }
 0x47e   :  { %v3619_v11 = vpop.permute.xlu1 %3618 }
 0x480   :  { %v3405_v52 = vpop.f32.mrb[44].mxu1 }
 0x481   :  { %v3407_v58 = vpop.f32.mrb[45].mxu1 }
 0x482   :  { %v3408_v61 = vpop.f32.mrb[46].mxu1 }
 0x483   :  { %v3410_v0 = vpop.f32.mrb[47].mxu1 }
 0x488   :  { %v3413_v38 = vpop.f32.mrb[48].mxu1 }
 0x489   :  { %v3415_v12 = vpop.f32.mrb[49].mxu1 }
 0x48a   :  { %v3416_v9 = vpop.f32.mrb[50].mxu1 }
 0x48b   :  { %v3417_v7 = vpop.f32.mrb[51].mxu1 }
 0x4ef   :  { %v3565_v53 = vpop.f32.mrb[24].mxu0 }
 0x4f0   :  { %v4946_v33 = vadd.f32 %v3565_v53, %v3397_v5  ;;  %v3567_v31 = vpop.f32.mrb[25].mxu0  ;;  %v5948_v5 = vmov 0.0  }
 0x4f1   :  { %v3568_v2 = vpop.f32.mrb[26].mxu0 }
 0x4f2   :  { %v4947_v21 = vadd.f32 %v3568_v2, %v3400_v42  ;;  %v3570_v47 = vpop.f32.mrb[27].mxu0  ;;  %v3614_v42 = vpop.permute.xlu0 %3613 }
 0x4f6   :  { %v3624_v0 = vpop.permute.xlu0 %3623 }
 0x4f7   :  { %v3573_v63 = vpop.f32.mrb[28].mxu0 }
 0x4f8   :  { %v4948_v17 = vadd.f32 %v3573_v63, %v3405_v52  ;;  %v3575_v3 = vpop.f32.mrb[29].mxu0 }
 0x4f9   :  { %v3576_v54 = vpop.f32.mrb[30].mxu0 }
 0x4fa   :  { %v4949_v20 = vadd.f32 %v3576_v54, %v3408_v61  ;;  %v3578_v8 = vpop.f32.mrb[31].mxu0 }
 0x4fb   :  { %v5950_v8 = vmov 1  }
 0x4fc   :  { %5841 = vset.pattern.permute.xlu1 %v5950_v8 }
 0x4ff   :  { %v3581_v51 = vpop.f32.mrb[32].mxu0 }
 0x500   :  { %v4950_v50 = vadd.f32 %v3581_v51, %v3413_v38  ;;  %v3583_v15 = vpop.f32.mrb[33].mxu0  ;;  %v3710_v51 = vpop.permute.xlu1 %3709 }
 0x501   :  { %v3584_v46 = vpop.f32.mrb[34].mxu0 }
 0x502   :  { %5923 = vrcp.f32 %v4950_v50  ;;  %v3585_v13 = vpop.f32.mrb[35].mxu0 }
 0x50c   :  { %v5924_v10 = vpop.eup %5923 }
 0x50d   :  { %v3591_v62 = vrot.slane %v5924_v10, %v11683_v24 }
 0x50f   :  { %v3592_v55 = vmul.f32 %v4946_v33, %v3591_v62  ;;  %v3593_v60 = vmul.f32 %v4947_v21, %v3591_v62  ;;  %v3594_v34 = vmul.f32 %v4948_v17, %v3591_v62  ;;  %v3595_v4 = vmul.f32 %v4949_v20, %v3591_v62  ;;  %v3703_v20 = vld [vmem:[%s10841_s11] sm:$0x1] }
 0x510   :  { %v5951_v62 = vmov 3  }
 0x511   :  { %v3600_v1 = vpack.c.bf16 %v3593_v60, %v3592_v55  ;;  %v3601_v59 = vpack.c.bf16 %v3595_v4, %v3594_v34  ;;  %v5952_v55 = vmov 2   ;;  %v5953_v60 = vmov 4  }
 0x512   :  { %v5954_v34 = vmov 5   ;;  %v5955_v4 = vmov 6  }
 0x513   :  { %4898 = vmatprep.subr.bf16.mxu1 %v3600_v1 }
 0x514   :  { %4899 = vmatpush3.bf16.msra.mxu1 %v3600_v1  ;;  %v5956_v1 = vmov 8  }
 0x515   :  { %4900 = vmatprep.subr.bf16.mxu1 %v3601_v59 }
 0x518   :  { %4901 = vmatpush3.bf16.msra.mxu1 %v3601_v59  ;;  %v5957_v59 = vmov 7  }
 0x519   :  { %4906 = vmatprep.subr.bf16.mxu1 %v5948_v5 }
 0x51b   :  { %4903 = vmatmul.mubr.msk.bf16.vlgmr.msra.gmra.mrb[52].mxu1 %vm2582_vm0, %v5890_v6  ;;  %v5958_v6 = vmov 11  }
 0x51c   :  { %4910 = vmatprep.mubr.msk.bf16.mxu1 %vm5949_vm4, %v5948_v5 }
 0x5ee   :  { %v4904_v52 = vpop.f32.mrb[52].mxu1 }
 0x5ef   :  { %v3685_v58 = vadd.f32 %v4904_v52, %v3619_v11  ;;  %v3676_v61 = vpop.f32.mrb[53].mxu1  ;;  %v5962_v11 = vmov 17   ;;  %v5963_v52 = vmov 12  }
 0x5f0   :  { %v3677_v38 = vadd.f32 %v3676_v61, %v3609_v14  ;;  %v4905_v12 = vpop.f32.mrb[54].mxu1  ;;  %v5960_v14 = vmov 14   ;;  %v5965_v61 = vmov 13  }
 0x5f1   :  { %v3697_v9 = vmul.f32 0.1, %v3685_v58  ;;  %v3688_v7 = vadd.f32 %v4905_v12, %v3624_v0  ;;  %v3679_v22 = vpop.f32.mrb[55].mxu1  ;;  %vm3693_vm5 = vcmp.gt.f32.partialorder %v3685_v58, 0.0  ;;  %v5966_v0 = vmov 15  }
 0x5f2   :  { %v3695_v53 = vmul.f32 0.1, %v3677_v38  ;;  %v3680_v33 = vadd.f32 %v3679_v22, %v3614_v42  ;;  %vm3691_vm7 = vcmp.gt.f32.partialorder %v3677_v38, 0.0  ;;  %v5961_v42 = vmov 10  }
 0x5f3   :  { %vm3694_vm9 = vcmp.gt.f32.partialorder %v3688_v7, 0.0  ;;  %v3698_v31 = vmul.f32 0.1, %v3688_v7  ;;  %v3701_v21 = vsel %vm3693_vm5, %v3685_v58, %v3697_v9  ;;  %v5964_v58 = vmov 19   ;;  %v10122_v9 = vld [vmem:[%s10839_s0 + $0x58] sm:$0xff] }
 0x5f4   :  { %vm3692_vm11 = vcmp.gt.f32.partialorder %v3680_v33, 0.0  ;;  %v3696_v2 = vmul.f32 0.1, %v3680_v33  ;;  %v3699_v63 = vsel %vm3691_vm7, %v3677_v38, %v3695_v53  ;;  %v5967_v38 = vmov 16   ;;  %v11685_v53 = vld [vmem:[#allocation6_spill] sm:$0xff]  ;;  %11692 = vst [vmem:[#allocation19_spill] sm:$0xff] %v10122_v9 }
 0x5f5   :  { %v3702_v47 = vsel %vm3694_vm9, %v3688_v7, %v3698_v31  ;;  %v5968_v12 = vmov 18   ;;  %v11684_v7 = vld [vmem:[#allocation5_spill] sm:$0xff]  ;;  %v11686_v31 = vld [vmem:[#allocation7_spill] sm:$0xff] }
 0x5f6   :  { %v3705_v17 = vpack.c.bf16 %v3702_v47, %v3701_v21  ;;  %v3700_v3 = vsel %vm3692_vm11, %v3680_v33, %v3696_v2  ;;  %v3791_v2 = vrot.slane %v9822_v25, %v11683_v24  ;;  %v10108_v21 = vld [vmem:[%s10839_s0 + $0x48] sm:$0xff]  ;;  %v10153_v47 = vld [vmem:[%s10839_s0 + $0x40] sm:$0xff] }
 0x5f7   :  { %v3704_v54 = vpack.c.bf16 %v3700_v3, %v3699_v63  ;;  %11690 = vst [vmem:[#allocation82_spill] sm:$0xff] %v10108_v21  ;;  %11693 = vst [vmem:[#allocation97_spill] sm:$0xff] %v10153_v47  ;;  %v10184_v33 = vld [vmem:[%s10839_s0 + $0x68] sm:$0xff] }
 0x5f8   :  { %11694 = vst [vmem:[#allocation8_spill] sm:$0xff] %v10184_v33 }
 0x5f9   :  { %4907 = vmatpush3.bf16.msra.mxu1 %v3704_v54  ;;  %v3787_v54 = vrot.slane %v9842_v45, %v11683_v24 }
 0x5fa   :  { %4908 = vmatprep.subr.bf16.mxu1 %v5948_v5  ;;  %v5959_v5 = vmov 9  }
 0x5fd   :  { %4909 = vmatpush3.bf16.msra.mxu1 %v3705_v17  ;;  %v10115_v17 = vld [vmem:[%s10839_s0 + $0x50] sm:$0xff] }
 0x5fe   :  { %11691 = vst [vmem:[#allocation12_spill] sm:$0xff] %v10115_v17 }
 0x600   :  { %4911 = vmatmul.mubr.msk.bf16.vlgmr.msra.gmra.mrb[56].mxu1 %vm2582_vm0, %v3703_v20 }
 0x6d3   :  { %v3749_v50 = vpop.f32.mrb[56].mxu1 }
 0x6d4   :  { %v3750_v15 = vadd.f32 %v3749_v50, %v3710_v51  ;;  %v4912_v46 = vpop.f32.mrb[57].mxu1 }
 0x6d5   :  { %v3752_v13 = vpop.f32.mrb[58].mxu1  ;;  %v3783_v46 = vrot.slane %v9760_v16, %v11683_v24 }
 0x6d6   :  { %3801 = vperm.xlu1 %5841, %v3750_v15   ;;  %3757 = vperm.xlu0 %5199, %v3750_v15   ;;  %v4913_v10 = vpop.f32.mrb[59].mxu1 }
 0x6d7   :  { %v11687_v10 = vld [vmem:[#allocation2_spill] sm:$0xff] }
 0x6d8   :  { %v9981_v3 = vsub.s32 4, %v11687_v10  ;;  %v9998_v63 = vsub.s32 5, %v11687_v10  ;;  %v10015_v20 = vsub.s32 6, %v11687_v10  ;;  %v10056_v22 = vsub.s32 7, %v11687_v10  ;;  %v10087_v10 = vld [vmem:[%s10839_s0 + $0x8] sm:$0xff] }
 0x6d9   :  { %11689 = vst [vmem:[#allocation84_spill] sm:$0xff] %v10087_v10 }
 0x6da   :  { %5843 = vset.pattern.permute.xlu1 %v5951_v62  ;;  %5842 = vset.pattern.permute.xlu0 %v5952_v55  ;;  %11688 = vst [vmem:[#allocation77_spill] sm:$0xff] %v10056_v22  ;;  %v10195_v62 = vld [vmem:[%s10839_s0 + $0x80] sm:$0xf]  ;;  %v10202_v55 = vld [vmem:[%s10839_s0 + $0x90] sm:$0xf] }
 0x6db   :  { %3905 = vperm.xlu1 %5843, %v3750_v15   ;;  %3853 = vperm.xlu0 %5842, %v3750_v15   ;;  %11695 = vst [vmem:[#allocation13_spill] sm:$0xff] %v10195_v62  ;;  %11696 = vst [vmem:[#allocation83_spill] sm:$0xff] %v10202_v55 }
 0x6df   :  { %5844 = vset.pattern.permute.xlu1 %v5953_v60  ;;  %5845 = vset.pattern.permute.xlu0 %v5954_v34  ;;  %v3779_v34 = vrot.slane %v9793_v43, %v11683_v24 }
 0x6e0   :  { %3957 = vperm.xlu1 %5844, %v3750_v15   ;;  %4009 = vperm.xlu0 %5845, %v3750_v15  }
 0x6e4   :  { %5846 = vset.pattern.permute.xlu1 %v5955_v4  ;;  %5848 = vset.pattern.permute.xlu0 %v5956_v1 }
 0x6e5   :  { %4061 = vperm.xlu1 %5846, %v3750_v15   ;;  %4165 = vperm.xlu0 %5848, %v3750_v15  }
 0x6e9   :  { %5847 = vset.pattern.permute.xlu1 %v5957_v59  ;;  %5851 = vset.pattern.permute.xlu0 %v5958_v6  ;;  %v3807_v59 = vrot.slane %v9715_v32, %v11684_v7  ;;  %v3811_v6 = vrot.slane %v9667_v49, %v11684_v7 }
 0x6ea   :  { %4113 = vperm.xlu1 %5847, %v3750_v15   ;;  %4321 = vperm.xlu0 %5851, %v3750_v15  }
 0x6ee   :  { %5849 = vset.pattern.permute.xlu1 %v5959_v5  ;;  %5854 = vset.pattern.permute.xlu0 %v5960_v14  ;;  %v3815_v5 = vrot.slane %v9697_v35, %v11684_v7  ;;  %v3819_v14 = vrot.slane %v9687_v23, %v11684_v7 }
 0x6ef   :  { %4217 = vperm.xlu1 %5849, %v3750_v15   ;;  %4477 = vperm.xlu0 %5854, %v3750_v15  }
 0x6f3   :  { %5850 = vset.pattern.permute.xlu1 %v5961_v42  ;;  %5857 = vset.pattern.permute.xlu0 %v5962_v11  ;;  %v3823_v42 = vrot.slane %v9793_v43, %v11684_v7  ;;  %v3827_v11 = vrot.slane %v9760_v16, %v11684_v7 }
 0x6f4   :  { %4269 = vperm.xlu1 %5850, %v3750_v15   ;;  %4633 = vperm.xlu0 %5857, %v3750_v15  }
 0x6f8   :  { %5852 = vset.pattern.permute.xlu1 %v5963_v52  ;;  %5860 = vset.pattern.permute.xlu0 %v5964_v58  ;;  %v3831_v52 = vrot.slane %v9842_v45, %v11684_v7 }
 0x6f9   :  { %4373 = vperm.xlu1 %5852, %v3750_v15  }
 0x6fd   :  { %5853 = vset.pattern.permute.xlu1 %v5965_v61  ;;  %v3763_v61 = vrot.slane %v9715_v32, %v11683_v24 }
 0x6fe   :  { %4425 = vperm.xlu1 %5853, %v3750_v15  }
 0x702   :  { %5855 = vset.pattern.permute.xlu1 %v5966_v0  ;;  %v3767_v0 = vrot.slane %v9667_v49, %v11683_v24 }
 0x703   :  { %4529 = vperm.xlu1 %5855, %v3750_v15  }
 0x707   :  { %5856 = vset.pattern.permute.xlu1 %v5967_v38  ;;  %v3771_v38 = vrot.slane %v9697_v35, %v11683_v24 }
 0x708   :  { %4581 = vperm.xlu1 %5856, %v3750_v15  }
 0x70c   :  { %5858 = vset.pattern.permute.xlu1 %v5968_v12  ;;  %v3775_v12 = vrot.slane %v9687_v23, %v11683_v24 }
 0x70d   :  { %4685 = vperm.xlu1 %5858, %v3750_v15  }
 0x711   :  { %5859 = vset.pattern.permute.xlu1 %v5964_v58  ;;  %v3835_v58 = vrot.slane %v9822_v25, %v11684_v7 }
 0x712   :  { %4737 = vperm.xlu1 %5859, %v3750_v15  }
 0x755   :  { %v3802_v60 = vpop.permute.xlu1 %3801  ;;  %v3758_v1 = vpop.permute.xlu0 %3757 }
 0x756   :  { %v3836_v51 = vmul.f32 %v3807_v59, %v3802_v60  ;;  %v3837_v15 = vmul.f32 %v3811_v6, %v3802_v60  ;;  %v3838_v50 = vmul.f32 %v3815_v5, %v3802_v60  ;;  %v3839_v4 = vmul.f32 %v3819_v14, %v3802_v60 }
 0x757   :  { %v3840_v8 = vmul.f32 %v3823_v42, %v3802_v60  ;;  %v3841_v59 = vmul.f32 %v3827_v11, %v3802_v60  ;;  %v3842_v6 = vmul.f32 %v3831_v52, %v3802_v60  ;;  %v3843_v5 = vmul.f32 %v3835_v58, %v3802_v60 }
 0x758   :  { %v3792_v14 = vmul.f32 %v3763_v61, %v3758_v1  ;;  %v3793_v42 = vmul.f32 %v3767_v0, %v3758_v1  ;;  %v3794_v11 = vmul.f32 %v3771_v38, %v3758_v1  ;;  %v3795_v52 = vmul.f32 %v3775_v12, %v3758_v1 }
 0x759   :  { %v3796_v60 = vmul.f32 %v3779_v34, %v3758_v1  ;;  %v3797_v58 = vmul.f32 %v3783_v46, %v3758_v1  ;;  %v3798_v61 = vmul.f32 %v3787_v54, %v3758_v1  ;;  %v3799_v0 = vmul.f32 %v3791_v2, %v3758_v1 }
 0x75a   :  { %v3844_v38 = vadd.f32 %v3836_v51, %v3792_v14  ;;  %v3845_v13 = vadd.f32 %v3837_v15, %v3793_v42  ;;  %v3846_v29 = vadd.f32 %v3838_v50, %v3794_v11  ;;  %v3847_v12 = vadd.f32 %v3839_v4, %v3795_v52  ;;  %v3906_v30 = vpop.permute.xlu1 %3905  ;;  %v3854_v57 = vpop.permute.xlu0 %3853 }
 0x75b   :  { %v3848_v44 = vadd.f32 %v3840_v8, %v3796_v60  ;;  %v3849_v36 = vadd.f32 %v3841_v59, %v3797_v58  ;;  %v3850_v34 = vadd.f32 %v3842_v6, %v3798_v61  ;;  %v3851_v27 = vadd.f32 %v3843_v5, %v3799_v0 }
 0x75c   :  { %v11697_v46 = vrot.slane %v9715_v32, %v11686_v31  ;;  %v11698_v54 = vrot.slane %v9667_v49, %v11686_v31  ;;  %v11699_v2 = vrot.slane %v9697_v35, %v11686_v31  ;;  %v11700_v50 = vrot.slane %v9687_v23, %v11686_v31 }
 0x75d   :  { %v11701_v15 = vrot.slane %v9793_v43, %v11686_v31  ;;  %v11702_v1 = vrot.slane %v9760_v16, %v11686_v31  ;;  %v11703_v6 = vrot.slane %v9842_v45, %v11686_v31  ;;  %v11704_v14 = vrot.slane %v9822_v25, %v11686_v31 }
 0x75e   :  { %v3940_v56 = vmul.f32 %v11697_v46, %v3906_v30  ;;  %v3941_v55 = vmul.f32 %v11698_v54, %v3906_v30  ;;  %v3942_v51 = vmul.f32 %v11699_v2, %v3906_v30  ;;  %v3943_v8 = vmul.f32 %v11700_v50, %v3906_v30 }
 0x75f   :  { %v3944_v4 = vmul.f32 %v11701_v15, %v3906_v30  ;;  %v3945_v59 = vmul.f32 %v11702_v1, %v3906_v30  ;;  %v3946_v5 = vmul.f32 %v11703_v6, %v3906_v30  ;;  %v3947_v42 = vmul.f32 %v11704_v14, %v3906_v30  ;;  %v3958_v7 = vpop.permute.xlu1 %3957 }
 0x760   :  { %v11705_v11 = vrot.slane %v9715_v32, %v11685_v53  ;;  %v11706_v60 = vrot.slane %v9667_v49, %v11685_v53  ;;  %v11707_v61 = vrot.slane %v9697_v35, %v11685_v53  ;;  %v11708_v46 = vrot.slane %v9687_v23, %v11685_v53 }
 0x761   :  { %v11709_v2 = vrot.slane %v9793_v43, %v11685_v53  ;;  %v11710_v50 = vrot.slane %v9760_v16, %v11685_v53  ;;  %v11711_v1 = vrot.slane %v9842_v45, %v11685_v53  ;;  %v11712_v14 = vrot.slane %v9822_v25, %v11685_v53 }
 0x762   :  { %v3888_v52 = vmul.f32 %v11705_v11, %v3854_v57  ;;  %v3889_v58 = vmul.f32 %v11706_v60, %v3854_v57  ;;  %v3890_v0 = vmul.f32 %v11707_v61, %v3854_v57  ;;  %v3891_v54 = vmul.f32 %v11708_v46, %v3854_v57 }
 0x763   :  { %v3892_v30 = vmul.f32 %v11709_v2, %v3854_v57  ;;  %v3893_v15 = vmul.f32 %v11710_v50, %v3854_v57  ;;  %v3894_v6 = vmul.f32 %v11711_v1, %v3854_v57  ;;  %v3895_v11 = vmul.f32 %v11712_v14, %v3854_v57 }
 0x764   :  { %v3896_v60 = vadd.f32 %v3888_v52, %v3844_v38  ;;  %v3897_v61 = vadd.f32 %v3889_v58, %v3845_v13  ;;  %v3898_v40 = vadd.f32 %v3890_v0, %v3846_v29  ;;  %v3899_v46 = vadd.f32 %v3891_v54, %v3847_v12 }
 0x765   :  { %v3900_v62 = vadd.f32 %v3892_v30, %v3848_v44  ;;  %v3901_v33 = vadd.f32 %v3893_v15, %v3849_v36  ;;  %v3902_v47 = vadd.f32 %v3894_v6, %v3850_v34  ;;  %v3903_v2 = vadd.f32 %v3895_v11, %v3851_v27  ;;  %v4062_v30 = vpop.permute.xlu1 %4061 }
 0x766   :  { %v3948_v9 = vadd.f32 %v3940_v56, %v3896_v60  ;;  %v3949_v17 = vadd.f32 %v3941_v55, %v3897_v61  ;;  %v3950_v50 = vadd.f32 %v3942_v51, %v3898_v40  ;;  %v3951_v21 = vadd.f32 %v3943_v8, %v3899_v46  ;;  %v4010_v8 = vpop.permute.xlu0 %4009 }
 0x767   :  { %v3952_v31 = vadd.f32 %v3944_v4, %v3900_v62  ;;  %v3953_v10 = vadd.f32 %v3945_v59, %v3901_v33  ;;  %v3954_v1 = vadd.f32 %v3946_v5, %v3902_v47  ;;  %v3955_v22 = vadd.f32 %v3947_v42, %v3903_v2 }
 0x768   :  { %v11713_v57 = vrot.slane %v9715_v32, %v9981_v3  ;;  %v11714_v29 = vrot.slane %v9667_v49, %v9981_v3  ;;  %v11715_v27 = vrot.slane %v9697_v35, %v9981_v3  ;;  %v11716_v40 = vrot.slane %v9687_v23, %v9981_v3 }
 0x769   :  { %v11717_v33 = vrot.slane %v9793_v43, %v9981_v3  ;;  %v11718_v13 = vrot.slane %v9760_v16, %v9981_v3  ;;  %v11719_v55 = vrot.slane %v9842_v45, %v9981_v3  ;;  %v11720_v34 = vrot.slane %v9822_v25, %v9981_v3 }
 0x76a   :  { %v3992_v38 = vmul.f32 %v11713_v57, %v3958_v7  ;;  %v3993_v44 = vmul.f32 %v11714_v29, %v3958_v7  ;;  %v3994_v36 = vmul.f32 %v11715_v27, %v3958_v7  ;;  %v3995_v56 = vmul.f32 %v11716_v40, %v3958_v7 }
 0x76b   :  { %v3996_v47 = vmul.f32 %v11717_v33, %v3958_v7  ;;  %v3997_v62 = vmul.f32 %v11718_v13, %v3958_v7  ;;  %v3998_v12 = vmul.f32 %v11719_v55, %v3958_v7  ;;  %v3999_v51 = vmul.f32 %v11720_v34, %v3958_v7 }
 0x76c   :  { %v4000_v4 = vadd.f32 %v3992_v38, %v3948_v9  ;;  %v4001_v59 = vadd.f32 %v3993_v44, %v3949_v17  ;;  %v4002_v5 = vadd.f32 %v3994_v36, %v3950_v50  ;;  %v4003_v42 = vadd.f32 %v3995_v56, %v3951_v21 }
 0x76d   :  { %v4004_v52 = vadd.f32 %v3996_v47, %v3952_v31  ;;  %v4005_v58 = vadd.f32 %v3997_v62, %v3953_v10  ;;  %v4006_v0 = vadd.f32 %v3998_v12, %v3954_v1  ;;  %v4007_v54 = vadd.f32 %v3999_v51, %v3955_v22 }
 0x76e   :  { %v11721_v15 = vrot.slane %v9715_v32, %v9998_v63  ;;  %v11722_v14 = vrot.slane %v9667_v49, %v9998_v63  ;;  %v11723_v7 = vrot.slane %v9697_v35, %v9998_v63  ;;  %v11724_v21 = vrot.slane %v9687_v23, %v9998_v63 }
 0x76f   :  { %v11725_v22 = vrot.slane %v9793_v43, %v9998_v63  ;;  %v11726_v10 = vrot.slane %v9760_v16, %v9998_v63  ;;  %v11727_v61 = vrot.slane %v9842_v45, %v9998_v63  ;;  %v11728_v2 = vrot.slane %v9822_v25, %v9998_v63 }
 0x770   :  { %v4044_v6 = vmul.f32 %v11721_v15, %v4010_v8  ;;  %v4045_v11 = vmul.f32 %v11722_v14, %v4010_v8  ;;  %v4046_v9 = vmul.f32 %v11723_v7, %v4010_v8  ;;  %v4047_v31 = vmul.f32 %v11724_v21, %v4010_v8 }
 0x771   :  { %v4048_v17 = vmul.f32 %v11725_v22, %v4010_v8  ;;  %v4049_v60 = vmul.f32 %v11726_v10, %v4010_v8  ;;  %v4050_v46 = vmul.f32 %v11727_v61, %v4010_v8  ;;  %v4051_v50 = vmul.f32 %v11728_v2, %v4010_v8 }
 0x772   :  { %v4052_v1 = vadd.f32 %v4044_v6, %v4000_v4  ;;  %v4053_v57 = vadd.f32 %v4045_v11, %v4001_v59  ;;  %v4054_v38 = vadd.f32 %v4046_v9, %v4002_v5  ;;  %v4055_v29 = vadd.f32 %v4047_v31, %v4003_v42 }
 0x773   :  { %v4056_v44 = vadd.f32 %v4048_v17, %v4004_v52  ;;  %v4057_v27 = vadd.f32 %v4049_v60, %v4005_v58  ;;  %v4058_v36 = vadd.f32 %v4050_v46, %v4006_v0  ;;  %v4059_v40 = vadd.f32 %v4051_v50, %v4007_v54  ;;  %v4166_v58 = vpop.permute.xlu0 %4165  ;;  %v4114_v0 = vpop.permute.xlu1 %4113 }
 0x774   :  { %v11729_v56 = vrot.slane %v9715_v32, %v10015_v20  ;;  %v11730_v47 = vrot.slane %v9667_v49, %v10015_v20  ;;  %v11731_v62 = vrot.slane %v9697_v35, %v10015_v20  ;;  %v11732_v12 = vrot.slane %v9687_v23, %v10015_v20 }
 0x775   :  { %v11733_v51 = vrot.slane %v9793_v43, %v10015_v20  ;;  %v11734_v4 = vrot.slane %v9760_v16, %v10015_v20  ;;  %v11735_v49 = vrot.slane %v9842_v45, %v10015_v20  ;;  %v11736_v42 = vrot.slane %v9822_v25, %v10015_v20 }
 0x776   :  { %v4096_v33 = vmul.f32 %v11729_v56, %v4062_v30  ;;  %v4097_v13 = vmul.f32 %v11730_v47, %v4062_v30  ;;  %v4098_v55 = vmul.f32 %v11731_v62, %v4062_v30  ;;  %v4099_v34 = vmul.f32 %v11732_v12, %v4062_v30 }
 0x777   :  { %v4100_v8 = vmul.f32 %v11733_v51, %v4062_v30  ;;  %v4101_v59 = vmul.f32 %v11734_v4, %v4062_v30  ;;  %v4102_v5 = vmul.f32 %v11735_v49, %v4062_v30  ;;  %v4103_v52 = vmul.f32 %v11736_v42, %v4062_v30  ;;  %v4218_v49 = vpop.permute.xlu1 %4217 }
 0x778   :  { %v4104_v54 = vadd.f32 %v4096_v33, %v4052_v1  ;;  %v4105_v15 = vadd.f32 %v4097_v13, %v4053_v57  ;;  %v4106_v6 = vadd.f32 %v4098_v55, %v4054_v38  ;;  %v4107_v14 = vadd.f32 %v4099_v34, %v4055_v29 }
 0x779   :  { %v4108_v11 = vadd.f32 %v4100_v8, %v4056_v44  ;;  %v4109_v7 = vadd.f32 %v4101_v59, %v4057_v27  ;;  %v4110_v9 = vadd.f32 %v4102_v5, %v4058_v36  ;;  %v4111_v21 = vadd.f32 %v4103_v52, %v4059_v40  ;;  %v11745_v44 = vld [vmem:[#allocation77_spill] sm:$0xff]  ;;  %v11747_v36 = vld [vmem:[#allocation84_spill] sm:$0xff]  ;;  %v4322_v59 = vpop.permute.xlu0 %4321 }
 0x77a   :  { %v11737_v31 = vrot.slane %v9720_v28, %v11683_v24  ;;  %v11738_v17 = vrot.slane %v9672_v26, %v11683_v24  ;;  %v11739_v30 = vrot.slane %v9704_v18, %v11683_v24  ;;  %v11740_v61 = vrot.slane %v9692_v37, %v11683_v24 }
 0x77b   :  { %v11741_v2 = vrot.slane %v9798_v19, %v11683_v24  ;;  %v11742_v1 = vrot.slane %v9765_v41, %v11683_v24  ;;  %v11743_v26 = vrot.slane %v9847_v39, %v11683_v24  ;;  %v11744_v18 = vrot.slane %v9827_v48, %v11683_v24 }
 0x77c   :  { %v4200_v22 = vmul.f32 %v11737_v31, %v4166_v58  ;;  %v4201_v10 = vmul.f32 %v11738_v17, %v4166_v58  ;;  %v4202_v60 = vmul.f32 %v11739_v30, %v4166_v58  ;;  %v4203_v46 = vmul.f32 %v11740_v61, %v4166_v58 }
 0x77d   :  { %v4204_v50 = vmul.f32 %v11741_v2, %v4166_v58  ;;  %v4205_v57 = vmul.f32 %v11742_v1, %v4166_v58  ;;  %v4206_v38 = vmul.f32 %v11743_v26, %v4166_v58  ;;  %v4207_v29 = vmul.f32 %v11744_v18, %v4166_v58 }
 0x77e   :  { %v11746_v37 = vrot.slane %v9715_v32, %v11745_v44  ;;  %v11748_v40 = vrot.slane %v11747_v36, %v11745_v44  ;;  %v11749_v33 = vrot.slane %v9697_v35, %v11745_v44  ;;  %v11750_v13 = vrot.slane %v9687_v23, %v11745_v44 }
 0x77f   :  { %v11751_v55 = vrot.slane %v9793_v43, %v11745_v44  ;;  %v11752_v32 = vrot.slane %v9760_v16, %v11745_v44  ;;  %v11753_v51 = vrot.slane %v9842_v45, %v11745_v44  ;;  %v11754_v35 = vrot.slane %v9822_v25, %v11745_v44  ;;  %v11755_v16 = vld [vmem:[#allocation7_spill] sm:$0xff]  ;;  %v11757_v45 = vld [vmem:[#allocation82_spill] sm:$0xff] }
 0x780   :  { %v4148_v27 = vmul.f32 %v11746_v37, %v4114_v0  ;;  %v4149_v56 = vmul.f32 %v11748_v40, %v4114_v0  ;;  %v4150_v47 = vmul.f32 %v11749_v33, %v4114_v0  ;;  %v4151_v62 = vmul.f32 %v11750_v13, %v4114_v0 }
 0x781   :  { %v4152_v12 = vmul.f32 %v11751_v55, %v4114_v0  ;;  %v4153_v34 = vmul.f32 %v11752_v32, %v4114_v0  ;;  %v4154_v8 = vmul.f32 %v11753_v51, %v4114_v0  ;;  %v4155_v4 = vmul.f32 %v11754_v35, %v4114_v0  ;;  %v11759_v0 = vld [vmem:[#allocation12_spill] sm:$0xff]  ;;  %v11767_v32 = vld [vmem:[#allocation5_spill] sm:$0xff] }
 0x782   :  { %v4156_v23 = vadd.f32 %v4148_v27, %v4104_v54  ;;  %v4157_v5 = vadd.f32 %v4149_v56, %v4105_v15  ;;  %v4158_v42 = vadd.f32 %v4150_v47, %v4106_v6  ;;  %v4159_v52 = vadd.f32 %v4151_v62, %v4107_v14  ;;  %v11761_v6 = vld [vmem:[#allocation19_spill] sm:$0xff] }
 0x783   :  { %v4160_v43 = vadd.f32 %v4152_v12, %v4108_v11  ;;  %v4161_v58 = vadd.f32 %v4153_v34, %v4109_v7  ;;  %v4162_v31 = vadd.f32 %v4154_v8, %v4110_v9  ;;  %v4163_v17 = vadd.f32 %v4155_v4, %v4111_v21  ;;  %v4270_v12 = vpop.permute.xlu1 %4269 }
 0x784   :  { %v11756_v30 = vrot.slane %v9720_v28, %v11755_v16  ;;  %v11758_v2 = vrot.slane %v11757_v45, %v11755_v16  ;;  %v11760_v54 = vrot.slane %v11759_v0, %v11755_v16  ;;  %v11762_v14 = vrot.slane %v11761_v6, %v11755_v16 }
 0x785   :  { %v11763_v7 = vrot.slane %v9798_v19, %v11755_v16  ;;  %v11764_v21 = vrot.slane %v9765_v41, %v11755_v16  ;;  %v11765_v26 = vrot.slane %v9847_v39, %v11755_v16  ;;  %v11766_v37 = vrot.slane %v9827_v48, %v11755_v16 }
 0x786   :  { %v10485_v61 = vmul.f32 %v11756_v30, %v4322_v59  ;;  %v10490_v25 = vmul.f32 %v11758_v2, %v4322_v59  ;;  %v10495_v15 = vmul.f32 %v11760_v54, %v4322_v59  ;;  %v10500_v11 = vmul.f32 %v11762_v14, %v4322_v59  ;;  %v11776_v54 = vld [vmem:[#allocation97_spill] sm:$0xff] }
 0x787   :  { %v10505_v9 = vmul.f32 %v11763_v7, %v4322_v59  ;;  %v10510_v1 = vmul.f32 %v11764_v21, %v4322_v59  ;;  %v10515_v18 = vmul.f32 %v11765_v26, %v4322_v59  ;;  %v10520_v27 = vmul.f32 %v11766_v37, %v4322_v59 }
 0x788   :  { %v4208_v36 = vadd.f32 %v4200_v22, %v4156_v23  ;;  %v4209_v40 = vadd.f32 %v4201_v10, %v4157_v5  ;;  %v4210_v56 = vadd.f32 %v4202_v60, %v4158_v42  ;;  %v4211_v33 = vadd.f32 %v4203_v46, %v4159_v52  ;;  %v4478_v5 = vpop.permute.xlu0 %4477 }
 0x789   :  { %v4212_v47 = vadd.f32 %v4204_v50, %v4160_v43  ;;  %v4213_v13 = vadd.f32 %v4205_v57, %v4161_v58  ;;  %v4214_v62 = vadd.f32 %v4206_v38, %v4162_v31  ;;  %v4215_v55 = vadd.f32 %v4207_v29, %v4163_v17 }
 0x78a   :  { %v11768_v34 = vrot.slane %v9720_v28, %v11767_v32  ;;  %v11769_v8 = vrot.slane %v11757_v45, %v11767_v32  ;;  %v11770_v4 = vrot.slane %v11759_v0, %v11767_v32  ;;  %v11771_v10 = vrot.slane %v11761_v6, %v11767_v32 }
 0x78b   :  { %v11772_v46 = vrot.slane %v9798_v19, %v11767_v32  ;;  %v11773_v28 = vrot.slane %v9765_v41, %v11767_v32  ;;  %v11774_v38 = vrot.slane %v9847_v39, %v11767_v32  ;;  %v11775_v59 = vrot.slane %v9827_v48, %v11767_v32 }
 0x78c   :  { %v4252_v51 = vmul.f32 %v11768_v34, %v4218_v49  ;;  %v4253_v35 = vmul.f32 %v11769_v8, %v4218_v49  ;;  %v4254_v22 = vmul.f32 %v11770_v4, %v4218_v49  ;;  %v4255_v60 = vmul.f32 %v11771_v10, %v4218_v49  ;;  %v4374_v8 = vpop.permute.xlu1 %4373 }
 0x78d   :  { %v4256_v50 = vmul.f32 %v11772_v46, %v4218_v49  ;;  %v4257_v57 = vmul.f32 %v11773_v28, %v4218_v49  ;;  %v4258_v29 = vmul.f32 %v11774_v38, %v4218_v49  ;;  %v4259_v23 = vmul.f32 %v11775_v59, %v4218_v49 }
 0x78e   :  { %v4260_v42 = vadd.f32 %v4252_v51, %v4208_v36  ;;  %v4261_v52 = vadd.f32 %v4253_v35, %v4209_v40  ;;  %v4262_v43 = vadd.f32 %v4254_v22, %v4210_v56  ;;  %v4263_v58 = vadd.f32 %v4255_v60, %v4211_v33 }
 0x78f   :  { %v4264_v31 = vadd.f32 %v4256_v50, %v4212_v47  ;;  %v4265_v17 = vadd.f32 %v4257_v57, %v4213_v13  ;;  %v4266_v30 = vadd.f32 %v4258_v29, %v4214_v62  ;;  %v4267_v2 = vadd.f32 %v4259_v23, %v4215_v55  ;;  %v11790_v57 = vld [vmem:[#allocation8_spill] sm:$0xff] }
 0x790   :  { %v11777_v14 = vrot.slane %v11776_v54, %v10015_v20  ;;  %v11778_v21 = vrot.slane %v11757_v45, %v10015_v20  ;;  %v11779_v49 = vrot.slane %v11759_v0, %v10015_v20  ;;  %v11780_v36 = vrot.slane %v11761_v6, %v10015_v20 }
 0x791   :  { %v11781_v56 = vrot.slane %v9798_v19, %v10015_v20  ;;  %v11782_v47 = vrot.slane %v9765_v41, %v10015_v20  ;;  %v11783_v62 = vrot.slane %v9847_v39, %v10015_v20  ;;  %v11784_v34 = vrot.slane %v9827_v48, %v10015_v20 }
 0x792   :  { %v10549_v7 = vmul.f32 %v11777_v14, %v4478_v5  ;;  %v10554_v26 = vmul.f32 %v11778_v21, %v4478_v5  ;;  %v10559_v37 = vmul.f32 %v11779_v49, %v4478_v5  ;;  %v10564_v40 = vmul.f32 %v11780_v36, %v4478_v5  ;;  %v4634_v21 = vpop.permute.xlu0 %4633 }
 0x793   :  { %v10569_v33 = vmul.f32 %v11781_v56, %v4478_v5  ;;  %v10574_v13 = vmul.f32 %v11782_v47, %v4478_v5  ;;  %v10579_v55 = vmul.f32 %v11783_v62, %v4478_v5  ;;  %v10584_v51 = vmul.f32 %v11784_v34, %v4478_v5 }
 0x794   :  { %v11785_v35 = vrot.slane %v11776_v54, %v11685_v53  ;;  %v11786_v41 = vrot.slane %v11757_v45, %v11685_v53  ;;  %v11787_v10 = vrot.slane %v11759_v0, %v11685_v53  ;;  %v11788_v46 = vrot.slane %v11761_v6, %v11685_v53 }
 0x795   :  { %v11789_v20 = vrot.slane %v9798_v19, %v11685_v53  ;;  %v11791_v38 = vrot.slane %v11790_v57, %v11685_v53  ;;  %v11792_v59 = vrot.slane %v9847_v39, %v11685_v53  ;;  %v11793_v5 = vrot.slane %v9827_v48, %v11685_v53 }
 0x796   :  { %v4304_v4 = vmul.f32 %v11785_v35, %v4270_v12  ;;  %v4305_v22 = vmul.f32 %v11786_v41, %v4270_v12  ;;  %v4306_v60 = vmul.f32 %v11787_v10, %v4270_v12  ;;  %v4307_v50 = vmul.f32 %v11788_v46, %v4270_v12  ;;  %v11794_v10 = vld [vmem:[#allocation13_spill] sm:$0xff] }
 0x797   :  { %v4308_v28 = vmul.f32 %v11789_v20, %v4270_v12  ;;  %v4309_v29 = vmul.f32 %v11791_v38, %v4270_v12  ;;  %v4310_v23 = vmul.f32 %v11792_v59, %v4270_v12  ;;  %v4311_v14 = vmul.f32 %v11793_v5, %v4270_v12  ;;  %v11796_v38 = vld [vmem:[#allocation31_spill] sm:$0xff] }
 0x798   :  { %v4312_v49 = vadd.f32 %v4304_v4, %v4260_v42  ;;  %v4313_v36 = vadd.f32 %v4305_v22, %v4261_v52  ;;  %v4314_v56 = vadd.f32 %v4306_v60, %v4262_v43  ;;  %v4315_v47 = vadd.f32 %v4307_v50, %v4263_v58  ;;  %v11798_v12 = vld [vmem:[#allocation83_spill] sm:$0xff]  ;;  %v11804_v4 = vld [vmem:[#allocation80_spill] sm:$0xff] }
 0x799   :  { %v4316_v62 = vadd.f32 %v4308_v28, %v4264_v31  ;;  %v4317_v34 = vadd.f32 %v4309_v29, %v4265_v17  ;;  %v4318_v35 = vadd.f32 %v4310_v23, %v4266_v30  ;;  %v4319_v41 = vadd.f32 %v4311_v14, %v4267_v2  ;;  %v11800_v43 = vld [vmem:[#allocation11_spill] sm:$0xff]  ;;  %v11802_v17 = vld [vmem:[#allocation78_spill] sm:$0xff]  ;;  %v11810_v23 = vld [vmem:[#allocation104_spill] sm:$0xff] }
 0x79a   :  { %v11795_v46 = vrot.slane %v11794_v10, %v11767_v32  ;;  %v11797_v59 = vrot.slane %v11796_v38, %v11767_v32  ;;  %v11799_v42 = vrot.slane %v11798_v12, %v11767_v32  ;;  %v11801_v58 = vrot.slane %v11800_v43, %v11767_v32  ;;  %v11807_v50 = vld [vmem:[#allocation79_spill] sm:$0xff] }
 0x79b   :  { %v11803_v30 = vrot.slane %v11802_v17, %v11767_v32  ;;  %v11805_v22 = vrot.slane %v11804_v4, %v11767_v32  ;;  %v11808_v28 = vrot.slane %v11807_v50, %v11767_v32  ;;  %v11811_v5 = vrot.slane %v11810_v23, %v11767_v32 }
 0x79c   :  { %v10613_v20 = vmul.f32 %v11795_v46, %v4634_v21  ;;  %v10618_v16 = vmul.f32 %v11797_v59, %v4634_v21  ;;  %v10623_v52 = vmul.f32 %v11799_v42, %v4634_v21  ;;  %v10628_v31 = vmul.f32 %v11801_v58, %v4634_v21  ;;  %v4426_v46 = vpop.permute.xlu1 %4425 }
 0x79d   :  { %v10633_v2 = vmul.f32 %v11803_v30, %v4634_v21  ;;  %v10638_v60 = vmul.f32 %v11805_v22, %v4634_v21  ;;  %v10643_v29 = vmul.f32 %v11808_v28, %v4634_v21  ;;  %v10648_v14 = vmul.f32 %v11811_v5, %v4634_v21 }
 0x79e   :  { %v4364_v59 = vadd.f32 %v10485_v61, %v4312_v49  ;;  %v4365_v42 = vadd.f32 %v10490_v25, %v4313_v36  ;;  %v4366_v58 = vadd.f32 %v10495_v15, %v4314_v56  ;;  %v4367_v30 = vadd.f32 %v10500_v11, %v4315_v47 }
 0x79f   :  { %11806 = vst [vmem:[#allocation81_spill] sm:$0xff] %v10638_v60  ;;  %11809 = vst [vmem:[#allocation20_spill] sm:$0xff] %v10643_v29  ;;  %v4368_v22 = vadd.f32 %v10505_v9, %v4316_v62  ;;  %v4369_v12 = vadd.f32 %v10510_v1, %v4317_v34  ;;  %v4370_v28 = vadd.f32 %v10515_v18, %v4318_v35 }
 0x7a0   :  { %11812 = vst [vmem:[#allocation102_spill] sm:$0xff] %v10648_v14  ;;  %v4371_v10 = vadd.f32 %v10520_v27, %v4319_v41  ;;  %v11813_v32 = vrot.slane %v11776_v54, %v9981_v3  ;;  %v11814_v61 = vrot.slane %v11757_v45, %v9981_v3  ;;  %v11815_v15 = vrot.slane %v11759_v0, %v9981_v3  ;;  %v4530_v14 = vpop.permute.xlu1 %4529 }
 0x7a1   :  { %v11816_v9 = vrot.slane %v11761_v6, %v9981_v3  ;;  %v11817_v18 = vrot.slane %v9798_v19, %v9981_v3  ;;  %v11818_v49 = vrot.slane %v11790_v57, %v9981_v3  ;;  %v11819_v56 = vrot.slane %v9847_v39, %v9981_v3 }
 0x7a2   :  { %v4408_v21 = vmul.f32 %v11813_v32, %v4374_v8  ;;  %v4409_v25 = vmul.f32 %v11814_v61, %v4374_v8  ;;  %v4410_v11 = vmul.f32 %v11815_v15, %v4374_v8  ;;  %v11820_v62 = vrot.slane %v9827_v48, %v9981_v3 }
 0x7a3   :  { %v4411_v1 = vmul.f32 %v11816_v9, %v4374_v8  ;;  %v4412_v27 = vmul.f32 %v11817_v18, %v4374_v8  ;;  %v4413_v36 = vmul.f32 %v11818_v49, %v4374_v8  ;;  %v4414_v47 = vmul.f32 %v11819_v56, %v4374_v8 }
 0x7a4   :  { %v4415_v34 = vmul.f32 %v11820_v62, %v4374_v8  ;;  %v4416_v35 = vadd.f32 %v4408_v21, %v4364_v59  ;;  %v4417_v41 = vadd.f32 %v4409_v25, %v4365_v42  ;;  %v4418_v5 = vadd.f32 %v4410_v11, %v4366_v58 }
 0x7a5   :  { %v4419_v32 = vadd.f32 %v4411_v1, %v4367_v30  ;;  %v4420_v61 = vadd.f32 %v4412_v27, %v4368_v22  ;;  %v4421_v15 = vadd.f32 %v4413_v36, %v4369_v12  ;;  %v4422_v9 = vadd.f32 %v4414_v47, %v4370_v28 }
 0x7a6   :  { %v4423_v18 = vadd.f32 %v4415_v34, %v4371_v10  ;;  %v11821_v49 = vrot.slane %v11776_v54, %v9998_v63  ;;  %v11822_v56 = vrot.slane %v11757_v45, %v9998_v63  ;;  %v11823_v3 = vrot.slane %v11759_v0, %v9998_v63 }
 0x7a7   :  { %v11824_v59 = vrot.slane %v11761_v6, %v9998_v63  ;;  %v11825_v10 = vrot.slane %v9798_v19, %v9998_v63  ;;  %v11826_v58 = vrot.slane %v11790_v57, %v9998_v63  ;;  %v11827_v22 = vrot.slane %v9847_v39, %v9998_v63 }
 0x7a8   :  { %v4460_v29 = vmul.f32 %v11821_v49, %v4426_v46  ;;  %v4461_v60 = vmul.f32 %v11822_v56, %v4426_v46  ;;  %v4462_v8 = vmul.f32 %v11823_v3, %v4426_v46  ;;  %v11828_v21 = vrot.slane %v9827_v48, %v9998_v63 }
 0x7a9   :  { %v4463_v42 = vmul.f32 %v11824_v59, %v4426_v46  ;;  %v4464_v12 = vmul.f32 %v11825_v10, %v4426_v46  ;;  %v4465_v30 = vmul.f32 %v11826_v58, %v4426_v46  ;;  %v4466_v28 = vmul.f32 %v11827_v22, %v4426_v46 }
 0x7aa   :  { %v4467_v25 = vmul.f32 %v11828_v21, %v4426_v46  ;;  %v4468_v11 = vadd.f32 %v4460_v29, %v4416_v35  ;;  %v4469_v1 = vadd.f32 %v4461_v60, %v4417_v41  ;;  %v4470_v27 = vadd.f32 %v4462_v8, %v4418_v5  ;;  %v4582_v46 = vpop.permute.xlu1 %4581  ;;  %v11840_v21 = vld [vmem:[#allocation17_spill] sm:$0xff] }
 0x7ab   :  { %v4471_v36 = vadd.f32 %v4463_v42, %v4419_v32  ;;  %v4472_v47 = vadd.f32 %v4464_v12, %v4420_v61  ;;  %v4473_v62 = vadd.f32 %v4465_v30, %v4421_v15  ;;  %v4474_v34 = vadd.f32 %v4466_v28, %v4422_v9  ;;  %v11837_v30 = vld [vmem:[#allocation15_spill] sm:$0xff] }
 0x7ac   :  { %v4475_v49 = vadd.f32 %v4467_v25, %v4423_v18  ;;  %v4520_v56 = vadd.f32 %v10549_v7, %v4468_v11  ;;  %v4521_v3 = vadd.f32 %v10554_v26, %v4469_v1  ;;  %v4522_v59 = vadd.f32 %v10559_v37, %v4470_v27 }
 0x7ad   :  { %v4523_v10 = vadd.f32 %v10564_v40, %v4471_v36  ;;  %v4524_v58 = vadd.f32 %v10569_v33, %v4472_v47  ;;  %v4525_v63 = vadd.f32 %v10574_v13, %v4473_v62  ;;  %v4526_v60 = vadd.f32 %v10579_v55, %v4474_v34 }
 0x7ae   :  { %v4527_v29 = vadd.f32 %v10584_v51, %v4475_v49  ;;  %v11829_v35 = vrot.slane %v11776_v54, %v11745_v44  ;;  %v11830_v7 = vrot.slane %v11757_v45, %v11745_v44  ;;  %v11831_v37 = vrot.slane %v11759_v0, %v11745_v44 }
 0x7af   :  { %v11832_v33 = vrot.slane %v11761_v6, %v11745_v44  ;;  %v11833_v55 = vrot.slane %v9798_v19, %v11745_v44  ;;  %v11834_v54 = vrot.slane %v11790_v57, %v11745_v44  ;;  %v11835_v45 = vrot.slane %v9847_v39, %v11745_v44 }
 0x7b0   :  { %v4564_v41 = vmul.f32 %v11829_v35, %v4530_v14  ;;  %v4565_v26 = vmul.f32 %v11830_v7, %v4530_v14  ;;  %v4566_v40 = vmul.f32 %v11831_v37, %v4530_v14  ;;  %v11836_v0 = vrot.slane %v9827_v48, %v11745_v44 }
 0x7b1   :  { %v4567_v13 = vmul.f32 %v11832_v33, %v4530_v14  ;;  %v4568_v51 = vmul.f32 %v11833_v55, %v4530_v14  ;;  %v4569_v5 = vmul.f32 %v11834_v54, %v4530_v14  ;;  %v4570_v32 = vmul.f32 %v11835_v45, %v4530_v14 }
 0x7b2   :  { %v4571_v61 = vmul.f32 %v11836_v0, %v4530_v14  ;;  %v4572_v15 = vadd.f32 %v4564_v41, %v4520_v56  ;;  %v4573_v9 = vadd.f32 %v4565_v26, %v4521_v3  ;;  %v4574_v6 = vadd.f32 %v4566_v40, %v4522_v59  ;;  %v4686_v56 = vpop.permute.xlu1 %4685 }
 0x7b3   :  { %v4575_v18 = vadd.f32 %v4567_v13, %v4523_v10  ;;  %v4576_v8 = vadd.f32 %v4568_v51, %v4524_v58  ;;  %v4577_v42 = vadd.f32 %v4569_v5, %v4525_v63  ;;  %v4578_v19 = vadd.f32 %v4570_v32, %v4526_v60 }
 0x7b4   :  { %v4579_v12 = vadd.f32 %v4571_v61, %v4527_v29  ;;  %v11838_v57 = vrot.slane %v11837_v30, %v11683_v24  ;;  %v11839_v39 = vrot.slane %v11796_v38, %v11683_v24  ;;  %v11841_v48 = vrot.slane %v11840_v21, %v11683_v24 }
 0x7b5   :  { %v11842_v14 = vrot.slane %v11800_v43, %v11683_v24  ;;  %v11843_v11 = vrot.slane %v11802_v17, %v11683_v24  ;;  %v11844_v27 = vrot.slane %v11804_v4, %v11683_v24  ;;  %v11845_v47 = vrot.slane %v11807_v50, %v11683_v24 }
 0x7b6   :  { %v4616_v22 = vmul.f32 %v11838_v57, %v4582_v46  ;;  %v4617_v28 = vmul.f32 %v11839_v39, %v4582_v46  ;;  %v4618_v44 = vmul.f32 %v11841_v48, %v4582_v46  ;;  %v11846_v34 = vrot.slane %v11810_v23, %v11683_v24  ;;  %v11857_v57 = vld [vmem:[#allocation102_spill] sm:$0xff] }
 0x7b7   :  { %v4619_v25 = vmul.f32 %v11842_v14, %v4582_v46  ;;  %v4620_v1 = vmul.f32 %v11843_v11, %v4582_v46  ;;  %v4621_v36 = vmul.f32 %v11844_v27, %v4582_v46  ;;  %v4622_v62 = vmul.f32 %v11845_v47, %v4582_v46  ;;  %v11859_v14 = vld [vmem:[#allocation7_spill] sm:$0xff] }
 0x7b8   :  { %v4623_v49 = vmul.f32 %v11846_v34, %v4582_v46  ;;  %v4624_v3 = vadd.f32 %v4616_v22, %v4572_v15  ;;  %v4625_v59 = vadd.f32 %v4617_v28, %v4573_v9  ;;  %v4626_v10 = vadd.f32 %v4618_v44, %v4574_v6 }
 0x7b9   :  { %v4627_v58 = vadd.f32 %v4619_v25, %v4575_v18  ;;  %v4628_v63 = vadd.f32 %v4620_v1, %v4576_v8  ;;  %v4629_v60 = vadd.f32 %v4621_v36, %v4577_v42  ;;  %v4630_v29 = vadd.f32 %v4622_v62, %v4578_v19  ;;  %v4738_v18 = vpop.permute.xlu1 %4737  ;;  %v11855_v42 = vld [vmem:[#allocation81_spill] sm:$0xff]  ;;  %v11862_v1 = vld [vmem:[#allocation83_spill] sm:$0xff] }
 0x7ba   :  { %v4631_v35 = vadd.f32 %v4623_v49, %v4579_v12  ;;  %v11847_v41 = vrot.slane %v11837_v30, %v11685_v53  ;;  %v11848_v26 = vrot.slane %v11796_v38, %v11685_v53  ;;  %v11849_v24 = vrot.slane %v11840_v21, %v11685_v53  ;;  %v11856_v12 = vld [vmem:[#allocation20_spill] sm:$0xff] }
 0x7bb   :  { %v11850_v40 = vrot.slane %v11800_v43, %v11685_v53  ;;  %v11851_v13 = vrot.slane %v11802_v17, %v11685_v53  ;;  %v11852_v51 = vrot.slane %v11804_v4, %v11685_v53  ;;  %v11853_v5 = vrot.slane %v11807_v50, %v11685_v53 }
 0x7bc   :  { %v4720_v7 = vmul.f32 %v11847_v41, %v4686_v56  ;;  %v4721_v37 = vmul.f32 %v11848_v26, %v4686_v56  ;;  %v4722_v46 = vmul.f32 %v11849_v24, %v4686_v56  ;;  %v11854_v32 = vrot.slane %v11810_v23, %v11685_v53 }
 0x7bd   :  { %v4723_v33 = vmul.f32 %v11850_v40, %v4686_v56  ;;  %v4724_v55 = vmul.f32 %v11851_v13, %v4686_v56  ;;  %v4725_v54 = vmul.f32 %v11852_v51, %v4686_v56  ;;  %v4726_v45 = vmul.f32 %v11853_v5, %v4686_v56 }
 0x7be   :  { %v4727_v0 = vmul.f32 %v11854_v32, %v4686_v56  ;;  %v4676_v61 = vadd.f32 %v10613_v20, %v4624_v3  ;;  %v4677_v15 = vadd.f32 %v10618_v16, %v4625_v59  ;;  %v4678_v9 = vadd.f32 %v10623_v52, %v4626_v10  ;;  %v11858_v52 = vld [vmem:[#allocation13_spill] sm:$0xff] }
 0x7bf   :  { %v4679_v6 = vadd.f32 %v10628_v31, %v4627_v58  ;;  %v4680_v8 = vadd.f32 %v10633_v2, %v4628_v63  ;;  %v4681_v19 = vadd.f32 %v11855_v42, %v4629_v60  ;;  %v4682_v30 = vadd.f32 %v11856_v12, %v4630_v29 }
 0x7c0   :  { %v4683_v22 = vadd.f32 %v11857_v57, %v4631_v35  ;;  %v4728_v39 = vadd.f32 %v4720_v7, %v4676_v61  ;;  %v4729_v53 = vadd.f32 %v4721_v37, %v4677_v15  ;;  %v4730_v28 = vadd.f32 %v4722_v46, %v4678_v9  ;;  %v11869_v46 = vld [vmem:[#allocation3_spill] sm:$0xff] }
 0x7c1   :  { %v4731_v21 = vadd.f32 %v4723_v33, %v4679_v6  ;;  %v4732_v20 = vadd.f32 %v4724_v55, %v4680_v8  ;;  %v4733_v48 = vadd.f32 %v4725_v54, %v4681_v19  ;;  %v4734_v16 = vadd.f32 %v4726_v45, %v4682_v30 }
 0x7c2   :  { %v4735_v44 = vadd.f32 %v4727_v0, %v4683_v22  ;;  %v11860_v31 = vrot.slane %v11858_v52, %v11859_v14  ;;  %v11861_v2 = vrot.slane %v11796_v38, %v11859_v14  ;;  %v11863_v27 = vrot.slane %v11862_v1, %v11859_v14 }
 0x7c3   :  { %v11864_v47 = vrot.slane %v11800_v43, %v11859_v14  ;;  %v11865_v34 = vrot.slane %v11802_v17, %v11859_v14  ;;  %v11866_v56 = vrot.slane %v11804_v4, %v11859_v14  ;;  %v11867_v38 = vrot.slane %v11807_v50, %v11859_v14 }
 0x7c4   :  { %v4772_v25 = vmul.f32 %v11860_v31, %v4738_v18  ;;  %v4773_v11 = vmul.f32 %v11861_v2, %v4738_v18  ;;  %v4774_v36 = vmul.f32 %v11863_v27, %v4738_v18  ;;  %v11868_v10 = vrot.slane %v11810_v23, %v11859_v14 }
 0x7c5   :  { %v4775_v62 = vmul.f32 %v11864_v47, %v4738_v18  ;;  %v4776_v49 = vmul.f32 %v11865_v34, %v4738_v18  ;;  %v4777_v3 = vmul.f32 %v11866_v56, %v4738_v18  ;;  %v4778_v59 = vmul.f32 %v11867_v38, %v4738_v18 }
 0x7c6   :  { %v4779_v58 = vmul.f32 %v11868_v10, %v4738_v18  ;;  %v4780_v63 = vadd.f32 %v4772_v25, %v4728_v39  ;;  %v4781_v60 = vadd.f32 %v4773_v11, %v4729_v53  ;;  %v4782_v43 = vadd.f32 %v4774_v36, %v4730_v28 }
 0x7c7   :  { %v4783_v29 = vadd.f32 %v4775_v62, %v4731_v21  ;;  %v4784_v35 = vadd.f32 %v4776_v49, %v4732_v20  ;;  %v4785_v41 = vadd.f32 %v4777_v3, %v4733_v48  ;;  %v4786_v17 = vadd.f32 %v4778_v59, %v4734_v16 }
 0x7c8   :  { %v4787_v7 = vadd.f32 %v4779_v58, %v4735_v44  ;;  %v4796_v26 = vcombine.low %v4780_v63, %v4781_v60 }
 0x7c9   :  { %v4797_v37 = vcombine.low %v4782_v43, %v4783_v29  ;;  %v4813_v4 = vcombine.low %v4784_v35, %v4785_v41 }
 0x7ca   :  { %v4814_v24 = vcombine.low %v4786_v17, %v4787_v7  ;;  %v4804_v40 = vrot.slane %v4796_v26, %v11869_v46 }
 0x7cb   :  { %v4811_v50 = vrot.slane %v4797_v37, %v11869_v46  ;;  %v4821_v33 = vrot.slane %v4813_v4, %v11869_v46 }
 0x7cc   :  { %v4828_v23 = vrot.slane %v4814_v24, %v11869_v46 }
 0x7cd   :  { %v4812_v13 = vcombine.low %v4804_v40, %v4811_v50 }
 0x7ce   :  { %v4829_v55 = vcombine.low %v4821_v33, %v4828_v23 }
 0x7cf   :  { %4832 = vst [vmem:[%s10842_s13] sm:$0xff] %v4812_v13 }
 0x7d0   :  { %4833 = vst [vmem:[%s10842_s13 + $0x8] sm:$0xff] %v4829_v55 }

</bundles_post_ra>
